<compile_context>
chip_gen: v7x
topology: tpu7x:2x2x1
jax: 0.10.0
libtpu: 0.0.40
codegen_flags: <defaults>
</compile_context>

<pallas_src>
import jax
import jax.numpy as jnp
from jax.experimental import pallas as pl
from jax.experimental.pallas import tpu as pltpu

EPS = 1e-6          # VNT epsilon (matches the PyTorch module)
BN_EPS = 1e-5       # nn.BatchNorm1d default eps
NEG_SLOPE = 0.2     # module default negative_slope


# --------------------------- in-kernel matmul helpers -------------------------
def _mmb(a, b):
    """Single bf16 x bf16 -> f32 MXU pass."""
    return jnp.dot(a, b, preferred_element_type=jnp.float32)


def _split(x):
    """f32 -> (hi, lo) bf16 pair with hi + lo == x to ~2^-16 relative."""
    hi = x.astype(jnp.bfloat16)
    lo = (x - hi.astype(jnp.float32)).astype(jnp.bfloat16)
    return hi, lo


def _mm_sel2(sel, x_hi, x_lo):
    """0/1 selector (exact in bf16) @ f32 data given as a hi/lo pair: 2 passes."""
    return _mmb(sel, x_hi) + _mmb(sel, x_lo)


def _mm_sel(sel, x):
    return _mm_sel2(sel, *_split(x))


def _mm_w(w_hi, w_lo, x_hi, x_lo):
    """~f32-accurate matmul from hi/lo bf16 splits of both operands: 3 passes
    (the dropped lo@lo term is O(2^-16) relative)."""
    return _mmb(w_hi, x_hi) + _mmb(w_hi, x_lo) + _mmb(w_lo, x_hi)


# ------------------------------- layer body -----------------------------------
def _vnt_leaky_layer(x_hi, x_lo, w_hi, w_lo, bn_scale, bn_shift,
                     s_sum, s_exp, c_out, row_pad, subtract_mean):
    """One VNTLinearLeakyReLU block on an interleaved [3*C_in, N] tile.

    Row layout everywhere: r = 3*channel + coord (coord in {0,1,2}).
      w_*    : [3*row_pad, 3*C_in] rows = [feat | dir | src(pre-tiled)], each
               group zero-padded to row_pad (multiple of 8) -> 8-aligned slices
      bn_*   : [c_out, 1]          eval-mode BN affine (running stats folded)
      s_sum  : [c_out, 3*c_out]    0/1: sums the 3 coords of each channel
      s_exp  : [3*c_out, c_out]    0/1: expands per-channel values back to rows
    """
    y = _mm_w(w_hi, w_lo, x_hi, x_lo)            # [3*row_pad, N]
    r = 3 * c_out
    p_raw = y[0:r]                               # map_to_feat
    d_raw = y[row_pad:row_pad + r]               # map_to_dir
    o_exp = y[2 * row_pad:2 * row_pad + r]       # map_to_src (already broadcast)

    # ---- VNTBatchNorm (dim=4, inference mode) ----
    if subtract_mean:
        mv = jnp.mean(p_raw, axis=-1, keepdims=True)          # mean over samples
        pc = p_raw - mv
    else:                                        # input centered -> mean is ~0
        pc = p_raw
    norm = jnp.sqrt(_mm_sel(s_sum, pc * pc)) + EPS            # [c_out, N]
    # norm_bn / norm == bn_scale + bn_shift * (1/norm): divide -> EUP reciprocal
    ratio = bn_scale + bn_shift * pl.reciprocal(norm, approx=True)
    p = pc * _mm_sel(s_exp, ratio)                            # [3*c_out, N]
    if subtract_mean:
        p = p + mv

    # ---- VN "leaky ReLU" along the learned direction ----
    d = d_raw - o_exp
    pmo = p - o_exp
    dot = _mm_sel(s_sum, pmo * d)                             # [c_out, N]
    d_nsq = _mm_sel(s_sum, d * d)                             # [c_out, N]
    # where(dot>=0, 0, dot/(dnsq+eps)) == min(dot, 0) * recip(dnsq+eps)
    # (exact reciprocal here: coef scales an O(|p|) correction directly).
    coef = jnp.minimum(dot, 0.0) * pl.reciprocal(d_nsq + EPS, approx=False)
    return p - (1.0 - NEG_SLOPE) * _mm_sel(s_exp, coef) * d


# --------------------------------- kernel -------------------------------------
def vnt_std_feature_kernel(x_ref, w1_ref, bn1_ref, w2_ref, bn2_ref, w3_ref,
                           s1_ref, s1t_ref, s2_ref, s2t_ref, g_ref, t_ref,
                           xstd_ref, z0_ref):
    tb = x_ref.shape[0]
    r0 = x_ref.shape[1]              # 3*C0
    c1 = s1_ref.shape[0]
    c2 = s2_ref.shape[0]
    rp1 = w1_ref.shape[0] // 3       # 8-aligned row pitch of layer-1 groups
    rp2 = w2_ref.shape[0] // 3
    rp0 = g_ref.shape[0] // 3        # 8-aligned row pitch of the G/T blocks

    # Constants: load / split once per grid step (hoisted out of the batch loop).
    w1_hi, w1_lo = _split(w1_ref[...])
    w2_hi, w2_lo = _split(w2_ref[...])
    w3_hi, w3_lo = _split(w3_ref[...])
    s1, s1t = s1_ref[...], s1t_ref[...]          # bf16 0/1 selectors
    s2, s2t = s2_ref[...], s2t_ref[...]
    gmat, tmat = g_ref[...], t_ref[...]
    bn1, bn2 = bn1_ref[...], bn2_ref[...]

    # TODO(synk): if bundle dumps ever show spill vld/vst at large tb, switch
    # this static unroll to lax.fori_loop(..., unroll=2) with dynamic x_ref[i].
    for i in range(tb):                          # static unroll over batch tile
        x = x_ref[i].astype(jnp.float32)                      # [3*C0, N]
        xc = x - jnp.mean(x, axis=-1, keepdims=True)          # center over N
        xc_hi, xc_lo = _split(xc)

        # Layer 1: mean_N(W @ xc) is analytically zero (xc is centered) -> skip.
        z1 = _vnt_leaky_layer(xc_hi, xc_lo, w1_hi, w1_lo,
                              bn1[:, 0:1], bn1[:, 1:2], s1, s1t,
                              c1, rp1, subtract_mean=False)
        z2 = _vnt_leaky_layer(*_split(z1), w2_hi, w2_lo,
                              bn2[:, 0:1], bn2[:, 1:2], s2, s2t,
                              c2, rp2, subtract_mean=True)
        z0 = _mm_w(w3_hi, w3_lo, *_split(z2))                 # [16, N], rows 9.. = 0
        z0_ref[i] = z0.astype(z0_ref.dtype)

        # x_std[3c + k, n] = sum_j xc[3c + j, n] * z0[3k + j, n]
        gx = _mm_sel2(gmat, xc_hi, xc_lo)                     # [3*rp0, N]
        tz = _mm_sel(tmat, z0)                                # [3*rp0, N]
        xstd = (gx[0:r0] * tz[0:r0]
                + gx[rp0:rp0 + r0] * tz[rp0:rp0 + r0]
                + gx[2 * rp0:2 * rp0 + r0] * tz[2 * rp0:2 * rp0 + r0])
        xstd_ref[i] = xstd.astype(xstd_ref.dtype)


# ------------------------------ wrapper-side prep -----------------------------
def _round_up(v, m):
    return ((v + m - 1) // m) * m


def _prep_constants(params, c0):
    """Tiny precomputed matrices (all built wrapper-side, outside the kernel)."""
    c1, c2 = c0 // 2, c0 // 4
    f32, bf16 = jnp.float32, jnp.bfloat16
    i3 = jnp.eye(3, dtype=f32)

    def kron3(w):                    # VNTLinear softmax-norm, kron with I3
        return jnp.kron(jax.nn.softmax(w.astype(f32), axis=1), i3)

    def pad_rows(m, rows):           # zero-row padding (never read back)
        return jnp.pad(m, ((0, rows - m.shape[0]), (0, 0)))

    def fused_layer_w(p, cout):      # [3*row_pad, 3*cin], groups 8-aligned
        rp = _round_up(3 * cout, 8)
        return jnp.concatenate(
            [pad_rows(kron3(p['w_feat']), rp),
             pad_rows(kron3(p['w_dir']), rp),
             pad_rows(jnp.tile(kron3(p['w_src']), (cout, 1)), rp)], axis=0)

    def bn_affine(p):                # fold running stats into scale/shift
        scale = p['gamma'] / jnp.sqrt(p['run_var'] + BN_EPS)
        shift = p['beta'] - p['run_mean'] * scale
        return jnp.stack([scale, shift], axis=1).astype(f32)      # [cout, 2]

    def sum_mat(c):                  # [c, 3c]: sums the 3 coords per channel
        return jnp.kron(jnp.eye(c, dtype=f32), jnp.ones((1, 3), f32))

    s1, s2 = sum_mat(c1), sum_mat(c2)

    r0 = 3 * c0
    rp0 = _round_up(r0, 8)
    i9 = jnp.eye(9, dtype=f32)
    # G block j: (G_j @ xc)[3c + k, n] = xc[3c + j, n]
    gmat = jnp.concatenate(
        [pad_rows(jnp.kron(jnp.eye(c0, dtype=f32),
                           jnp.ones((3, 1), f32) @ i3[j:j + 1, :]), rp0)
         for j in range(3)], axis=0)                              # [3*rp0, 3*c0]
    # T block j: (T_j @ z0)[3c + k, n] = z0[3k + j, n]; columns padded to 16 rows
    tmat = jnp.pad(jnp.concatenate(
        [pad_rows(jnp.tile(i9[j::3], (c0, 1)), rp0) for j in range(3)], axis=0),
        ((0, 0), (0, 7)))                                         # [3*rp0, 16]

    w3 = jnp.pad(kron3(params['vn_lin_w']), ((0, 7), (0, 0)))     # [16, 3*c2]

    return dict(
        w1=fused_layer_w(params['vn1'], c1), bn1=bn_affine(params['vn1']),
        w2=fused_layer_w(params['vn2'], c2), bn2=bn_affine(params['vn2']),
        w3=w3,
        s1=s1.astype(bf16), s1t=s1.T.astype(bf16),
        s2=s2.astype(bf16), s2t=s2.T.astype(bf16),
        g=gmat.astype(bf16), t=tmat.astype(bf16))


def vnt_std_feature(x, params, *, batch_tile=8, vmem_fraction=0.7):
    """x: [B, C, 3, N] -> (x_std [B, C, 3, N], z0 [B, 3, 3, N])."""
    b, c0, three, n = x.shape
    assert three == 3 and c0 % 4 == 0
    cst = _prep_constants(params, c0)

    # ---- per-generation VMEM budget -> batch-tile size ----
    try:
        vmem_cap = int(pltpu.get_tpu_info().vmem_capacity_bytes)
    except Exception:
        vmem_cap = 64 * 1024 * 1024          # v7x-sized (most restrictive) default
    budget = max(16 * 1024 * 1024, int(vmem_cap * vmem_fraction))

    # Pipeline holds 2x (double-buffered) in/out slabs per element plus roughly
    # 8 live [3*C0, N] f32 intermediates per unrolled batch element.
    bytes_per_elem = 4 * n * (2 * (3 * c0 + 3 * c0 + 16) + 8 * 3 * c0)
    const_bytes = 2 * sum(4 * int(v.size) for v in cst.values()) + (1 << 20)
    tb_cap = max(1, (budget - const_bytes) // bytes_per_elem)

    # Keep >= 2 grid steps (v7x shards the "parallel" axis over both TCs and
    # the pipeline gets prologue/epilogue DMA overlap on every generation).
    min_steps = 2 if b >= 2 else 1
    tb = max(d for d in range(1, b + 1)
             if b % d == 0 and d <= batch_tile and d <= tb_cap
             and b // d >= min_steps)
    grid = (b // tb,)

    x_i = x.reshape(b, 3 * c0, n)            # free reshape: row = 3*channel + coord

    def full(a):
        return pl.BlockSpec(a.shape, lambda i: (0,) * a.ndim)

    in_specs = [
        pl.BlockSpec((tb, 3 * c0, n), lambda i: (i, 0, 0)),
        full(cst['w1']), full(cst['bn1']), full(cst['w2']), full(cst['bn2']),
        full(cst['w3']), full(cst['s1']), full(cst['s1t']),
        full(cst['s2']), full(cst['s2t']), full(cst['g']), full(cst['t']),
    ]
    out_specs = [
        pl.BlockSpec((tb, 3 * c0, n), lambda i: (i, 0, 0)),
        pl.BlockSpec((tb, 16, n), lambda i: (i, 0, 0)),      # z0 padded to 16 rows
    ]
    out_shape = [
        jax.ShapeDtypeStruct((b, 3 * c0, n), x.dtype),
        jax.ShapeDtypeStruct((b, 16, n), x.dtype),
    ]

    xstd_i, z0_i = pl.pallas_call(
        vnt_std_feature_kernel,
        grid=grid,
        in_specs=in_specs,
        out_specs=out_specs,
        out_shape=out_shape,
        compiler_params=pltpu.CompilerParams(
            dimension_semantics=("parallel",),
            vmem_limit_bytes=int(budget),
        ),
    )(x_i, cst['w1'], cst['bn1'], cst['w2'], cst['bn2'], cst['w3'],
      cst['s1'], cst['s1t'], cst['s2'], cst['s2t'], cst['g'], cst['t'])

    x_std = xstd_i.reshape(b, c0, 3, n)                           # free reshape back
    z0 = jnp.transpose(z0_i[:, :9, :].reshape(b, 3, 3, n), (0, 2, 1, 3))
    return x_std, z0


# ----------------------------- pure-JAX reference -----------------------------
def _vnt_linear_ref(w, x):
    return jnp.einsum('oc,bcjn->bojn', jax.nn.softmax(w, axis=1), x,
                      precision=jax.lax.Precision.HIGHEST)


def _vnt_leaky_ref(x, p):
    pf = _vnt_linear_ref(p['w_feat'], x)
    mv = jnp.mean(pf, axis=3, keepdims=True)
    pc = pf - mv
    norm = jnp.sqrt(jnp.sum(pc * pc, axis=2)) + EPS
    norm_bn = ((norm - p['run_mean'][None, :, None])
               / jnp.sqrt(p['run_var'][None, :, None] + BN_EPS)
               * p['gamma'][None, :, None] + p['beta'][None, :, None])
    pbn = pc / norm[:, :, None, :] * norm_bn[:, :, None, :] + mv
    d = _vnt_linear_ref(p['w_dir'], x) - _vnt_linear_ref(p['w_src'], x)
    o = _vnt_linear_ref(p['w_src'], x)
    dot = jnp.sum((pbn - o) * d, axis=2, keepdims=True)
    mask = (dot >= 0).astype(x.dtype)
    dnsq = jnp.sum(d * d, axis=2, keepdims=True)
    return (NEG_SLOPE * pbn + (1.0 - NEG_SLOPE)
            * (mask * pbn + (1.0 - mask) * (pbn - dot / (dnsq + EPS) * d)))


def vnt_std_feature_ref(x, params):
    x = x - jnp.mean(x, axis=-1, keepdims=True)
    z = _vnt_leaky_ref(x, params['vn1'])
    z = _vnt_leaky_ref(z, params['vn2'])
    z0 = _vnt_linear_ref(params['vn_lin_w'], z)               # [B, 3, 3, N]
    z0 = jnp.transpose(z0, (0, 2, 1, 3))
    x_std = jnp.einsum('bijm,bjkm->bikm', x, z0,
                       precision=jax.lax.Precision.HIGHEST)
    return x_std, z0


if __name__ == "__main__":
    key = jax.random.PRNGKey(0)
    keys = jax.random.split(key, 10)

    B, C0, N = 4, 8, 256           # x: [B, N_feat, 3, N_samples]
    x = jax.random.normal(keys[0], (B, C0, 3, N), dtype=jnp.float32)

    def leaky_params(kw, kd, ks, kbn, cin, cout):
        kg, kb, km, kv = jax.random.split(kbn, 4)
        return {
            'w_feat': jax.random.uniform(kw, (cout, cin), dtype=jnp.float32),
            'w_dir': jax.random.uniform(kd, (cout, cin), dtype=jnp.float32),
            'w_src': jax.random.uniform(ks, (1, cin), dtype=jnp.float32),
            # eval-mode BatchNorm1d state
            'gamma': 0.5 + jax.random.uniform(kg, (cout,), dtype=jnp.float32),
            'beta': 0.1 * jax.random.normal(kb, (cout,), dtype=jnp.float32),
            'run_mean': 0.1 * jax.random.normal(km, (cout,), dtype=jnp.float32),
            'run_var': 0.5 + jax.random.uniform(kv, (cout,), dtype=jnp.float32),
        }

    params = {
        'vn1': leaky_params(keys[1], keys[2], keys[3], keys[4], C0, C0 // 2),
        'vn2': leaky_params(keys[5], keys[6], keys[7], keys[8], C0 // 2, C0 // 4),
        'vn_lin_w': jax.random.uniform(keys[9], (3, C0 // 4), dtype=jnp.float32),
    }

    fwd = jax.jit(vnt_std_feature)
    x_std, z0 = fwd(x, params)
    x_std, z0 = jax.block_until_ready((x_std, z0))

    x_std_ref, z0_ref = vnt_std_feature_ref(x, params)
    assert x_std.shape == (B, C0, 3, N), x_std.shape
    assert z0.shape == (B, 3, 3, N), z0.shape
    assert jnp.allclose(z0, z0_ref, atol=1e-3, rtol=1e-3)
    assert jnp.allclose(x_std, x_std_ref, atol=1e-3, rtol=1e-3)

    print("KERNEL_OK")
</pallas_src>

<mosaic_0001>
module attributes {stable_mosaic.version = 11 : i64} {
  func.func @vnt_std_feature_kernel(%arg0: i32, %arg1: memref<2x24x256xf32, #tpu.memory_space<vmem>>, %arg2: memref<48x24xf32, #tpu.memory_space<vmem>>, %arg3: memref<4x2xf32, #tpu.memory_space<vmem>>, %arg4: memref<24x12xf32, #tpu.memory_space<vmem>>, %arg5: memref<2x2xf32, #tpu.memory_space<vmem>>, %arg6: memref<16x6xf32, #tpu.memory_space<vmem>>, %arg7: memref<4x12xbf16, #tpu.memory_space<vmem>>, %arg8: memref<12x4xbf16, #tpu.memory_space<vmem>>, %arg9: memref<2x6xbf16, #tpu.memory_space<vmem>>, %arg10: memref<6x2xbf16, #tpu.memory_space<vmem>>, %arg11: memref<72x24xbf16, #tpu.memory_space<vmem>>, %arg12: memref<72x16xbf16, #tpu.memory_space<vmem>>, %arg13: memref<2x24x256xf32, #tpu.memory_space<vmem>>, %arg14: memref<2x16x256xf32, #tpu.memory_space<vmem>>) attributes {dimension_semantics = [#tpu.dimension_semantics<parallel>], iteration_bounds = array<i64: 2>, scalar_prefetch = 0 : i64, scratch_operands = 0 : i64, tpu.core_type = #tpu.core_type<tc>, window_params = [{transform_indices = @transform_0, window_bounds = array<i64: 2, 24, 256>}, {pipeline_mode = #tpu.pipeline_mode<synchronous>, transform_indices = @transform_1, window_bounds = array<i64: 48, 24>}, {pipeline_mode = #tpu.pipeline_mode<synchronous>, transform_indices = @transform_2, window_bounds = array<i64: 4, 2>}, {pipeline_mode = #tpu.pipeline_mode<synchronous>, transform_indices = @transform_3, window_bounds = array<i64: 24, 12>}, {pipeline_mode = #tpu.pipeline_mode<synchronous>, transform_indices = @transform_4, window_bounds = array<i64: 2, 2>}, {pipeline_mode = #tpu.pipeline_mode<synchronous>, transform_indices = @transform_5, window_bounds = array<i64: 16, 6>}, {pipeline_mode = #tpu.pipeline_mode<synchronous>, transform_indices = @transform_6, window_bounds = array<i64: 4, 12>}, {pipeline_mode = #tpu.pipeline_mode<synchronous>, transform_indices = @transform_7, window_bounds = array<i64: 12, 4>}, {pipeline_mode = #tpu.pipeline_mode<synchronous>, transform_indices = @transform_8, window_bounds = array<i64: 2, 6>}, {pipeline_mode = #tpu.pipeline_mode<synchronous>, transform_indices = @transform_9, window_bounds = array<i64: 6, 2>}, {pipeline_mode = #tpu.pipeline_mode<synchronous>, transform_indices = @transform_10, window_bounds = array<i64: 72, 24>}, {pipeline_mode = #tpu.pipeline_mode<synchronous>, transform_indices = @transform_11, window_bounds = array<i64: 72, 16>}, {transform_indices = @transform_12, window_bounds = array<i64: 2, 24, 256>}, {transform_indices = @transform_13, window_bounds = array<i64: 2, 16, 256>}]} {
    %c0 = arith.constant 0 : index
    %c0_0 = arith.constant 0 : index
    %0 = vector.load %arg2[%c0, %c0_0] : memref<48x24xf32, #tpu.memory_space<vmem>>, vector<48x24xf32>
    %1 = arith.truncf %0 : vector<48x24xf32> to vector<48x24xbf16>
    %2 = arith.extf %1 : vector<48x24xbf16> to vector<48x24xf32>
    %3 = arith.subf %0, %2 : vector<48x24xf32>
    %4 = arith.truncf %3 : vector<48x24xf32> to vector<48x24xbf16>
    %c0_1 = arith.constant 0 : index
    %c0_2 = arith.constant 0 : index
    %5 = vector.load %arg4[%c0_1, %c0_2] : memref<24x12xf32, #tpu.memory_space<vmem>>, vector<24x12xf32>
    %6 = arith.truncf %5 : vector<24x12xf32> to vector<24x12xbf16>
    %7 = arith.extf %6 : vector<24x12xbf16> to vector<24x12xf32>
    %8 = arith.subf %5, %7 : vector<24x12xf32>
    %9 = arith.truncf %8 : vector<24x12xf32> to vector<24x12xbf16>
    %c0_3 = arith.constant 0 : index
    %c0_4 = arith.constant 0 : index
    %10 = vector.load %arg6[%c0_3, %c0_4] : memref<16x6xf32, #tpu.memory_space<vmem>>, vector<16x6xf32>
    %11 = arith.truncf %10 : vector<16x6xf32> to vector<16x6xbf16>
    %12 = arith.extf %11 : vector<16x6xbf16> to vector<16x6xf32>
    %13 = arith.subf %10, %12 : vector<16x6xf32>
    %14 = arith.truncf %13 : vector<16x6xf32> to vector<16x6xbf16>
    %c0_5 = arith.constant 0 : index
    %c0_6 = arith.constant 0 : index
    %15 = vector.load %arg7[%c0_5, %c0_6] : memref<4x12xbf16, #tpu.memory_space<vmem>>, vector<4x12xbf16>
    %c0_7 = arith.constant 0 : index
    %c0_8 = arith.constant 0 : index
    %16 = vector.load %arg8[%c0_7, %c0_8] : memref<12x4xbf16, #tpu.memory_space<vmem>>, vector<12x4xbf16>
    %c0_9 = arith.constant 0 : index
    %c0_10 = arith.constant 0 : index
    %17 = vector.load %arg9[%c0_9, %c0_10] : memref<2x6xbf16, #tpu.memory_space<vmem>>, vector<2x6xbf16>
    %c0_11 = arith.constant 0 : index
    %c0_12 = arith.constant 0 : index
    %18 = vector.load %arg10[%c0_11, %c0_12] : memref<6x2xbf16, #tpu.memory_space<vmem>>, vector<6x2xbf16>
    %c0_13 = arith.constant 0 : index
    %c0_14 = arith.constant 0 : index
    %19 = vector.load %arg11[%c0_13, %c0_14] : memref<72x24xbf16, #tpu.memory_space<vmem>>, vector<72x24xbf16>
    %c0_15 = arith.constant 0 : index
    %c0_16 = arith.constant 0 : index
    %20 = vector.load %arg12[%c0_15, %c0_16] : memref<72x16xbf16, #tpu.memory_space<vmem>>, vector<72x16xbf16>
    %c0_17 = arith.constant 0 : index
    %c0_18 = arith.constant 0 : index
    %21 = vector.load %arg3[%c0_17, %c0_18] : memref<4x2xf32, #tpu.memory_space<vmem>>, vector<4x2xf32>
    %c0_19 = arith.constant 0 : index
    %c0_20 = arith.constant 0 : index
    %22 = vector.load %arg5[%c0_19, %c0_20] : memref<2x2xf32, #tpu.memory_space<vmem>>, vector<2x2xf32>
    %c0_21 = arith.constant 0 : index
    %c0_22 = arith.constant 0 : index
    %c0_23 = arith.constant 0 : index
    %23 = vector.load %arg1[%c0_21, %c0_22, %c0_23] : memref<2x24x256xf32, #tpu.memory_space<vmem>>, vector<1x24x256xf32>
    %24 = vector.shape_cast %23 : vector<1x24x256xf32> to vector<24x256xf32>
    %cst = arith.constant dense<0.000000e+00> : vector<24xf32>
    %25 = vector.multi_reduction <add>, %24, %cst [1] : vector<24x256xf32> to vector<24xf32>
    %26 = vector.shape_cast %25 : vector<24xf32> to vector<24x1xf32>
    %cst_24 = arith.constant 2.560000e+02 : f32
    %27 = vector.broadcast %cst_24 : f32 to vector<24x1xf32>
    %28 = arith.divf %26, %27 : vector<24x1xf32>
    %29 = vector.broadcast %28 : vector<24x1xf32> to vector<24x256xf32>
    %30 = arith.subf %24, %29 : vector<24x256xf32>
    %31 = arith.truncf %30 : vector<24x256xf32> to vector<24x256xbf16>
    %32 = arith.extf %31 : vector<24x256xbf16> to vector<24x256xf32>
    %33 = arith.subf %30, %32 : vector<24x256xf32>
    %34 = arith.truncf %33 : vector<24x256xf32> to vector<24x256xbf16>
    %35 = vector.extract_strided_slice %21 {offsets = [0, 0], sizes = [4, 1], strides = [1, 1]} : vector<4x2xf32> to vector<4x1xf32>
    %36 = vector.extract_strided_slice %21 {offsets = [0, 1], sizes = [4, 1], strides = [1, 1]} : vector<4x2xf32> to vector<4x1xf32>
    %cst_25 = arith.constant dense<0.000000e+00> : vector<48x256xf32>
    %37 = tpu.matmul %1, %31, %cst_25 {dimension_numbers = #tpu.dot_dimension_numbers<[1], [0], [0], [1], [0, 0, 1, 1], [], []>} : vector<48x24xbf16>, vector<24x256xbf16>, vector<48x256xf32> -> vector<48x256xf32>
    %cst_26 = arith.constant dense<0.000000e+00> : vector<48x256xf32>
    %38 = tpu.matmul %1, %34, %cst_26 {dimension_numbers = #tpu.dot_dimension_numbers<[1], [0], [0], [1], [0, 0, 1, 1], [], []>} : vector<48x24xbf16>, vector<24x256xbf16>, vector<48x256xf32> -> vector<48x256xf32>
    %39 = arith.addf %37, %38 : vector<48x256xf32>
    %cst_27 = arith.constant dense<0.000000e+00> : vector<48x256xf32>
    %40 = tpu.matmul %4, %31, %cst_27 {dimension_numbers = #tpu.dot_dimension_numbers<[1], [0], [0], [1], [0, 0, 1, 1], [], []>} : vector<48x24xbf16>, vector<24x256xbf16>, vector<48x256xf32> -> vector<48x256xf32>
    %41 = arith.addf %39, %40 : vector<48x256xf32>
    %42 = vector.extract_strided_slice %41 {offsets = [0, 0], sizes = [12, 256], strides = [1, 1]} : vector<48x256xf32> to vector<12x256xf32>
    %43 = vector.extract_strided_slice %41 {offsets = [16, 0], sizes = [12, 256], strides = [1, 1]} : vector<48x256xf32> to vector<12x256xf32>
    %44 = vector.extract_strided_slice %41 {offsets = [32, 0], sizes = [12, 256], strides = [1, 1]} : vector<48x256xf32> to vector<12x256xf32>
    %45 = arith.mulf %42, %42 : vector<12x256xf32>
    %46 = arith.truncf %45 : vector<12x256xf32> to vector<12x256xbf16>
    %47 = arith.extf %46 : vector<12x256xbf16> to vector<12x256xf32>
    %48 = arith.subf %45, %47 : vector<12x256xf32>
    %49 = arith.truncf %48 : vector<12x256xf32> to vector<12x256xbf16>
    %cst_28 = arith.constant dense<0.000000e+00> : vector<4x256xf32>
    %50 = tpu.matmul %15, %46, %cst_28 {dimension_numbers = #tpu.dot_dimension_numbers<[1], [0], [0], [1], [0, 0, 1, 1], [], []>} : vector<4x12xbf16>, vector<12x256xbf16>, vector<4x256xf32> -> vector<4x256xf32>
    %cst_29 = arith.constant dense<0.000000e+00> : vector<4x256xf32>
    %51 = tpu.matmul %15, %49, %cst_29 {dimension_numbers = #tpu.dot_dimension_numbers<[1], [0], [0], [1], [0, 0, 1, 1], [], []>} : vector<4x12xbf16>, vector<12x256xbf16>, vector<4x256xf32> -> vector<4x256xf32>
    %52 = arith.addf %50, %51 : vector<4x256xf32>
    %53 = math.sqrt %52 : vector<4x256xf32>
    %cst_30 = arith.constant 9.99999997E-7 : f32
    %54 = vector.broadcast %cst_30 : f32 to vector<4x256xf32>
    %55 = arith.addf %53, %54 : vector<4x256xf32>
    %56 = tpu.reciprocal %55 {approx = true} : vector<4x256xf32> -> vector<4x256xf32>
    %57 = vector.broadcast %36 : vector<4x1xf32> to vector<4x256xf32>
    %58 = arith.mulf %57, %56 : vector<4x256xf32>
    %59 = vector.broadcast %35 : vector<4x1xf32> to vector<4x256xf32>
    %60 = arith.addf %59, %58 : vector<4x256xf32>
    %61 = arith.truncf %60 : vector<4x256xf32> to vector<4x256xbf16>
    %62 = arith.extf %61 : vector<4x256xbf16> to vector<4x256xf32>
    %63 = arith.subf %60, %62 : vector<4x256xf32>
    %64 = arith.truncf %63 : vector<4x256xf32> to vector<4x256xbf16>
    %cst_31 = arith.constant dense<0.000000e+00> : vector<12x256xf32>
    %65 = tpu.matmul %16, %61, %cst_31 {dimension_numbers = #tpu.dot_dimension_numbers<[1], [0], [0], [1], [0, 0, 1, 1], [], []>} : vector<12x4xbf16>, vector<4x256xbf16>, vector<12x256xf32> -> vector<12x256xf32>
    %cst_32 = arith.constant dense<0.000000e+00> : vector<12x256xf32>
    %66 = tpu.matmul %16, %64, %cst_32 {dimension_numbers = #tpu.dot_dimension_numbers<[1], [0], [0], [1], [0, 0, 1, 1], [], []>} : vector<12x4xbf16>, vector<4x256xbf16>, vector<12x256xf32> -> vector<12x256xf32>
    %67 = arith.addf %65, %66 : vector<12x256xf32>
    %68 = arith.mulf %42, %67 : vector<12x256xf32>
    %69 = arith.subf %43, %44 : vector<12x256xf32>
    %70 = arith.subf %68, %44 : vector<12x256xf32>
    %71 = arith.mulf %70, %69 : vector<12x256xf32>
    %72 = arith.truncf %71 : vector<12x256xf32> to vector<12x256xbf16>
    %73 = arith.extf %72 : vector<12x256xbf16> to vector<12x256xf32>
    %74 = arith.subf %71, %73 : vector<12x256xf32>
    %75 = arith.truncf %74 : vector<12x256xf32> to vector<12x256xbf16>
    %cst_33 = arith.constant dense<0.000000e+00> : vector<4x256xf32>
    %76 = tpu.matmul %15, %72, %cst_33 {dimension_numbers = #tpu.dot_dimension_numbers<[1], [0], [0], [1], [0, 0, 1, 1], [], []>} : vector<4x12xbf16>, vector<12x256xbf16>, vector<4x256xf32> -> vector<4x256xf32>
    %cst_34 = arith.constant dense<0.000000e+00> : vector<4x256xf32>
    %77 = tpu.matmul %15, %75, %cst_34 {dimension_numbers = #tpu.dot_dimension_numbers<[1], [0], [0], [1], [0, 0, 1, 1], [], []>} : vector<4x12xbf16>, vector<12x256xbf16>, vector<4x256xf32> -> vector<4x256xf32>
    %78 = arith.addf %76, %77 : vector<4x256xf32>
    %79 = arith.mulf %69, %69 : vector<12x256xf32>
    %80 = arith.truncf %79 : vector<12x256xf32> to vector<12x256xbf16>
    %81 = arith.extf %80 : vector<12x256xbf16> to vector<12x256xf32>
    %82 = arith.subf %79, %81 : vector<12x256xf32>
    %83 = arith.truncf %82 : vector<12x256xf32> to vector<12x256xbf16>
    %cst_35 = arith.constant dense<0.000000e+00> : vector<4x256xf32>
    %84 = tpu.matmul %15, %80, %cst_35 {dimension_numbers = #tpu.dot_dimension_numbers<[1], [0], [0], [1], [0, 0, 1, 1], [], []>} : vector<4x12xbf16>, vector<12x256xbf16>, vector<4x256xf32> -> vector<4x256xf32>
    %cst_36 = arith.constant dense<0.000000e+00> : vector<4x256xf32>
    %85 = tpu.matmul %15, %83, %cst_36 {dimension_numbers = #tpu.dot_dimension_numbers<[1], [0], [0], [1], [0, 0, 1, 1], [], []>} : vector<4x12xbf16>, vector<12x256xbf16>, vector<4x256xf32> -> vector<4x256xf32>
    %86 = arith.addf %84, %85 : vector<4x256xf32>
    %cst_37 = arith.constant 0.000000e+00 : f32
    %87 = vector.broadcast %cst_37 : f32 to vector<4x256xf32>
    %88 = arith.minimumf %78, %87 : vector<4x256xf32>
    %cst_38 = arith.constant 9.99999997E-7 : f32
    %89 = vector.broadcast %cst_38 : f32 to vector<4x256xf32>
    %90 = arith.addf %86, %89 : vector<4x256xf32>
    %91 = tpu.reciprocal %90 : vector<4x256xf32> -> vector<4x256xf32>
    %92 = arith.mulf %88, %91 : vector<4x256xf32>
    %93 = arith.truncf %92 : vector<4x256xf32> to vector<4x256xbf16>
    %94 = arith.extf %93 : vector<4x256xbf16> to vector<4x256xf32>
    %95 = arith.subf %92, %94 : vector<4x256xf32>
    %96 = arith.truncf %95 : vector<4x256xf32> to vector<4x256xbf16>
    %cst_39 = arith.constant dense<0.000000e+00> : vector<12x256xf32>
    %97 = tpu.matmul %16, %93, %cst_39 {dimension_numbers = #tpu.dot_dimension_numbers<[1], [0], [0], [1], [0, 0, 1, 1], [], []>} : vector<12x4xbf16>, vector<4x256xbf16>, vector<12x256xf32> -> vector<12x256xf32>
    %cst_40 = arith.constant dense<0.000000e+00> : vector<12x256xf32>
    %98 = tpu.matmul %16, %96, %cst_40 {dimension_numbers = #tpu.dot_dimension_numbers<[1], [0], [0], [1], [0, 0, 1, 1], [], []>} : vector<12x4xbf16>, vector<4x256xbf16>, vector<12x256xf32> -> vector<12x256xf32>
    %99 = arith.addf %97, %98 : vector<12x256xf32>
    %cst_41 = arith.constant 8.000000e-01 : f32
    %100 = vector.broadcast %cst_41 : f32 to vector<12x256xf32>
    %101 = arith.mulf %100, %99 : vector<12x256xf32>
    %102 = arith.mulf %101, %69 : vector<12x256xf32>
    %103 = arith.subf %68, %102 : vector<12x256xf32>
    %104 = arith.truncf %103 : vector<12x256xf32> to vector<12x256xbf16>
    %105 = arith.extf %104 : vector<12x256xbf16> to vector<12x256xf32>
    %106 = arith.subf %103, %105 : vector<12x256xf32>
    %107 = arith.truncf %106 : vector<12x256xf32> to vector<12x256xbf16>
    %108 = vector.extract_strided_slice %22 {offsets = [0, 0], sizes = [2, 1], strides = [1, 1]} : vector<2x2xf32> to vector<2x1xf32>
    %109 = vector.extract_strided_slice %22 {offsets = [0, 1], sizes = [2, 1], strides = [1, 1]} : vector<2x2xf32> to vector<2x1xf32>
    %cst_42 = arith.constant dense<0.000000e+00> : vector<24x256xf32>
    %110 = tpu.matmul %6, %104, %cst_42 {dimension_numbers = #tpu.dot_dimension_numbers<[1], [0], [0], [1], [0, 0, 1, 1], [], []>} : vector<24x12xbf16>, vector<12x256xbf16>, vector<24x256xf32> -> vector<24x256xf32>
    %cst_43 = arith.constant dense<0.000000e+00> : vector<24x256xf32>
    %111 = tpu.matmul %6, %107, %cst_43 {dimension_numbers = #tpu.dot_dimension_numbers<[1], [0], [0], [1], [0, 0, 1, 1], [], []>} : vector<24x12xbf16>, vector<12x256xbf16>, vector<24x256xf32> -> vector<24x256xf32>
    %112 = arith.addf %110, %111 : vector<24x256xf32>
    %cst_44 = arith.constant dense<0.000000e+00> : vector<24x256xf32>
    %113 = tpu.matmul %9, %104, %cst_44 {dimension_numbers = #tpu.dot_dimension_numbers<[1], [0], [0], [1], [0, 0, 1, 1], [], []>} : vector<24x12xbf16>, vector<12x256xbf16>, vector<24x256xf32> -> vector<24x256xf32>
    %114 = arith.addf %112, %113 : vector<24x256xf32>
    %115 = vector.extract_strided_slice %114 {offsets = [0, 0], sizes = [6, 256], strides = [1, 1]} : vector<24x256xf32> to vector<6x256xf32>
    %116 = vector.extract_strided_slice %114 {offsets = [8, 0], sizes = [6, 256], strides = [1, 1]} : vector<24x256xf32> to vector<6x256xf32>
    %117 = vector.extract_strided_slice %114 {offsets = [16, 0], sizes = [6, 256], strides = [1, 1]} : vector<24x256xf32> to vector<6x256xf32>
    %cst_45 = arith.constant dense<0.000000e+00> : vector<6xf32>
    %118 = vector.multi_reduction <add>, %115, %cst_45 [1] : vector<6x256xf32> to vector<6xf32>
    %119 = vector.shape_cast %118 : vector<6xf32> to vector<6x1xf32>
    %cst_46 = arith.constant 2.560000e+02 : f32
    %120 = vector.broadcast %cst_46 : f32 to vector<6x1xf32>
    %121 = arith.divf %119, %120 : vector<6x1xf32>
    %122 = vector.broadcast %121 : vector<6x1xf32> to vector<6x256xf32>
    %123 = arith.subf %115, %122 : vector<6x256xf32>
    %124 = arith.mulf %123, %123 : vector<6x256xf32>
    %125 = arith.truncf %124 : vector<6x256xf32> to vector<6x256xbf16>
    %126 = arith.extf %125 : vector<6x256xbf16> to vector<6x256xf32>
    %127 = arith.subf %124, %126 : vector<6x256xf32>
    %128 = arith.truncf %127 : vector<6x256xf32> to vector<6x256xbf16>
    %cst_47 = arith.constant dense<0.000000e+00> : vector<2x256xf32>
    %129 = tpu.matmul %17, %125, %cst_47 {dimension_numbers = #tpu.dot_dimension_numbers<[1], [0], [0], [1], [0, 0, 1, 1], [], []>} : vector<2x6xbf16>, vector<6x256xbf16>, vector<2x256xf32> -> vector<2x256xf32>
    %cst_48 = arith.constant dense<0.000000e+00> : vector<2x256xf32>
    %130 = tpu.matmul %17, %128, %cst_48 {dimension_numbers = #tpu.dot_dimension_numbers<[1], [0], [0], [1], [0, 0, 1, 1], [], []>} : vector<2x6xbf16>, vector<6x256xbf16>, vector<2x256xf32> -> vector<2x256xf32>
    %131 = arith.addf %129, %130 : vector<2x256xf32>
    %132 = math.sqrt %131 : vector<2x256xf32>
    %cst_49 = arith.constant 9.99999997E-7 : f32
    %133 = vector.broadcast %cst_49 : f32 to vector<2x256xf32>
    %134 = arith.addf %132, %133 : vector<2x256xf32>
    %135 = tpu.reciprocal %134 {approx = true} : vector<2x256xf32> -> vector<2x256xf32>
    %136 = vector.broadcast %109 : vector<2x1xf32> to vector<2x256xf32>
    %137 = arith.mulf %136, %135 : vector<2x256xf32>
    %138 = vector.broadcast %108 : vector<2x1xf32> to vector<2x256xf32>
    %139 = arith.addf %138, %137 : vector<2x256xf32>
    %140 = arith.truncf %139 : vector<2x256xf32> to vector<2x256xbf16>
    %141 = arith.extf %140 : vector<2x256xbf16> to vector<2x256xf32>
    %142 = arith.subf %139, %141 : vector<2x256xf32>
    %143 = arith.truncf %142 : vector<2x256xf32> to vector<2x256xbf16>
    %cst_50 = arith.constant dense<0.000000e+00> : vector<6x256xf32>
    %144 = tpu.matmul %18, %140, %cst_50 {dimension_numbers = #tpu.dot_dimension_numbers<[1], [0], [0], [1], [0, 0, 1, 1], [], []>} : vector<6x2xbf16>, vector<2x256xbf16>, vector<6x256xf32> -> vector<6x256xf32>
    %cst_51 = arith.constant dense<0.000000e+00> : vector<6x256xf32>
    %145 = tpu.matmul %18, %143, %cst_51 {dimension_numbers = #tpu.dot_dimension_numbers<[1], [0], [0], [1], [0, 0, 1, 1], [], []>} : vector<6x2xbf16>, vector<2x256xbf16>, vector<6x256xf32> -> vector<6x256xf32>
    %146 = arith.addf %144, %145 : vector<6x256xf32>
    %147 = arith.mulf %123, %146 : vector<6x256xf32>
    %148 = vector.broadcast %121 : vector<6x1xf32> to vector<6x256xf32>
    %149 = arith.addf %147, %148 : vector<6x256xf32>
    %150 = arith.subf %116, %117 : vector<6x256xf32>
    %151 = arith.subf %149, %117 : vector<6x256xf32>
    %152 = arith.mulf %151, %150 : vector<6x256xf32>
    %153 = arith.truncf %152 : vector<6x256xf32> to vector<6x256xbf16>
    %154 = arith.extf %153 : vector<6x256xbf16> to vector<6x256xf32>
    %155 = arith.subf %152, %154 : vector<6x256xf32>
    %156 = arith.truncf %155 : vector<6x256xf32> to vector<6x256xbf16>
    %cst_52 = arith.constant dense<0.000000e+00> : vector<2x256xf32>
    %157 = tpu.matmul %17, %153, %cst_52 {dimension_numbers = #tpu.dot_dimension_numbers<[1], [0], [0], [1], [0, 0, 1, 1], [], []>} : vector<2x6xbf16>, vector<6x256xbf16>, vector<2x256xf32> -> vector<2x256xf32>
    %cst_53 = arith.constant dense<0.000000e+00> : vector<2x256xf32>
    %158 = tpu.matmul %17, %156, %cst_53 {dimension_numbers = #tpu.dot_dimension_numbers<[1], [0], [0], [1], [0, 0, 1, 1], [], []>} : vector<2x6xbf16>, vector<6x256xbf16>, vector<2x256xf32> -> vector<2x256xf32>
    %159 = arith.addf %157, %158 : vector<2x256xf32>
    %160 = arith.mulf %150, %150 : vector<6x256xf32>
    %161 = arith.truncf %160 : vector<6x256xf32> to vector<6x256xbf16>
    %162 = arith.extf %161 : vector<6x256xbf16> to vector<6x256xf32>
    %163 = arith.subf %160, %162 : vector<6x256xf32>
    %164 = arith.truncf %163 : vector<6x256xf32> to vector<6x256xbf16>
    %cst_54 = arith.constant dense<0.000000e+00> : vector<2x256xf32>
    %165 = tpu.matmul %17, %161, %cst_54 {dimension_numbers = #tpu.dot_dimension_numbers<[1], [0], [0], [1], [0, 0, 1, 1], [], []>} : vector<2x6xbf16>, vector<6x256xbf16>, vector<2x256xf32> -> vector<2x256xf32>
    %cst_55 = arith.constant dense<0.000000e+00> : vector<2x256xf32>
    %166 = tpu.matmul %17, %164, %cst_55 {dimension_numbers = #tpu.dot_dimension_numbers<[1], [0], [0], [1], [0, 0, 1, 1], [], []>} : vector<2x6xbf16>, vector<6x256xbf16>, vector<2x256xf32> -> vector<2x256xf32>
    %167 = arith.addf %165, %166 : vector<2x256xf32>
    %cst_56 = arith.constant 0.000000e+00 : f32
    %168 = vector.broadcast %cst_56 : f32 to vector<2x256xf32>
    %169 = arith.minimumf %159, %168 : vector<2x256xf32>
    %cst_57 = arith.constant 9.99999997E-7 : f32
    %170 = vector.broadcast %cst_57 : f32 to vector<2x256xf32>
    %171 = arith.addf %167, %170 : vector<2x256xf32>
    %172 = tpu.reciprocal %171 : vector<2x256xf32> -> vector<2x256xf32>
    %173 = arith.mulf %169, %172 : vector<2x256xf32>
    %174 = arith.truncf %173 : vector<2x256xf32> to vector<2x256xbf16>
    %175 = arith.extf %174 : vector<2x256xbf16> to vector<2x256xf32>
    %176 = arith.subf %173, %175 : vector<2x256xf32>
    %177 = arith.truncf %176 : vector<2x256xf32> to vector<2x256xbf16>
    %cst_58 = arith.constant dense<0.000000e+00> : vector<6x256xf32>
    %178 = tpu.matmul %18, %174, %cst_58 {dimension_numbers = #tpu.dot_dimension_numbers<[1], [0], [0], [1], [0, 0, 1, 1], [], []>} : vector<6x2xbf16>, vector<2x256xbf16>, vector<6x256xf32> -> vector<6x256xf32>
    %cst_59 = arith.constant dense<0.000000e+00> : vector<6x256xf32>
    %179 = tpu.matmul %18, %177, %cst_59 {dimension_numbers = #tpu.dot_dimension_numbers<[1], [0], [0], [1], [0, 0, 1, 1], [], []>} : vector<6x2xbf16>, vector<2x256xbf16>, vector<6x256xf32> -> vector<6x256xf32>
    %180 = arith.addf %178, %179 : vector<6x256xf32>
    %cst_60 = arith.constant 8.000000e-01 : f32
    %181 = vector.broadcast %cst_60 : f32 to vector<6x256xf32>
    %182 = arith.mulf %181, %180 : vector<6x256xf32>
    %183 = arith.mulf %182, %150 : vector<6x256xf32>
    %184 = arith.subf %149, %183 : vector<6x256xf32>
    %185 = arith.truncf %184 : vector<6x256xf32> to vector<6x256xbf16>
    %186 = arith.extf %185 : vector<6x256xbf16> to vector<6x256xf32>
    %187 = arith.subf %184, %186 : vector<6x256xf32>
    %188 = arith.truncf %187 : vector<6x256xf32> to vector<6x256xbf16>
    %cst_61 = arith.constant dense<0.000000e+00> : vector<16x256xf32>
    %189 = tpu.matmul %11, %185, %cst_61 {dimension_numbers = #tpu.dot_dimension_numbers<[1], [0], [0], [1], [0, 0, 1, 1], [], []>} : vector<16x6xbf16>, vector<6x256xbf16>, vector<16x256xf32> -> vector<16x256xf32>
    %cst_62 = arith.constant dense<0.000000e+00> : vector<16x256xf32>
    %190 = tpu.matmul %11, %188, %cst_62 {dimension_numbers = #tpu.dot_dimension_numbers<[1], [0], [0], [1], [0, 0, 1, 1], [], []>} : vector<16x6xbf16>, vector<6x256xbf16>, vector<16x256xf32> -> vector<16x256xf32>
    %191 = arith.addf %189, %190 : vector<16x256xf32>
    %cst_63 = arith.constant dense<0.000000e+00> : vector<16x256xf32>
    %192 = tpu.matmul %14, %185, %cst_63 {dimension_numbers = #tpu.dot_dimension_numbers<[1], [0], [0], [1], [0, 0, 1, 1], [], []>} : vector<16x6xbf16>, vector<6x256xbf16>, vector<16x256xf32> -> vector<16x256xf32>
    %193 = arith.addf %191, %192 : vector<16x256xf32>
    %c0_64 = arith.constant 0 : index
    %c0_65 = arith.constant 0 : index
    %c0_66 = arith.constant 0 : index
    %194 = vector.load %arg14[%c0_64, %c0_65, %c0_66] : memref<2x16x256xf32, #tpu.memory_space<vmem>>, vector<1x16x256xf32>
    %195 = vector.shape_cast %194 : vector<1x16x256xf32> to vector<16x256xf32>
    %196 = vector.shape_cast %193 : vector<16x256xf32> to vector<1x16x256xf32>
    tpu.vector_store %arg14[%c0_64, %c0_65, %c0_66], %196 {strides = array<i32>} : memref<2x16x256xf32, #tpu.memory_space<vmem>>, vector<1x16x256xf32>,
    %cst_67 = arith.constant dense<0.000000e+00> : vector<72x256xf32>
    %197 = tpu.matmul %19, %31, %cst_67 {dimension_numbers = #tpu.dot_dimension_numbers<[1], [0], [0], [1], [0, 0, 1, 1], [], []>} : vector<72x24xbf16>, vector<24x256xbf16>, vector<72x256xf32> -> vector<72x256xf32>
    %cst_68 = arith.constant dense<0.000000e+00> : vector<72x256xf32>
    %198 = tpu.matmul %19, %34, %cst_68 {dimension_numbers = #tpu.dot_dimension_numbers<[1], [0], [0], [1], [0, 0, 1, 1], [], []>} : vector<72x24xbf16>, vector<24x256xbf16>, vector<72x256xf32> -> vector<72x256xf32>
    %199 = arith.addf %197, %198 : vector<72x256xf32>
    %200 = arith.truncf %193 : vector<16x256xf32> to vector<16x256xbf16>
    %201 = arith.extf %200 : vector<16x256xbf16> to vector<16x256xf32>
    %202 = arith.subf %193, %201 : vector<16x256xf32>
    %203 = arith.truncf %202 : vector<16x256xf32> to vector<16x256xbf16>
    %cst_69 = arith.constant dense<0.000000e+00> : vector<72x256xf32>
    %204 = tpu.matmul %20, %200, %cst_69 {dimension_numbers = #tpu.dot_dimension_numbers<[1], [0], [0], [1], [0, 0, 1, 1], [], []>} : vector<72x16xbf16>, vector<16x256xbf16>, vector<72x256xf32> -> vector<72x256xf32>
    %cst_70 = arith.constant dense<0.000000e+00> : vector<72x256xf32>
    %205 = tpu.matmul %20, %203, %cst_70 {dimension_numbers = #tpu.dot_dimension_numbers<[1], [0], [0], [1], [0, 0, 1, 1], [], []>} : vector<72x16xbf16>, vector<16x256xbf16>, vector<72x256xf32> -> vector<72x256xf32>
    %206 = arith.addf %204, %205 : vector<72x256xf32>
    %207 = vector.extract_strided_slice %199 {offsets = [0, 0], sizes = [24, 256], strides = [1, 1]} : vector<72x256xf32> to vector<24x256xf32>
    %208 = vector.extract_strided_slice %206 {offsets = [0, 0], sizes = [24, 256], strides = [1, 1]} : vector<72x256xf32> to vector<24x256xf32>
    %209 = arith.mulf %207, %208 : vector<24x256xf32>
    %210 = vector.extract_strided_slice %199 {offsets = [24, 0], sizes = [24, 256], strides = [1, 1]} : vector<72x256xf32> to vector<24x256xf32>
    %211 = vector.extract_strided_slice %206 {offsets = [24, 0], sizes = [24, 256], strides = [1, 1]} : vector<72x256xf32> to vector<24x256xf32>
    %212 = arith.mulf %210, %211 : vector<24x256xf32>
    %213 = arith.addf %209, %212 : vector<24x256xf32>
    %214 = vector.extract_strided_slice %199 {offsets = [48, 0], sizes = [24, 256], strides = [1, 1]} : vector<72x256xf32> to vector<24x256xf32>
    %215 = vector.extract_strided_slice %206 {offsets = [48, 0], sizes = [24, 256], strides = [1, 1]} : vector<72x256xf32> to vector<24x256xf32>
    %216 = arith.mulf %214, %215 : vector<24x256xf32>
    %217 = arith.addf %213, %216 : vector<24x256xf32>
    %c0_71 = arith.constant 0 : index
    %c0_72 = arith.constant 0 : index
    %c0_73 = arith.constant 0 : index
    %218 = vector.load %arg13[%c0_71, %c0_72, %c0_73] : memref<2x24x256xf32, #tpu.memory_space<vmem>>, vector<1x24x256xf32>
    %219 = vector.shape_cast %218 : vector<1x24x256xf32> to vector<24x256xf32>
    %220 = vector.shape_cast %217 : vector<24x256xf32> to vector<1x24x256xf32>
    tpu.vector_store %arg13[%c0_71, %c0_72, %c0_73], %220 {strides = array<i32>} : memref<2x24x256xf32, #tpu.memory_space<vmem>>, vector<1x24x256xf32>,
    %c1 = arith.constant 1 : index
    %c0_74 = arith.constant 0 : index
    %c0_75 = arith.constant 0 : index
    %221 = vector.load %arg1[%c1, %c0_74, %c0_75] : memref<2x24x256xf32, #tpu.memory_space<vmem>>, vector<1x24x256xf32>
    %222 = vector.shape_cast %221 : vector<1x24x256xf32> to vector<24x256xf32>
    %cst_76 = arith.constant dense<0.000000e+00> : vector<24xf32>
    %223 = vector.multi_reduction <add>, %222, %cst_76 [1] : vector<24x256xf32> to vector<24xf32>
    %224 = vector.shape_cast %223 : vector<24xf32> to vector<24x1xf32>
    %cst_77 = arith.constant 2.560000e+02 : f32
    %225 = vector.broadcast %cst_77 : f32 to vector<24x1xf32>
    %226 = arith.divf %224, %225 : vector<24x1xf32>
    %227 = vector.broadcast %226 : vector<24x1xf32> to vector<24x256xf32>
    %228 = arith.subf %222, %227 : vector<24x256xf32>
    %229 = arith.truncf %228 : vector<24x256xf32> to vector<24x256xbf16>
    %230 = arith.extf %229 : vector<24x256xbf16> to vector<24x256xf32>
    %231 = arith.subf %228, %230 : vector<24x256xf32>
    %232 = arith.truncf %231 : vector<24x256xf32> to vector<24x256xbf16>
    %233 = vector.extract_strided_slice %21 {offsets = [0, 0], sizes = [4, 1], strides = [1, 1]} : vector<4x2xf32> to vector<4x1xf32>
    %234 = vector.extract_strided_slice %21 {offsets = [0, 1], sizes = [4, 1], strides = [1, 1]} : vector<4x2xf32> to vector<4x1xf32>
    %cst_78 = arith.constant dense<0.000000e+00> : vector<48x256xf32>
    %235 = tpu.matmul %1, %229, %cst_78 {dimension_numbers = #tpu.dot_dimension_numbers<[1], [0], [0], [1], [0, 0, 1, 1], [], []>} : vector<48x24xbf16>, vector<24x256xbf16>, vector<48x256xf32> -> vector<48x256xf32>
    %cst_79 = arith.constant dense<0.000000e+00> : vector<48x256xf32>
    %236 = tpu.matmul %1, %232, %cst_79 {dimension_numbers = #tpu.dot_dimension_numbers<[1], [0], [0], [1], [0, 0, 1, 1], [], []>} : vector<48x24xbf16>, vector<24x256xbf16>, vector<48x256xf32> -> vector<48x256xf32>
    %237 = arith.addf %235, %236 : vector<48x256xf32>
    %cst_80 = arith.constant dense<0.000000e+00> : vector<48x256xf32>
    %238 = tpu.matmul %4, %229, %cst_80 {dimension_numbers = #tpu.dot_dimension_numbers<[1], [0], [0], [1], [0, 0, 1, 1], [], []>} : vector<48x24xbf16>, vector<24x256xbf16>, vector<48x256xf32> -> vector<48x256xf32>
    %239 = arith.addf %237, %238 : vector<48x256xf32>
    %240 = vector.extract_strided_slice %239 {offsets = [0, 0], sizes = [12, 256], strides = [1, 1]} : vector<48x256xf32> to vector<12x256xf32>
    %241 = vector.extract_strided_slice %239 {offsets = [16, 0], sizes = [12, 256], strides = [1, 1]} : vector<48x256xf32> to vector<12x256xf32>
    %242 = vector.extract_strided_slice %239 {offsets = [32, 0], sizes = [12, 256], strides = [1, 1]} : vector<48x256xf32> to vector<12x256xf32>
    %243 = arith.mulf %240, %240 : vector<12x256xf32>
    %244 = arith.truncf %243 : vector<12x256xf32> to vector<12x256xbf16>
    %245 = arith.extf %244 : vector<12x256xbf16> to vector<12x256xf32>
    %246 = arith.subf %243, %245 : vector<12x256xf32>
    %247 = arith.truncf %246 : vector<12x256xf32> to vector<12x256xbf16>
    %cst_81 = arith.constant dense<0.000000e+00> : vector<4x256xf32>
    %248 = tpu.matmul %15, %244, %cst_81 {dimension_numbers = #tpu.dot_dimension_numbers<[1], [0], [0], [1], [0, 0, 1, 1], [], []>} : vector<4x12xbf16>, vector<12x256xbf16>, vector<4x256xf32> -> vector<4x256xf32>
    %cst_82 = arith.constant dense<0.000000e+00> : vector<4x256xf32>
    %249 = tpu.matmul %15, %247, %cst_82 {dimension_numbers = #tpu.dot_dimension_numbers<[1], [0], [0], [1], [0, 0, 1, 1], [], []>} : vector<4x12xbf16>, vector<12x256xbf16>, vector<4x256xf32> -> vector<4x256xf32>
    %250 = arith.addf %248, %249 : vector<4x256xf32>
    %251 = math.sqrt %250 : vector<4x256xf32>
    %cst_83 = arith.constant 9.99999997E-7 : f32
    %252 = vector.broadcast %cst_83 : f32 to vector<4x256xf32>
    %253 = arith.addf %251, %252 : vector<4x256xf32>
    %254 = tpu.reciprocal %253 {approx = true} : vector<4x256xf32> -> vector<4x256xf32>
    %255 = vector.broadcast %234 : vector<4x1xf32> to vector<4x256xf32>
    %256 = arith.mulf %255, %254 : vector<4x256xf32>
    %257 = vector.broadcast %233 : vector<4x1xf32> to vector<4x256xf32>
    %258 = arith.addf %257, %256 : vector<4x256xf32>
    %259 = arith.truncf %258 : vector<4x256xf32> to vector<4x256xbf16>
    %260 = arith.extf %259 : vector<4x256xbf16> to vector<4x256xf32>
    %261 = arith.subf %258, %260 : vector<4x256xf32>
    %262 = arith.truncf %261 : vector<4x256xf32> to vector<4x256xbf16>
    %cst_84 = arith.constant dense<0.000000e+00> : vector<12x256xf32>
    %263 = tpu.matmul %16, %259, %cst_84 {dimension_numbers = #tpu.dot_dimension_numbers<[1], [0], [0], [1], [0, 0, 1, 1], [], []>} : vector<12x4xbf16>, vector<4x256xbf16>, vector<12x256xf32> -> vector<12x256xf32>
    %cst_85 = arith.constant dense<0.000000e+00> : vector<12x256xf32>
    %264 = tpu.matmul %16, %262, %cst_85 {dimension_numbers = #tpu.dot_dimension_numbers<[1], [0], [0], [1], [0, 0, 1, 1], [], []>} : vector<12x4xbf16>, vector<4x256xbf16>, vector<12x256xf32> -> vector<12x256xf32>
    %265 = arith.addf %263, %264 : vector<12x256xf32>
    %266 = arith.mulf %240, %265 : vector<12x256xf32>
    %267 = arith.subf %241, %242 : vector<12x256xf32>
    %268 = arith.subf %266, %242 : vector<12x256xf32>
    %269 = arith.mulf %268, %267 : vector<12x256xf32>
    %270 = arith.truncf %269 : vector<12x256xf32> to vector<12x256xbf16>
    %271 = arith.extf %270 : vector<12x256xbf16> to vector<12x256xf32>
    %272 = arith.subf %269, %271 : vector<12x256xf32>
    %273 = arith.truncf %272 : vector<12x256xf32> to vector<12x256xbf16>
    %cst_86 = arith.constant dense<0.000000e+00> : vector<4x256xf32>
    %274 = tpu.matmul %15, %270, %cst_86 {dimension_numbers = #tpu.dot_dimension_numbers<[1], [0], [0], [1], [0, 0, 1, 1], [], []>} : vector<4x12xbf16>, vector<12x256xbf16>, vector<4x256xf32> -> vector<4x256xf32>
    %cst_87 = arith.constant dense<0.000000e+00> : vector<4x256xf32>
    %275 = tpu.matmul %15, %273, %cst_87 {dimension_numbers = #tpu.dot_dimension_numbers<[1], [0], [0], [1], [0, 0, 1, 1], [], []>} : vector<4x12xbf16>, vector<12x256xbf16>, vector<4x256xf32> -> vector<4x256xf32>
    %276 = arith.addf %274, %275 : vector<4x256xf32>
    %277 = arith.mulf %267, %267 : vector<12x256xf32>
    %278 = arith.truncf %277 : vector<12x256xf32> to vector<12x256xbf16>
    %279 = arith.extf %278 : vector<12x256xbf16> to vector<12x256xf32>
    %280 = arith.subf %277, %279 : vector<12x256xf32>
    %281 = arith.truncf %280 : vector<12x256xf32> to vector<12x256xbf16>
    %cst_88 = arith.constant dense<0.000000e+00> : vector<4x256xf32>
    %282 = tpu.matmul %15, %278, %cst_88 {dimension_numbers = #tpu.dot_dimension_numbers<[1], [0], [0], [1], [0, 0, 1, 1], [], []>} : vector<4x12xbf16>, vector<12x256xbf16>, vector<4x256xf32> -> vector<4x256xf32>
    %cst_89 = arith.constant dense<0.000000e+00> : vector<4x256xf32>
    %283 = tpu.matmul %15, %281, %cst_89 {dimension_numbers = #tpu.dot_dimension_numbers<[1], [0], [0], [1], [0, 0, 1, 1], [], []>} : vector<4x12xbf16>, vector<12x256xbf16>, vector<4x256xf32> -> vector<4x256xf32>
    %284 = arith.addf %282, %283 : vector<4x256xf32>
    %cst_90 = arith.constant 0.000000e+00 : f32
    %285 = vector.broadcast %cst_90 : f32 to vector<4x256xf32>
    %286 = arith.minimumf %276, %285 : vector<4x256xf32>
    %cst_91 = arith.constant 9.99999997E-7 : f32
    %287 = vector.broadcast %cst_91 : f32 to vector<4x256xf32>
    %288 = arith.addf %284, %287 : vector<4x256xf32>
    %289 = tpu.reciprocal %288 : vector<4x256xf32> -> vector<4x256xf32>
    %290 = arith.mulf %286, %289 : vector<4x256xf32>
    %291 = arith.truncf %290 : vector<4x256xf32> to vector<4x256xbf16>
    %292 = arith.extf %291 : vector<4x256xbf16> to vector<4x256xf32>
    %293 = arith.subf %290, %292 : vector<4x256xf32>
    %294 = arith.truncf %293 : vector<4x256xf32> to vector<4x256xbf16>
    %cst_92 = arith.constant dense<0.000000e+00> : vector<12x256xf32>
    %295 = tpu.matmul %16, %291, %cst_92 {dimension_numbers = #tpu.dot_dimension_numbers<[1], [0], [0], [1], [0, 0, 1, 1], [], []>} : vector<12x4xbf16>, vector<4x256xbf16>, vector<12x256xf32> -> vector<12x256xf32>
    %cst_93 = arith.constant dense<0.000000e+00> : vector<12x256xf32>
    %296 = tpu.matmul %16, %294, %cst_93 {dimension_numbers = #tpu.dot_dimension_numbers<[1], [0], [0], [1], [0, 0, 1, 1], [], []>} : vector<12x4xbf16>, vector<4x256xbf16>, vector<12x256xf32> -> vector<12x256xf32>
    %297 = arith.addf %295, %296 : vector<12x256xf32>
    %cst_94 = arith.constant 8.000000e-01 : f32
    %298 = vector.broadcast %cst_94 : f32 to vector<12x256xf32>
    %299 = arith.mulf %298, %297 : vector<12x256xf32>
    %300 = arith.mulf %299, %267 : vector<12x256xf32>
    %301 = arith.subf %266, %300 : vector<12x256xf32>
    %302 = arith.truncf %301 : vector<12x256xf32> to vector<12x256xbf16>
    %303 = arith.extf %302 : vector<12x256xbf16> to vector<12x256xf32>
    %304 = arith.subf %301, %303 : vector<12x256xf32>
    %305 = arith.truncf %304 : vector<12x256xf32> to vector<12x256xbf16>
    %306 = vector.extract_strided_slice %22 {offsets = [0, 0], sizes = [2, 1], strides = [1, 1]} : vector<2x2xf32> to vector<2x1xf32>
    %307 = vector.extract_strided_slice %22 {offsets = [0, 1], sizes = [2, 1], strides = [1, 1]} : vector<2x2xf32> to vector<2x1xf32>
    %cst_95 = arith.constant dense<0.000000e+00> : vector<24x256xf32>
    %308 = tpu.matmul %6, %302, %cst_95 {dimension_numbers = #tpu.dot_dimension_numbers<[1], [0], [0], [1], [0, 0, 1, 1], [], []>} : vector<24x12xbf16>, vector<12x256xbf16>, vector<24x256xf32> -> vector<24x256xf32>
    %cst_96 = arith.constant dense<0.000000e+00> : vector<24x256xf32>
    %309 = tpu.matmul %6, %305, %cst_96 {dimension_numbers = #tpu.dot_dimension_numbers<[1], [0], [0], [1], [0, 0, 1, 1], [], []>} : vector<24x12xbf16>, vector<12x256xbf16>, vector<24x256xf32> -> vector<24x256xf32>
    %310 = arith.addf %308, %309 : vector<24x256xf32>
    %cst_97 = arith.constant dense<0.000000e+00> : vector<24x256xf32>
    %311 = tpu.matmul %9, %302, %cst_97 {dimension_numbers = #tpu.dot_dimension_numbers<[1], [0], [0], [1], [0, 0, 1, 1], [], []>} : vector<24x12xbf16>, vector<12x256xbf16>, vector<24x256xf32> -> vector<24x256xf32>
    %312 = arith.addf %310, %311 : vector<24x256xf32>
    %313 = vector.extract_strided_slice %312 {offsets = [0, 0], sizes = [6, 256], strides = [1, 1]} : vector<24x256xf32> to vector<6x256xf32>
    %314 = vector.extract_strided_slice %312 {offsets = [8, 0], sizes = [6, 256], strides = [1, 1]} : vector<24x256xf32> to vector<6x256xf32>
    %315 = vector.extract_strided_slice %312 {offsets = [16, 0], sizes = [6, 256], strides = [1, 1]} : vector<24x256xf32> to vector<6x256xf32>
    %cst_98 = arith.constant dense<0.000000e+00> : vector<6xf32>
    %316 = vector.multi_reduction <add>, %313, %cst_98 [1] : vector<6x256xf32> to vector<6xf32>
    %317 = vector.shape_cast %316 : vector<6xf32> to vector<6x1xf32>
    %cst_99 = arith.constant 2.560000e+02 : f32
    %318 = vector.broadcast %cst_99 : f32 to vector<6x1xf32>
    %319 = arith.divf %317, %318 : vector<6x1xf32>
    %320 = vector.broadcast %319 : vector<6x1xf32> to vector<6x256xf32>
    %321 = arith.subf %313, %320 : vector<6x256xf32>
    %322 = arith.mulf %321, %321 : vector<6x256xf32>
    %323 = arith.truncf %322 : vector<6x256xf32> to vector<6x256xbf16>
    %324 = arith.extf %323 : vector<6x256xbf16> to vector<6x256xf32>
    %325 = arith.subf %322, %324 : vector<6x256xf32>
    %326 = arith.truncf %325 : vector<6x256xf32> to vector<6x256xbf16>
    %cst_100 = arith.constant dense<0.000000e+00> : vector<2x256xf32>
    %327 = tpu.matmul %17, %323, %cst_100 {dimension_numbers = #tpu.dot_dimension_numbers<[1], [0], [0], [1], [0, 0, 1, 1], [], []>} : vector<2x6xbf16>, vector<6x256xbf16>, vector<2x256xf32> -> vector<2x256xf32>
    %cst_101 = arith.constant dense<0.000000e+00> : vector<2x256xf32>
    %328 = tpu.matmul %17, %326, %cst_101 {dimension_numbers = #tpu.dot_dimension_numbers<[1], [0], [0], [1], [0, 0, 1, 1], [], []>} : vector<2x6xbf16>, vector<6x256xbf16>, vector<2x256xf32> -> vector<2x256xf32>
    %329 = arith.addf %327, %328 : vector<2x256xf32>
    %330 = math.sqrt %329 : vector<2x256xf32>
    %cst_102 = arith.constant 9.99999997E-7 : f32
    %331 = vector.broadcast %cst_102 : f32 to vector<2x256xf32>
    %332 = arith.addf %330, %331 : vector<2x256xf32>
    %333 = tpu.reciprocal %332 {approx = true} : vector<2x256xf32> -> vector<2x256xf32>
    %334 = vector.broadcast %307 : vector<2x1xf32> to vector<2x256xf32>
    %335 = arith.mulf %334, %333 : vector<2x256xf32>
    %336 = vector.broadcast %306 : vector<2x1xf32> to vector<2x256xf32>
    %337 = arith.addf %336, %335 : vector<2x256xf32>
    %338 = arith.truncf %337 : vector<2x256xf32> to vector<2x256xbf16>
    %339 = arith.extf %338 : vector<2x256xbf16> to vector<2x256xf32>
    %340 = arith.subf %337, %339 : vector<2x256xf32>
    %341 = arith.truncf %340 : vector<2x256xf32> to vector<2x256xbf16>
    %cst_103 = arith.constant dense<0.000000e+00> : vector<6x256xf32>
    %342 = tpu.matmul %18, %338, %cst_103 {dimension_numbers = #tpu.dot_dimension_numbers<[1], [0], [0], [1], [0, 0, 1, 1], [], []>} : vector<6x2xbf16>, vector<2x256xbf16>, vector<6x256xf32> -> vector<6x256xf32>
    %cst_104 = arith.constant dense<0.000000e+00> : vector<6x256xf32>
    %343 = tpu.matmul %18, %341, %cst_104 {dimension_numbers = #tpu.dot_dimension_numbers<[1], [0], [0], [1], [0, 0, 1, 1], [], []>} : vector<6x2xbf16>, vector<2x256xbf16>, vector<6x256xf32> -> vector<6x256xf32>
    %344 = arith.addf %342, %343 : vector<6x256xf32>
    %345 = arith.mulf %321, %344 : vector<6x256xf32>
    %346 = vector.broadcast %319 : vector<6x1xf32> to vector<6x256xf32>
    %347 = arith.addf %345, %346 : vector<6x256xf32>
    %348 = arith.subf %314, %315 : vector<6x256xf32>
    %349 = arith.subf %347, %315 : vector<6x256xf32>
    %350 = arith.mulf %349, %348 : vector<6x256xf32>
    %351 = arith.truncf %350 : vector<6x256xf32> to vector<6x256xbf16>
    %352 = arith.extf %351 : vector<6x256xbf16> to vector<6x256xf32>
    %353 = arith.subf %350, %352 : vector<6x256xf32>
    %354 = arith.truncf %353 : vector<6x256xf32> to vector<6x256xbf16>
    %cst_105 = arith.constant dense<0.000000e+00> : vector<2x256xf32>
    %355 = tpu.matmul %17, %351, %cst_105 {dimension_numbers = #tpu.dot_dimension_numbers<[1], [0], [0], [1], [0, 0, 1, 1], [], []>} : vector<2x6xbf16>, vector<6x256xbf16>, vector<2x256xf32> -> vector<2x256xf32>
    %cst_106 = arith.constant dense<0.000000e+00> : vector<2x256xf32>
    %356 = tpu.matmul %17, %354, %cst_106 {dimension_numbers = #tpu.dot_dimension_numbers<[1], [0], [0], [1], [0, 0, 1, 1], [], []>} : vector<2x6xbf16>, vector<6x256xbf16>, vector<2x256xf32> -> vector<2x256xf32>
    %357 = arith.addf %355, %356 : vector<2x256xf32>
    %358 = arith.mulf %348, %348 : vector<6x256xf32>
    %359 = arith.truncf %358 : vector<6x256xf32> to vector<6x256xbf16>
    %360 = arith.extf %359 : vector<6x256xbf16> to vector<6x256xf32>
    %361 = arith.subf %358, %360 : vector<6x256xf32>
    %362 = arith.truncf %361 : vector<6x256xf32> to vector<6x256xbf16>
    %cst_107 = arith.constant dense<0.000000e+00> : vector<2x256xf32>
    %363 = tpu.matmul %17, %359, %cst_107 {dimension_numbers = #tpu.dot_dimension_numbers<[1], [0], [0], [1], [0, 0, 1, 1], [], []>} : vector<2x6xbf16>, vector<6x256xbf16>, vector<2x256xf32> -> vector<2x256xf32>
    %cst_108 = arith.constant dense<0.000000e+00> : vector<2x256xf32>
    %364 = tpu.matmul %17, %362, %cst_108 {dimension_numbers = #tpu.dot_dimension_numbers<[1], [0], [0], [1], [0, 0, 1, 1], [], []>} : vector<2x6xbf16>, vector<6x256xbf16>, vector<2x256xf32> -> vector<2x256xf32>
    %365 = arith.addf %363, %364 : vector<2x256xf32>
    %cst_109 = arith.constant 0.000000e+00 : f32
    %366 = vector.broadcast %cst_109 : f32 to vector<2x256xf32>
    %367 = arith.minimumf %357, %366 : vector<2x256xf32>
    %cst_110 = arith.constant 9.99999997E-7 : f32
    %368 = vector.broadcast %cst_110 : f32 to vector<2x256xf32>
    %369 = arith.addf %365, %368 : vector<2x256xf32>
    %370 = tpu.reciprocal %369 : vector<2x256xf32> -> vector<2x256xf32>
    %371 = arith.mulf %367, %370 : vector<2x256xf32>
    %372 = arith.truncf %371 : vector<2x256xf32> to vector<2x256xbf16>
    %373 = arith.extf %372 : vector<2x256xbf16> to vector<2x256xf32>
    %374 = arith.subf %371, %373 : vector<2x256xf32>
    %375 = arith.truncf %374 : vector<2x256xf32> to vector<2x256xbf16>
    %cst_111 = arith.constant dense<0.000000e+00> : vector<6x256xf32>
    %376 = tpu.matmul %18, %372, %cst_111 {dimension_numbers = #tpu.dot_dimension_numbers<[1], [0], [0], [1], [0, 0, 1, 1], [], []>} : vector<6x2xbf16>, vector<2x256xbf16>, vector<6x256xf32> -> vector<6x256xf32>
    %cst_112 = arith.constant dense<0.000000e+00> : vector<6x256xf32>
    %377 = tpu.matmul %18, %375, %cst_112 {dimension_numbers = #tpu.dot_dimension_numbers<[1], [0], [0], [1], [0, 0, 1, 1], [], []>} : vector<6x2xbf16>, vector<2x256xbf16>, vector<6x256xf32> -> vector<6x256xf32>
    %378 = arith.addf %376, %377 : vector<6x256xf32>
    %cst_113 = arith.constant 8.000000e-01 : f32
    %379 = vector.broadcast %cst_113 : f32 to vector<6x256xf32>
    %380 = arith.mulf %379, %378 : vector<6x256xf32>
    %381 = arith.mulf %380, %348 : vector<6x256xf32>
    %382 = arith.subf %347, %381 : vector<6x256xf32>
    %383 = arith.truncf %382 : vector<6x256xf32> to vector<6x256xbf16>
    %384 = arith.extf %383 : vector<6x256xbf16> to vector<6x256xf32>
    %385 = arith.subf %382, %384 : vector<6x256xf32>
    %386 = arith.truncf %385 : vector<6x256xf32> to vector<6x256xbf16>
    %cst_114 = arith.constant dense<0.000000e+00> : vector<16x256xf32>
    %387 = tpu.matmul %11, %383, %cst_114 {dimension_numbers = #tpu.dot_dimension_numbers<[1], [0], [0], [1], [0, 0, 1, 1], [], []>} : vector<16x6xbf16>, vector<6x256xbf16>, vector<16x256xf32> -> vector<16x256xf32>
    %cst_115 = arith.constant dense<0.000000e+00> : vector<16x256xf32>
    %388 = tpu.matmul %11, %386, %cst_115 {dimension_numbers = #tpu.dot_dimension_numbers<[1], [0], [0], [1], [0, 0, 1, 1], [], []>} : vector<16x6xbf16>, vector<6x256xbf16>, vector<16x256xf32> -> vector<16x256xf32>
    %389 = arith.addf %387, %388 : vector<16x256xf32>
    %cst_116 = arith.constant dense<0.000000e+00> : vector<16x256xf32>
    %390 = tpu.matmul %14, %383, %cst_116 {dimension_numbers = #tpu.dot_dimension_numbers<[1], [0], [0], [1], [0, 0, 1, 1], [], []>} : vector<16x6xbf16>, vector<6x256xbf16>, vector<16x256xf32> -> vector<16x256xf32>
    %391 = arith.addf %389, %390 : vector<16x256xf32>
    %c1_117 = arith.constant 1 : index
    %c0_118 = arith.constant 0 : index
    %c0_119 = arith.constant 0 : index
    %392 = vector.load %arg14[%c1_117, %c0_118, %c0_119] : memref<2x16x256xf32, #tpu.memory_space<vmem>>, vector<1x16x256xf32>
    %393 = vector.shape_cast %392 : vector<1x16x256xf32> to vector<16x256xf32>
    %394 = vector.shape_cast %391 : vector<16x256xf32> to vector<1x16x256xf32>
    tpu.vector_store %arg14[%c1_117, %c0_118, %c0_119], %394 {strides = array<i32>} : memref<2x16x256xf32, #tpu.memory_space<vmem>>, vector<1x16x256xf32>,
    %cst_120 = arith.constant dense<0.000000e+00> : vector<72x256xf32>
    %395 = tpu.matmul %19, %229, %cst_120 {dimension_numbers = #tpu.dot_dimension_numbers<[1], [0], [0], [1], [0, 0, 1, 1], [], []>} : vector<72x24xbf16>, vector<24x256xbf16>, vector<72x256xf32> -> vector<72x256xf32>
    %cst_121 = arith.constant dense<0.000000e+00> : vector<72x256xf32>
    %396 = tpu.matmul %19, %232, %cst_121 {dimension_numbers = #tpu.dot_dimension_numbers<[1], [0], [0], [1], [0, 0, 1, 1], [], []>} : vector<72x24xbf16>, vector<24x256xbf16>, vector<72x256xf32> -> vector<72x256xf32>
    %397 = arith.addf %395, %396 : vector<72x256xf32>
    %398 = arith.truncf %391 : vector<16x256xf32> to vector<16x256xbf16>
    %399 = arith.extf %398 : vector<16x256xbf16> to vector<16x256xf32>
    %400 = arith.subf %391, %399 : vector<16x256xf32>
    %401 = arith.truncf %400 : vector<16x256xf32> to vector<16x256xbf16>
    %cst_122 = arith.constant dense<0.000000e+00> : vector<72x256xf32>
    %402 = tpu.matmul %20, %398, %cst_122 {dimension_numbers = #tpu.dot_dimension_numbers<[1], [0], [0], [1], [0, 0, 1, 1], [], []>} : vector<72x16xbf16>, vector<16x256xbf16>, vector<72x256xf32> -> vector<72x256xf32>
    %cst_123 = arith.constant dense<0.000000e+00> : vector<72x256xf32>
    %403 = tpu.matmul %20, %401, %cst_123 {dimension_numbers = #tpu.dot_dimension_numbers<[1], [0], [0], [1], [0, 0, 1, 1], [], []>} : vector<72x16xbf16>, vector<16x256xbf16>, vector<72x256xf32> -> vector<72x256xf32>
    %404 = arith.addf %402, %403 : vector<72x256xf32>
    %405 = vector.extract_strided_slice %397 {offsets = [0, 0], sizes = [24, 256], strides = [1, 1]} : vector<72x256xf32> to vector<24x256xf32>
    %406 = vector.extract_strided_slice %404 {offsets = [0, 0], sizes = [24, 256], strides = [1, 1]} : vector<72x256xf32> to vector<24x256xf32>
    %407 = arith.mulf %405, %406 : vector<24x256xf32>
    %408 = vector.extract_strided_slice %397 {offsets = [24, 0], sizes = [24, 256], strides = [1, 1]} : vector<72x256xf32> to vector<24x256xf32>
    %409 = vector.extract_strided_slice %404 {offsets = [24, 0], sizes = [24, 256], strides = [1, 1]} : vector<72x256xf32> to vector<24x256xf32>
    %410 = arith.mulf %408, %409 : vector<24x256xf32>
    %411 = arith.addf %407, %410 : vector<24x256xf32>
    %412 = vector.extract_strided_slice %397 {offsets = [48, 0], sizes = [24, 256], strides = [1, 1]} : vector<72x256xf32> to vector<24x256xf32>
    %413 = vector.extract_strided_slice %404 {offsets = [48, 0], sizes = [24, 256], strides = [1, 1]} : vector<72x256xf32> to vector<24x256xf32>
    %414 = arith.mulf %412, %413 : vector<24x256xf32>
    %415 = arith.addf %411, %414 : vector<24x256xf32>
    %c1_124 = arith.constant 1 : index
    %c0_125 = arith.constant 0 : index
    %c0_126 = arith.constant 0 : index
    %416 = vector.load %arg13[%c1_124, %c0_125, %c0_126] : memref<2x24x256xf32, #tpu.memory_space<vmem>>, vector<1x24x256xf32>
    %417 = vector.shape_cast %416 : vector<1x24x256xf32> to vector<24x256xf32>
    %418 = vector.shape_cast %415 : vector<24x256xf32> to vector<1x24x256xf32>
    tpu.vector_store %arg13[%c1_124, %c0_125, %c0_126], %418 {strides = array<i32>} : memref<2x24x256xf32, #tpu.memory_space<vmem>>, vector<1x24x256xf32>,
    return
  }
  func.func @transform_0(%arg0: i32) -> (i32, i32, i32) {
    %c0_i32 = arith.constant 0 : i32
    %c0_i32_0 = arith.constant 0 : i32
    %c0_i32_1 = arith.constant 0 : i32
    return %arg0, %c0_i32, %c0_i32_0 : i32, i32, i32
  }
  func.func @transform_1(%arg0: i32) -> (i32, i32) {
    %c0_i32 = arith.constant 0 : i32
    %c0_i32_0 = arith.constant 0 : i32
    %c0_i32_1 = arith.constant 0 : i32
    return %c0_i32, %c0_i32_0 : i32, i32
  }
  func.func @transform_2(%arg0: i32) -> (i32, i32) {
    %c0_i32 = arith.constant 0 : i32
    %c0_i32_0 = arith.constant 0 : i32
    %c0_i32_1 = arith.constant 0 : i32
    return %c0_i32, %c0_i32_0 : i32, i32
  }
  func.func @transform_3(%arg0: i32) -> (i32, i32) {
    %c0_i32 = arith.constant 0 : i32
    %c0_i32_0 = arith.constant 0 : i32
    %c0_i32_1 = arith.constant 0 : i32
    return %c0_i32, %c0_i32_0 : i32, i32
  }
  func.func @transform_4(%arg0: i32) -> (i32, i32) {
    %c0_i32 = arith.constant 0 : i32
    %c0_i32_0 = arith.constant 0 : i32
    %c0_i32_1 = arith.constant 0 : i32
    return %c0_i32, %c0_i32_0 : i32, i32
  }
  func.func @transform_5(%arg0: i32) -> (i32, i32) {
    %c0_i32 = arith.constant 0 : i32
    %c0_i32_0 = arith.constant 0 : i32
    %c0_i32_1 = arith.constant 0 : i32
    return %c0_i32, %c0_i32_0 : i32, i32
  }
  func.func @transform_6(%arg0: i32) -> (i32, i32) {
    %c0_i32 = arith.constant 0 : i32
    %c0_i32_0 = arith.constant 0 : i32
    %c0_i32_1 = arith.constant 0 : i32
    return %c0_i32, %c0_i32_0 : i32, i32
  }
  func.func @transform_7(%arg0: i32) -> (i32, i32) {
    %c0_i32 = arith.constant 0 : i32
    %c0_i32_0 = arith.constant 0 : i32
    %c0_i32_1 = arith.constant 0 : i32
    return %c0_i32, %c0_i32_0 : i32, i32
  }
  func.func @transform_8(%arg0: i32) -> (i32, i32) {
    %c0_i32 = arith.constant 0 : i32
    %c0_i32_0 = arith.constant 0 : i32
    %c0_i32_1 = arith.constant 0 : i32
    return %c0_i32, %c0_i32_0 : i32, i32
  }
  func.func @transform_9(%arg0: i32) -> (i32, i32) {
    %c0_i32 = arith.constant 0 : i32
    %c0_i32_0 = arith.constant 0 : i32
    %c0_i32_1 = arith.constant 0 : i32
    return %c0_i32, %c0_i32_0 : i32, i32
  }
  func.func @transform_10(%arg0: i32) -> (i32, i32) {
    %c0_i32 = arith.constant 0 : i32
    %c0_i32_0 = arith.constant 0 : i32
    %c0_i32_1 = arith.constant 0 : i32
    return %c0_i32, %c0_i32_0 : i32, i32
  }
  func.func @transform_11(%arg0: i32) -> (i32, i32) {
    %c0_i32 = arith.constant 0 : i32
    %c0_i32_0 = arith.constant 0 : i32
    %c0_i32_1 = arith.constant 0 : i32
    return %c0_i32, %c0_i32_0 : i32, i32
  }
  func.func @transform_12(%arg0: i32) -> (i32, i32, i32) {
    %c0_i32 = arith.constant 0 : i32
    %c0_i32_0 = arith.constant 0 : i32
    %c0_i32_1 = arith.constant 0 : i32
    return %arg0, %c0_i32, %c0_i32_0 : i32, i32, i32
  }
  func.func @transform_13(%arg0: i32) -> (i32, i32, i32) {
    %c0_i32 = arith.constant 0 : i32
    %c0_i32_0 = arith.constant 0 : i32
    %c0_i32_1 = arith.constant 0 : i32
    return %arg0, %c0_i32, %c0_i32_0 : i32, i32, i32
  }
}

</mosaic_0001>

<bundles_post_ra>
// kernel: tile.49
= control target key start
LH: loop header
LB: loop body
LE: loop exit
PB: predicated region body
PF: predicated region fallthrough
CT: control target
= control target key end

     0   :  { %vm11_vm0 = vcmask 97280   ;;  %s42_s0 = inlined_call_operand.vmem [shape: f32[2,3,12], index: 0, kind: input, shape index: {}]   ;;  %s43_s1 = inlined_call_operand.vmem [shape: f32[6,12], index: 1, kind: output, shape index: {}]  }
   0x1   :  { %v18_v0 = vld [vmem:[%s42_s0 + $0x4] sm:$0xf]  ;;  %v8_v1 = vld [vmem:[%s42_s0] sm:$0xf] }
   0x2   :  { %7 = vst [vmem:[#allocation0 + $0x8] sm:$0xf] %v18_v0  ;;  %9 = vst [vmem:[#allocation0] sm:$0xf] %v8_v1 }
   0x9   :  { %v10_v2 = vld [vmem:[#allocation0] sm:$0x7]   ;;  %v14_v3 = vld [vmem:[#allocation0 + $0x8] sm:$0x7]  }
   0xa   :  { %12 = vst.msk [vmem:[%s43_s1] sm:$0x7] %vm11_vm0, %v10_v2   ;;  %19 = vst.msk [vmem:[%s43_s1 + $0x3] sm:$0x7] %vm11_vm0, %v14_v3  }

// kernel: tile.2
= control target key start
LH: loop header
LB: loop body
LE: loop exit
PB: predicated region body
PF: predicated region fallthrough
CT: control target
= control target key end

     0   :  { %vm130_vm0 = vcmask 72704   ;;  %v210_v18 = vmov 0.0   ;;  %s241_s0 = inlined_call_operand.vmem [shape: bf16[8,3,9], index: 0, kind: input, shape index: {}]   ;;  %s242_s1 = inlined_call_operand.vmem [shape: bf16[24,9], index: 1, kind: output, shape index: {}]  }
   0x1   :  { %v195_v0 = vld [vmem:[%s241_s0 + $0x8] sm:$0xff]   ;;  %v199_v1 = vld [vmem:[%s241_s0] sm:$0xff]  }
   0x2   :  { %v17_v2 = vunpack.c.h.bf16 %v195_v0  ;;  %v49_v3 = vunpack.c.l.bf16 %v195_v0  ;;  %v81_v4 = vunpack.c.h.bf16 %v199_v1  ;;  %v112_v5 = vunpack.c.l.bf16 %v199_v1 }
   0x4   :  { %20 = vst [vmem:[#allocation1 + $0x30] ss:$8 sps:$4 sm:$0xff] %v17_v2   ;;  %52 = vst [vmem:[#allocation1 + $0x20] ss:$8 sps:$4 sm:$0xff] %v49_v3  }
   0x5   :  { %84 = vst [vmem:[#allocation1 + $0x10] ss:$8 sps:$4 sm:$0xff] %v81_v4   ;;  %115 = vst [vmem:[#allocation1] ss:$8 sps:$4 sm:$0xff] %v112_v5  }
   0xb   :  { %v148_v6 = vld [vmem:[#allocation1 + $0x20] sm:$0x7]   ;;  %v153_v7 = vld [vmem:[#allocation1 + $0x28] sm:$0x7]   ;;  %v158_v8 = vld [vmem:[#allocation1 + $0x30] sm:$0x7]  }
   0xc   :  { %v129_v9 = vld [vmem:[#allocation1] sm:$0x7]   ;;  %v133_v10 = vld [vmem:[#allocation1 + $0x8] sm:$0x7]   ;;  %v138_v11 = vld [vmem:[#allocation1 + $0x10] sm:$0x7]  }
   0xd   :  { %151 = vst.msk [vmem:[#allocation0 + $0xc] sm:$0x7] %vm130_vm0, %v148_v6   ;;  %156 = vst.msk [vmem:[#allocation0 + $0xf] sm:$0x7] %vm130_vm0, %v153_v7   ;;  %v143_v12 = vld [vmem:[#allocation1 + $0x18] sm:$0x7]  }
   0xe   :  { %161 = vst.msk [vmem:[#allocation0 + $0x12] sm:$0x7] %vm130_vm0, %v158_v8   ;;  %131 = vst.msk [vmem:[#allocation0] sm:$0x7] %vm130_vm0, %v129_v9   ;;  %v163_v13 = vld [vmem:[#allocation1 + $0x38] sm:$0x7]  }
   0xf   :  { %136 = vst.msk [vmem:[#allocation0 + $0x3] sm:$0x7] %vm130_vm0, %v133_v10   ;;  %141 = vst.msk [vmem:[#allocation0 + $0x6] sm:$0x7] %vm130_vm0, %v138_v11  }
  0x10   :  { %146 = vst.msk [vmem:[#allocation0 + $0x9] sm:$0x7] %vm130_vm0, %v143_v12   ;;  %166 = vst.msk [vmem:[#allocation0 + $0x15] sm:$0x7] %vm130_vm0, %v163_v13  }
  0x16   :  { %v171_v14 = vld [vmem:[#allocation0] sm:$0xff] }
  0x17   :  { %v176_v15 = vld [vmem:[#allocation0 + $0x8] sm:$0xff]  ;;  %v182_v16 = vld [vmem:[#allocation0 + $0x10] sm:$0xff] }
  0x18   :  { %v207_v17 = vpack.c.bf16 %v176_v15, %v171_v14  ;;  %v183_v19 = vpack.c.bf16 %v210_v18, %v182_v16 }
  0x1a   :  { %208 = vst [vmem:[%s242_s1] sm:$0xff] %v207_v17   ;;  %203 = vst [vmem:[%s242_s1 + $0x8] sm:$0xf] %v183_v19 }

// kernel: tile.44
= control target key start
LH: loop header
LB: loop body
LE: loop exit
PB: predicated region body
PF: predicated region fallthrough
CT: control target
= control target key end

     0   :  { %vm21_vm0 = vcmask 195584   ;;  %s80_s0 = inlined_call_operand.vmem [shape: f32[4,3,24], index: 0, kind: input, shape index: {}]   ;;  %s81_s1 = inlined_call_operand.vmem [shape: f32[12,24], index: 1, kind: output, shape index: {}]  }
   0x1   :  { %v40_v0 = vld [vmem:[%s80_s0 + $0xc] sm:$0xf]  ;;  %v41_v1 = vld [vmem:[%s80_s0 + $0x8] sm:$0xf]  ;;  %v42_v2 = vld [vmem:[%s80_s0 + $0x4] sm:$0xf] }
   0x2   :  { %8 = vst [vmem:[#allocation0 + $0x18] sm:$0xf] %v40_v0  ;;  %13 = vst [vmem:[#allocation0 + $0x10] sm:$0xf] %v41_v1  ;;  %v18_v3 = vld [vmem:[%s80_s0] sm:$0xf] }
   0x3   :  { %17 = vst [vmem:[#allocation0 + $0x8] sm:$0xf] %v42_v2  ;;  %19 = vst [vmem:[#allocation0] sm:$0xf] %v18_v3 }
   0x9   :  { %v29_v5 = vld [vmem:[#allocation0 + $0x10] sm:$0x7]   ;;  %v34_v6 = vld [vmem:[#allocation0 + $0x18] sm:$0x7]  }
   0xa   :  { %v24_v4 = vld [vmem:[#allocation0 + $0x8] sm:$0x7]   ;;  %v20_v7 = vld [vmem:[#allocation0] sm:$0x7]   ;;  %44 = vst.msk [vmem:[%s81_s1 + $0x6] sm:$0x7] %vm21_vm0, %v29_v5  }
   0xb   :  { %43 = vst.msk [vmem:[%s81_s1 + $0x3] sm:$0x7] %vm21_vm0, %v24_v4   ;;  %45 = vst.msk [vmem:[%s81_s1 + $0x9] sm:$0x7] %vm21_vm0, %v34_v6  }
   0xc   :  { %22 = vst.msk [vmem:[%s81_s1] sm:$0x7] %vm21_vm0, %v20_v7  }

// kernel: vnt_std_feature.1
= control target key start
LH: loop header
LB: loop body
LE: loop exit
PB: predicated region body
PF: predicated region fallthrough
CT: control target
= control target key end

     0   :  { %s5685_s25 = smov 0   ;;  %s6835_s0 = inlined_call_operand.vmem [shape: f32[4,24,256], index: 0, kind: input, shape index: {}]   ;;  %s6836_s1 = inlined_call_operand.vmem [shape: f32[48,24], index: 1, kind: input, shape index: {}]   ;;  %s6837_s2 = inlined_call_operand.vmem [shape: f32[4,2], index: 2, kind: input, shape index: {}]   ;;  %s6838_s3 = inlined_call_operand.vmem [shape: f32[24,12], index: 3, kind: input, shape index: {}]   ;;  %s6839_s4 = inlined_call_operand.vmem [shape: f32[2,2], index: 4, kind: input, shape index: {}]   ;;  %s6840_s5 = inlined_call_operand.vmem [shape: f32[16,6], index: 5, kind: input, shape index: {}]   ;;  %s6841_s6 = inlined_call_operand.vmem [shape: bf16[4,12], index: 6, kind: input, shape index: {}]   ;;  %s6842_s7 = inlined_call_operand.vmem [shape: bf16[12,4], index: 7, kind: input, shape index: {}]   ;;  %s6843_s8 = inlined_call_operand.vmem [shape: bf16[2,6], index: 8, kind: input, shape index: {}]   ;;  %s6844_s9 = inlined_call_operand.vmem [shape: bf16[6,2], index: 9, kind: input, shape index: {}]   ;;  %s6845_s10 = inlined_call_operand.vmem [shape: bf16[72,24], index: 10, kind: input, shape index: {}]   ;;  %s6846_s11 = inlined_call_operand.vmem [shape: bf16[72,16], index: 11, kind: input, shape index: {}]   ;;  %s6847_s12 = inlined_call_operand.vmem [shape: f32[4,24,256], index: 12, kind: output, shape index: {0}]   ;;  %s6848_s13 = inlined_call_operand.vmem [shape: f32[4,16,256], index: 13, kind: output, shape index: {1}]  }
   0x1 LB: > { %s5058_s26 = sadd.s32 4294967295, %s5611_s25   ;;  %p5062_p0 = scmp.ge.s32.totalorder %s5611_s25, 1  ;;  %s5611_s25 = sphi %s5685_s25, %s24_s25  }
   0x2   : > { %p392_p1 = scmp.lt.s32.totalorder %s5611_s25, 3 }
   0x4   : > { %p393_p2 = pnand %p5062_p0, %p392_p1 }
   0x6   : > { %396 = sbr.rel (%p393_p2) target bundleno = 6219 (0x184b), region = 68 }
   0xd   : > { %s5063_s27 = sshll.u32 %s5058_s26, 1  ;;  %v6849_v9 = vmov 0   ;;  %vm591_vm0 = vcmask 1043456   ;;  %v466_v42 = vld [vmem:[%s6836_s1] sm:$0xff]  ;;  %v467_v43 = vld [vmem:[%s6836_s1 + $0x8] sm:$0xff]  ;;  %vm581_vm1 = vcmask 195584  }
   0xe   : > { %p445_p3 = scmp.lt.s32.totalorder %s5063_s27, 3  ;;  %630 = vmatprep.mubr.bf16.mxu0 %v6849_v9  ;;  %920 = vmatprep.mubr.bf16.mxu1 %v6849_v9  ;;  %v5742_v45 = vpack.c.bf16 %v467_v43, %v466_v42  ;;  %v468_v46 = vld [vmem:[%s6836_s1 + $0x10] sm:$0xff]  ;;  %v469_v47 = vld [vmem:[%s6836_s1 + $0x18] sm:$0xff]  ;;  %v470_v50 = vld [vmem:[%s6836_s1 + $0x20] sm:$0xff]  ;;  %vm834_vm2 = vcmask 1045504   ;;  %vm830_vm3 = vcmask 97280  }
   0xf   : > { %5528 = vset.pattern.permute.xlu0 %v6849_v9  ;;  %v5761_v49 = vpack.c.bf16 %v469_v47, %v468_v46  ;;  %v471_v51 = vld [vmem:[%s6836_s1 + $0x28] sm:$0xff]  ;;  %vm977_vm8 = vcmask 1041408   ;;  %vm973_vm9 = vcmask 31744   ;;  %vm1651_vm10 = vcmask 1042432  }
  0x10   : > { %s6872_s27 = smov (!%p445_p3, %s5063_s27), 3  ;;  %v5774_v52 = vpack.c.bf16 %v471_v51, %v470_v50  ;;  %v475_v53 = vunpack.c.l.bf16 %v5742_v45  ;;  %v476_v54 = vunpack.c.h.bf16 %v5742_v45  ;;  %vm1647_vm11 = vcmask 48128  }
  0x11   : > { %s5516_s28 = smul.u32 48, %s6872_s27  ;;  %v477_v58 = vunpack.c.l.bf16 %v5761_v49  ;;  %v478_v59 = vunpack.c.h.bf16 %v5761_v49 }
  0x12   : > { %v481_v55 = vsub.f32 %v466_v42, %v475_v53  ;;  %v482_v56 = vsub.f32 %v467_v43, %v476_v54  ;;  %v479_v63 = vunpack.c.l.bf16 %v5774_v52 }
  0x13   : > { %s5701_s14 = scalar_lea.vmem %s6835_s0, %s5516_s28  ;;  %v483_v60 = vsub.f32 %v468_v46, %v477_v58  ;;  %v484_v61 = vsub.f32 %v469_v47, %v478_v59  ;;  %s6459_s23 = scalar_lea.vmem %s6847_s12, %s5516_s28 }
  0x14   : > { %v536_v0 = vld [vmem:[%s5701_s14] sm:$0xff]  ;;  %v537_v1 = vld [vmem:[%s5701_s14 + $0x8] sm:$0xff]  ;;  %v538_v5 = vld [vmem:[%s5701_s14 + $0x10] sm:$0xff]  ;;  %v5794_v57 = vpack.c.bf16 %v482_v56, %v481_v55 }
  0x15   : > { %v540_v2 = vld [vmem:[%s5701_s14 + $0x20] sm:$0xff]  ;;  %v542_v3 = vadd.f32 %v537_v1, %v536_v0  ;;  %v541_v4 = vld [vmem:[%s5701_s14 + $0x28] sm:$0xff]  ;;  %v539_v6 = vld [vmem:[%s5701_s14 + $0x18] sm:$0xff]  ;;  %v5801_v62 = vpack.c.bf16 %v484_v61, %v483_v60 }
  0x16   : > { %v548_v7 = vadd.f32 %v541_v4, %v540_v2  ;;  %v545_v8 = vadd.f32 %v539_v6, %v538_v5 }
  0x17   : > { %543 = vadd.xlane.f32.xlu0 %v542_v3 }
  0x18   : > { %549 = vadd.xlane.f32.xlu1 %v548_v7 }
  0x1b   : > { %546 = vadd.xlane.f32.xlu0 %v545_v8 }
  0xa4   : > { %v544_v10 = vpop.xlane.xlu0 %543 }
  0xa5   : > { %v550_v11 = vpop.xlane.xlu1 %549  ;;  %v552_v13 = vmul.f32 0.00390625, %v544_v10 }
  0xa6   : > { %v554_v12 = vmul.f32 0.00390625, %v550_v11 }
  0xa7   : > { %v555_v20 = vsub.f32 %v536_v0, %v552_v13  ;;  %v556_v21 = vsub.f32 %v537_v1, %v552_v13  ;;  %v480_v0 = vunpack.c.h.bf16 %v5774_v52  ;;  %v485_v1 = vsub.f32 %v470_v50, %v479_v63 }
  0xa8   : > { %v559_v14 = vsub.f32 %v540_v2, %v554_v12  ;;  %v560_v15 = vsub.f32 %v541_v4, %v554_v12  ;;  %v547_v16 = vpop.xlane.xlu0 %546  ;;  %v534_v4 = vld [vmem:[%s6837_s2] sm:$0xf] }
  0xa9   : > { %v553_v17 = vmul.f32 0.00390625, %v547_v16  ;;  %v486_v2 = vsub.f32 %v471_v51, %v480_v0  ;;  %955 = vperm.xlu0 %5528, %v534_v4  }
  0xaa   : > { %v563_v18 = vpack.c.bf16 %v559_v14, %v559_v14  ;;  %v5712_v19 = vpack.c.bf16 %v560_v15, %v560_v15 }
  0xab   : > { %v557_v22 = vsub.f32 %v538_v5, %v553_v17  ;;  %v558_v23 = vsub.f32 %v539_v6, %v553_v17  ;;  %v5808_v3 = vpack.c.bf16 %v486_v2, %v485_v1  ;;  %v5614_v5 = vmov 1  }
  0xac   : > { %v570_v24 = vunpack.c.l.bf16 %v5712_v19  ;;  %v569_v25 = vunpack.c.l.bf16 %v563_v18  ;;  %v5759_v48 = vsel %vm591_vm0, %v563_v18, 0  ;;  %5527 = vset.pattern.permute.xlu1 %v5614_v5 }
  0xad   : > { %v5715_v26 = vpack.c.bf16 %v557_v22, %v555_v20  ;;  %v5717_v27 = vpack.c.bf16 %v558_v23, %v556_v21  ;;  %949 = vperm.xlu1 %5527, %v534_v4   ;;  %5529 = vset.pattern.permute.xlu0 %v5614_v5 }
  0xae   : > { %v576_v32 = vsub.f32 %v560_v15, %v570_v24  ;;  %v575_v33 = vsub.f32 %v559_v14, %v569_v25 }
  0xaf   : > { %v566_v28 = vunpack.c.l.bf16 %v5717_v27  ;;  %v568_v29 = vunpack.c.h.bf16 %v5717_v27  ;;  %v565_v30 = vunpack.c.l.bf16 %v5715_v26  ;;  %v567_v31 = vunpack.c.h.bf16 %v5715_v26 }
  0xb0   : > { %v5727_v40 = vpack.c.bf16 %v576_v32, %v576_v32  ;;  %v579_v41 = vpack.c.bf16 %v575_v33, %v575_v33 }
  0xb1   : > { %v572_v34 = vsub.f32 %v556_v21, %v566_v28  ;;  %v574_v35 = vsub.f32 %v558_v23, %v568_v29  ;;  %v571_v36 = vsub.f32 %v555_v20, %v565_v30  ;;  %v573_v37 = vsub.f32 %v557_v22, %v567_v31  ;;  %5530 = vset.pattern.permute.xlu1 %v6849_v9  ;;  %v5838_v29 = vld [vmem:[%s6841_s6] sm:$0x3] }
  0xb2   : > { %v5740_v44 = vsel %vm591_vm0, %v579_v41, 0 }
  0xb3   : > { %v5723_v38 = vpack.c.bf16 %v574_v35, %v572_v34  ;;  %v5725_v39 = vpack.c.bf16 %v573_v37, %v571_v36 }
  0xb5   : > { %598 = vmatprep.subr.bf16.mxu0 %v5723_v38 }
  0xb6   : > { %599 = vmatpush1.bf16.msra.mxu0 %v5725_v39 }
  0xb7   : > { %5070 = vmatprep.subr.msk.bf16.mxu0 %vm591_vm0, %v5727_v40 }
  0xba   : > { %601 = vmatpush1.bf16.msra.mxu0 %v5740_v44 }
  0xbb   : > { %667 = vmatprep.subr.bf16.mxu0 %v5717_v27 }
  0xbd   : > { %5071 = vmatmul.mubr.msk.bf16.vlgmr.msra.gmra.mrb[0].mxu0 %vm581_vm1, %v5742_v45 }
  0xbe   : > { %668 = vmatpush1.bf16.msra.mxu0 %v5715_v26  ;;  %640 = vmatprep.mubr.bf16.mxu0 %v6849_v9 }
  0xbf   : > { %5074 = vmatprep.subr.msk.bf16.mxu0 %vm591_vm0, %v5712_v19 }
  0xc2   : > { %670 = vmatpush1.bf16.msra.mxu0 %v5759_v48 }
  0xc3   : > { %739 = vmatprep.subr.bf16.mxu0 %v5717_v27 }
  0xc5   : > { %5072 = vmatmul.mubr.msk.bf16.gmra.mrb[4].mxu0 %vm581_vm1, %v5761_v49 }
  0xc6   : > { %650 = vmatprep.mubr.bf16.mxu0 %v6849_v9 }
  0xcd   : > { %5073 = vmatmul.mubr.msk.bf16.gmra.mrb[8].mxu0 %vm581_vm1, %v5774_v52 }
  0xce   : > { %699 = vmatprep.mubr.bf16.mxu0 %v6849_v9 }
  0xd5   : > { %5075 = vmatmul.mubr.msk.bf16.vlgmr.msra.gmra.mrb[0].mxu0 %vm581_vm1, %v5742_v45 }
  0xd6   : > { %740 = vmatpush1.bf16.msra.mxu0 %v5715_v26  ;;  %709 = vmatprep.mubr.bf16.mxu0 %v6849_v9 }
  0xd7   : > { %5078 = vmatprep.subr.msk.bf16.mxu0 %vm591_vm0, %v5712_v19 }
  0xda   : > { %742 = vmatpush1.bf16.msra.mxu0 %v5759_v48 }
  0xdd   : > { %5076 = vmatmul.mubr.msk.bf16.gmra.mrb[4].mxu0 %vm581_vm1, %v5761_v49 }
  0xde   : > { %719 = vmatprep.mubr.bf16.mxu0 %v6849_v9 }
  0xe5   : > { %5077 = vmatmul.mubr.msk.bf16.gmra.mrb[8].mxu0 %vm581_vm1, %v5774_v52 }
  0xe6   : > { %771 = vmatprep.mubr.bf16.mxu0 %v6849_v9 }
  0xed   : > { %5079 = vmatmul.mubr.msk.bf16.vlgmr.msra.gmra.mrb[0].mxu0 %vm581_vm1, %v5794_v57 }
  0xee   : > { %781 = vmatprep.mubr.bf16.mxu0 %v6849_v9 }
  0xf5   : > { %5080 = vmatmul.mubr.msk.bf16.gmra.mrb[4].mxu0 %vm581_vm1, %v5801_v62 }
  0xf6   : > { %791 = vmatprep.mubr.bf16.mxu0 %v6849_v9 }
  0xfd   : > { %5081 = vmatmul.mubr.msk.bf16.gmra.mrb[8].mxu0 %vm581_vm1, %v5808_v3 }
  0xfe   : > { %873 = vmatprep.mubr.bf16.mxu0 %v6849_v9 }
 0x1c0   : > { %v5817_v6 = vpop.f32.mrb[0].mxu0 }
 0x1c1   : > { %v5819_v7 = vpop.f32.mrb[1].mxu0  ;;  %v814_v10 = vmul.f32 %v5817_v6, %v5817_v6 }
 0x1c2   : > { %v5821_v8 = vpop.f32.mrb[2].mxu0  ;;  %v815_v13 = vmul.f32 %v5819_v7, %v5819_v7 }
 0x1c3   : > { %v816_v11 = vmul.f32 %v5821_v8, %v5821_v8  ;;  %v5827_v12 = vpop.f32.mrb[3].mxu0 }
 0x1c4   : > { %v817_v14 = vmul.f32 %v5827_v12, %v5827_v12 }
 0x1c5   : > { %v818_v15 = vpack.c.bf16 %v816_v11, %v814_v10 }
 0x1c6   : > { %v819_v16 = vpack.c.bf16 %v817_v14, %v815_v13 }
 0x1c7   : > { %v820_v17 = vunpack.c.l.bf16 %v818_v15  ;;  %v822_v18 = vunpack.c.h.bf16 %v818_v15  ;;  %v883_v20 = vsel %vm834_vm2, %v818_v15, 0 }
 0x1c8   : > { %v821_v21 = vunpack.c.l.bf16 %v819_v16  ;;  %v823_v22 = vunpack.c.h.bf16 %v819_v16  ;;  %v783_v23 = vpop.f32.mrb[4].mxu0  ;;  %5084 = vmatprep.subr.msk.bf16.mxu1 %vm834_vm2, %v819_v16 }
 0x1c9   : > { %v826_v24 = vsub.f32 %v816_v11, %v822_v18  ;;  %v785_v25 = vpop.f32.mrb[5].mxu0  ;;  %889 = vmatpush1.bf16.msra.mxu1 %v883_v20  ;;  %v824_v28 = vsub.f32 %v814_v10, %v820_v17  ;;  %v5868_v20 = vpop.permute.xlu1 %949 }
 0x1ca   : > { %v825_v30 = vsub.f32 %v815_v13, %v821_v21  ;;  %v827_v31 = vsub.f32 %v817_v14, %v823_v22  ;;  %v787_v32 = vpop.f32.mrb[6].mxu0  ;;  %v5870_v22 = vpop.permute.xlu0 %955 }
 0x1cb   : > { %v789_v33 = vpop.f32.mrb[7].mxu0  ;;  %v828_v34 = vpack.c.bf16 %v826_v24, %v824_v28 }
 0x1cc   : > { %v829_v35 = vpack.c.bf16 %v827_v31, %v825_v30  ;;  %5085 = vmatmul.mubr.msk.bf16.vlgmr.msra.gmra.mrb[0].mxu1 %vm830_vm3, %v5838_v29 }
 0x1cd   : > { %v836_v36 = vsel %vm834_vm2, %v828_v34, 0  ;;  %1016 = vmatprep.mubr.bf16.mxu1 %v6849_v9 }
 0x1ce   : > { %5082 = vmatprep.subr.msk.bf16.mxu0 %vm834_vm2, %v829_v35 }
 0x1cf   : > { %842 = vmatpush1.bf16.msra.mxu0 %v836_v36 }
 0x1d0   : > { %v5845_v37 = vpop.f32.mrb[8].mxu0 }
 0x1d1   : > { %v5848_v41 = vsub.f32 %v783_v23, %v5845_v37  ;;  %v5850_v42 = vpop.f32.mrb[9].mxu0 }
 0x1d2   : > { %v5853_v43 = vsub.f32 %v785_v25, %v5850_v42  ;;  %v5855_v46 = vpop.f32.mrb[10].mxu0  ;;  %5083 = vmatmul.mubr.msk.bf16.vlgmr.msra.gmra.mrb[12].mxu0 %vm830_vm3, %v5838_v29 }
 0x1d3   : > { %v5860_v47 = vsub.f32 %v787_v32, %v5855_v46  ;;  %v5862_v50 = vpop.f32.mrb[11].mxu0  ;;  %1490 = vmatprep.mubr.bf16.mxu0 %v6849_v9 }
 0x1d4   : > { %v5866_v51 = vsub.f32 %v789_v33, %v5862_v50 }
 0x29f   : > { %v922_v53 = vpop.f32.mrb[0].mxu1 }
 0x2a0   : > { %v924_v54 = vpop.f32.mrb[1].mxu1 }
 0x2a1   : > { %v926_v55 = vpop.f32.mrb[2].mxu1 }
 0x2a2   : > { %v927_v56 = vpop.f32.mrb[3].mxu1 }
 0x2a3   : > { %v5881_v56 = vld [vmem:[%s6842_s7] sm:$0x3f]  }
 0x2a5   : > { %v875_v58 = vpop.f32.mrb[12].mxu0 }
 0x2a6   : > { %v923_v59 = vadd.f32 %v922_v53, %v875_v58  ;;  %v877_v60 = vpop.f32.mrb[13].mxu0 }
 0x2a7   : > { %v925_v61 = vadd.f32 %v924_v54, %v877_v60  ;;  %v879_v63 = vpop.f32.mrb[14].mxu0 }
 0x2a8   : > { %5543 = vrsqrt.f32 %v923_v59  ;;  %v880_v0 = vpop.f32.mrb[15].mxu0  ;;  %vm931_vm4 = vcmp.eq.f32.partialorder %v923_v59, inf  ;;  %v934_v5 = vand.u32 2147483648, %v923_v59  ;;  %vm933_vm5 = vcmp.eq.f32.partialorder %v923_v59, 0.0 }
 0x2a9   : > { %5545 = vrsqrt.f32 %v925_v61  ;;  %vm938_vm6 = vcmp.eq.f32.partialorder %v925_v61, inf  ;;  %v941_v13 = vand.u32 2147483648, %v925_v61  ;;  %vm940_vm7 = vcmp.eq.f32.partialorder %v925_v61, 0.0 }
 0x2b2   : > { %v5544_v1 = vpop.eup %5543 }
 0x2b3   : > { %v5546_v2 = vpop.eup %5545  ;;  %v930_v4 = vmul.f32 %v5544_v1, %v923_v59 }
 0x2b4   : > { %v937_v10 = vmul.f32 %v5546_v2, %v925_v61 }
 0x2b5   : > { %v932_v11 = vsel %vm931_vm4, %v923_v59, %v930_v4  ;;  %vm1789_vm4 = vcmask 1040384  }
 0x2b6   : > { %v939_v14 = vsel %vm938_vm6, %v925_v61, %v937_v10  ;;  %v935_v15 = vsel %vm933_vm5, %v934_v5, %v932_v11  ;;  %vm1785_vm5 = vcmask 15360   ;;  %vm2614_vm6 = vcmask 130048  }
 0x2b7   : > { %v942_v16 = vsel %vm940_vm7, %v941_v13, %v939_v14  ;;  %v943_v17 = vadd.f32 1e-06, %v935_v15  ;;  %v1199_v13 = vmul.f32 %v5853_v43, %v5853_v43 }
 0x2b8   : > { %v944_v18 = vadd.f32 1e-06, %v942_v16 }
 0x2b9   : > { %5547 = vrcp.f32 %v943_v17 }
 0x2ba   : > { %5549 = vrcp.f32 %v944_v18 }
 0x2c3   : > { %v5548_v21 = vpop.eup %5547 }
 0x2c4   : > { %v5550_v23 = vpop.eup %5549  ;;  %v952_v24 = vmul.f32 %v5548_v21, %v5868_v20 }
 0x2c5   : > { %v953_v25 = vmul.f32 %v5550_v23, %v5868_v20 }
 0x2c6   : > { %v958_v28 = vadd.f32 %v5870_v22, %v952_v24 }
 0x2c7   : > { %v959_v30 = vadd.f32 %v5870_v22, %v953_v25 }
 0x2c8   : > { %v960_v31 = vpack.c.bf16 %v958_v28, %v958_v28 }
 0x2c9   : > { %v961_v32 = vpack.c.bf16 %v959_v30, %v959_v30 }
 0x2ca   : > { %v962_v33 = vunpack.c.l.bf16 %v960_v31  ;;  %v1028_v58 = vsel %vm977_vm8, %v960_v31, 0 }
 0x2cb   : > { %v963_v34 = vunpack.c.l.bf16 %v961_v32 }
 0x2cc   : > { %v964_v35 = vsub.f32 %v958_v28, %v962_v33  ;;  %v1198_v33 = vmul.f32 %v5848_v41, %v5848_v41 }
 0x2cd   : > { %v965_v36 = vsub.f32 %v959_v30, %v963_v34 }
 0x2ce   : > { %v966_v53 = vpack.c.bf16 %v964_v35, %v964_v35 }
 0x2cf   : > { %v967_v54 = vpack.c.bf16 %v965_v36, %v965_v36 }
 0x2d0   : > { %v979_v55 = vsel %vm977_vm8, %v966_v53, 0 }
 0x2d1   : > { %5087 = vmatprep.subr.msk.bf16.mxu1 %vm977_vm8, %v967_v54 }
 0x2d2   : > { %985 = vmatpush1.bf16.msra.mxu1 %v979_v55 }
 0x2d3   : > { %5089 = vmatprep.subr.msk.bf16.mxu1 %vm977_vm8, %v961_v32 }
 0x2d5   : > { %5088 = vmatmul.mubr.msk.bf16.vlgmr.msra.gmra.mrb[4].mxu1 %vm973_vm9, %v5881_v56 }
 0x2d6   : > { %1034 = vmatpush1.bf16.msra.mxu1 %v1028_v58  ;;  %1065 = vmatprep.mubr.bf16.mxu1 %v6849_v9 }
 0x2e1   : > { %5090 = vmatmul.mubr.msk.bf16.vlgmr.msra.gmra.mrb[4].mxu1 %vm973_vm9, %v5881_v56 }
 0x2e2   : > { %1142 = vmatprep.mubr.bf16.mxu1 %v6849_v9 }
 0x3b4   : > { %v1067_v59 = vpop.f32.mrb[4].mxu1 }
 0x3b5   : > { %v5892_v60 = vmul.f32 %v1067_v59, %v5817_v6  ;;  %v1069_v61 = vpop.f32.mrb[5].mxu1 }
 0x3b6   : > { %v5895_v63 = vmul.f32 %v1069_v61, %v5819_v7  ;;  %v1071_v0 = vpop.f32.mrb[6].mxu1  ;;  %v1201_v7 = vmul.f32 %v5866_v51, %v5866_v51 }
 0x3b7   : > { %v1084_v1 = vsub.f32 %v5892_v60, %v5845_v37  ;;  %v5900_v2 = vmul.f32 %v1071_v0, %v5821_v8  ;;  %v1073_v4 = vpop.f32.mrb[7].mxu1 }
 0x3b8   : > { %v1085_v5 = vsub.f32 %v5895_v63, %v5850_v42  ;;  %v5905_v10 = vmul.f32 %v1073_v4, %v5827_v12  ;;  %v1203_v15 = vpack.c.bf16 %v1201_v7, %v1199_v13 }
 0x3b9   : > { %v1086_v6 = vsub.f32 %v5900_v2, %v5855_v46  ;;  %v1088_v37 = vmul.f32 %v1084_v1, %v5848_v41 }
 0x3ba   : > { %v1087_v11 = vsub.f32 %v5905_v10, %v5862_v50  ;;  %v1089_v42 = vmul.f32 %v1085_v5, %v5853_v43  ;;  %v1200_v50 = vmul.f32 %v5860_v47, %v5860_v47  ;;  %v1207_v25 = vunpack.c.h.bf16 %v1203_v15 }
 0x3bb   : > { %v1090_v8 = vmul.f32 %v1086_v6, %v5860_v47  ;;  %v1205_v31 = vunpack.c.l.bf16 %v1203_v15 }
 0x3bc   : > { %v1091_v12 = vmul.f32 %v1087_v11, %v5866_v51  ;;  %v1202_v36 = vpack.c.bf16 %v1200_v50, %v1198_v33  ;;  %v1211_v53 = vsub.f32 %v1201_v7, %v1207_v25 }
 0x3bd   : > { %v1092_v14 = vpack.c.bf16 %v1090_v8, %v1088_v37  ;;  %v1209_v54 = vsub.f32 %v1199_v13, %v1205_v31 }
 0x3be   : > { %v1093_v46 = vpack.c.bf16 %v1091_v12, %v1089_v42  ;;  %v1204_v59 = vunpack.c.l.bf16 %v1202_v36  ;;  %v1206_v61 = vunpack.c.h.bf16 %v1202_v36  ;;  %v1262_v6 = vsel %vm834_vm2, %v1202_v36, 0 }
 0x3bf   : > { %v1096_v16 = vunpack.c.h.bf16 %v1092_v14  ;;  %v1094_v17 = vunpack.c.l.bf16 %v1092_v14  ;;  %v1152_v55 = vsel %vm834_vm2, %v1092_v14, 0  ;;  %v1213_v58 = vpack.c.bf16 %v1211_v53, %v1209_v54 }
 0x3c0   : > { %v1095_v18 = vunpack.c.l.bf16 %v1093_v46  ;;  %v1097_v21 = vunpack.c.h.bf16 %v1093_v46  ;;  %v1208_v0 = vsub.f32 %v1198_v33, %v1204_v59  ;;  %v1210_v1 = vsub.f32 %v1200_v50, %v1206_v61 }
 0x3c1   : > { %v1100_v23 = vsub.f32 %v1090_v8, %v1096_v16  ;;  %v1098_v24 = vsub.f32 %v1088_v37, %v1094_v17 }
 0x3c2   : > { %v1101_v28 = vsub.f32 %v1091_v12, %v1097_v21  ;;  %v1099_v30 = vsub.f32 %v1089_v42, %v1095_v18  ;;  %v1212_v4 = vpack.c.bf16 %v1210_v1, %v1208_v0 }
 0x3c3   : > { %v1102_v32 = vpack.c.bf16 %v1100_v23, %v1098_v24 }
 0x3c4   : > { %v1103_v34 = vpack.c.bf16 %v1101_v28, %v1099_v30  ;;  %v1215_v5 = vsel %vm834_vm2, %v1212_v4, 0 }
 0x3c5   : > { %v1105_v35 = vsel %vm834_vm2, %v1102_v32, 0 }
 0x3c6   : > { %5091 = vmatprep.subr.msk.bf16.mxu1 %vm834_vm2, %v1103_v34 }
 0x3c7   : > { %1111 = vmatpush1.bf16.msra.mxu1 %v1105_v35 }
 0x3c8   : > { %5093 = vmatprep.subr.msk.bf16.mxu1 %vm834_vm2, %v1093_v46 }
 0x3ca   : > { %5092 = vmatmul.mubr.msk.bf16.vlgmr.msra.gmra.mrb[8].mxu1 %vm830_vm3, %v5838_v29 }
 0x3cb   : > { %1158 = vmatpush1.bf16.msra.mxu1 %v1152_v55  ;;  %1189 = vmatprep.mubr.bf16.mxu1 %v6849_v9 }
 0x3cc   : > { %5095 = vmatprep.subr.msk.bf16.mxu1 %vm834_vm2, %v1213_v58 }
 0x3d6   : > { %5094 = vmatmul.mubr.msk.bf16.vlgmr.msra.gmra.mrb[8].mxu1 %vm830_vm3, %v5838_v29 }
 0x3d7   : > { %1221 = vmatpush1.bf16.msra.mxu1 %v1215_v5  ;;  %1252 = vmatprep.mubr.bf16.mxu1 %v6849_v9 }
 0x3d8   : > { %5097 = vmatprep.subr.msk.bf16.mxu1 %vm834_vm2, %v1203_v15 }
 0x3de   : > { %5096 = vmatmul.mubr.msk.bf16.vlgmr.msra.gmra.mrb[12].mxu1 %vm830_vm3, %v5838_v29 }
 0x3df   : > { %1268 = vmatpush1.bf16.msra.mxu1 %v1262_v6  ;;  %1299 = vmatprep.mubr.bf16.mxu1 %v6849_v9 }
 0x3e6   : > { %5098 = vmatmul.mubr.msk.bf16.vlgmr.msra.gmra.mrb[16].mxu1 %vm830_vm3, %v5838_v29 }
 0x3e7   : > { %1362 = vmatprep.mubr.bf16.mxu1 %v6849_v9 }
 0x4a9   : > { %v1191_v7 = vpop.f32.mrb[8].mxu1 }
 0x4aa   : > { %v1193_v11 = vpop.f32.mrb[9].mxu1  ;;  %v1308_v29 = vmin.f32 %v1191_v7, 0.0 }
 0x4ab   : > { %v1195_v37 = vpop.f32.mrb[10].mxu1  ;;  %v1309_v25 = vmin.f32 %v1193_v11, 0.0 }
 0x4ac   : > { %v1196_v8 = vpop.f32.mrb[11].mxu1 }
 0x4b1   : > { %v1254_v13 = vpop.f32.mrb[12].mxu1 }
 0x4b2   : > { %v1256_v42 = vpop.f32.mrb[13].mxu1 }
 0x4b3   : > { %v1258_v12 = vpop.f32.mrb[14].mxu1 }
 0x4b4   : > { %v1259_v14 = vpop.f32.mrb[15].mxu1 }
 0x4b9   : > { %v1301_v15 = vpop.f32.mrb[16].mxu1 }
 0x4ba   : > { %v1302_v46 = vadd.f32 %v1301_v15, %v1254_v13  ;;  %v1303_v16 = vpop.f32.mrb[17].mxu1 }
 0x4bb   : > { %v1304_v17 = vadd.f32 %v1303_v16, %v1256_v42  ;;  %v1305_v18 = vpop.f32.mrb[18].mxu1 }
 0x4bc   : > { %v1310_v21 = vadd.f32 1e-06, %v1302_v46  ;;  %v1306_v50 = vpop.f32.mrb[19].mxu1 }
 0x4bd   : > { %v1311_v23 = vadd.f32 1e-06, %v1304_v17 }
 0x4be   : > { %5551 = vrcp.f32 %v1310_v21 }
 0x4bf   : > { %5553 = vrcp.f32 %v1311_v23 }
 0x4c8   : > { %v5552_v24 = vpop.eup %5551 }
 0x4c9   : > { %v5554_v28 = vpop.eup %5553  ;;  %v1314_v30 = vmul.f32 %v5552_v24, %v1308_v29 }
 0x4ca   : > { %v1315_v31 = vmul.f32 %v5554_v28, %v1309_v25  ;;  %v492_v25 = vld [vmem:[%s6838_s3 + $0x10] sm:$0xff] }
 0x4cb   : > { %v1316_v32 = vpack.c.bf16 %v1314_v30, %v1314_v30  ;;  %v5980_v28 = vpack.c.bf16 %v492_v25, %v492_v25 }
 0x4cc   : > { %v1317_v33 = vpack.c.bf16 %v1315_v31, %v1315_v31 }
 0x4cd   : > { %v1318_v34 = vunpack.c.l.bf16 %v1316_v32  ;;  %v1374_v59 = vsel %vm977_vm8, %v1316_v32, 0 }
 0x4ce   : > { %v1319_v35 = vunpack.c.l.bf16 %v1317_v33 }
 0x4cf   : > { %v1320_v36 = vsub.f32 %v1314_v30, %v1318_v34 }
 0x4d0   : > { %v1321_v53 = vsub.f32 %v1315_v31, %v1319_v35  ;;  %v497_v35 = vunpack.c.l.bf16 %v5980_v28 }
 0x4d1   : > { %v1322_v54 = vpack.c.bf16 %v1320_v36, %v1320_v36 }
 0x4d2   : > { %v1323_v55 = vpack.c.bf16 %v1321_v53, %v1321_v53  ;;  %v500_v36 = vsub.f32 %v492_v25, %v497_v35 }
 0x4d3   : > { %v1325_v58 = vsel %vm977_vm8, %v1322_v54, 0 }
 0x4d4   : > { %5099 = vmatprep.subr.msk.bf16.mxu1 %vm977_vm8, %v1323_v55  ;;  %v5999_v53 = vpack.c.bf16 %v500_v36, %v500_v36 }
 0x4d5   : > { %1331 = vmatpush1.bf16.msra.mxu1 %v1325_v58 }
 0x4d6   : > { %5101 = vmatprep.subr.msk.bf16.mxu1 %vm977_vm8, %v1317_v33 }
 0x4d8   : > { %5100 = vmatmul.mubr.msk.bf16.vlgmr.msra.gmra.mrb[20].mxu1 %vm973_vm9, %v5881_v56 }
 0x4d9   : > { %1380 = vmatpush1.bf16.msra.mxu1 %v1374_v59  ;;  %1411 = vmatprep.mubr.bf16.mxu1 %v6849_v9 }
 0x4e4   : > { %5102 = vmatmul.mubr.msk.bf16.vlgmr.msra.gmra.mrb[20].mxu1 %vm973_vm9, %v5881_v56 }
 0x4e5   : > { %1690 = vmatprep.mubr.bf16.mxu1 %v6849_v9 }
 0x5b7   : > { %v1413_v61 = vpop.f32.mrb[20].mxu1 }
 0x5b8   : > { %v1422_v0 = vmul.f32 0.8, %v1413_v61  ;;  %v1415_v1 = vpop.f32.mrb[21].mxu1 }
 0x5b9   : > { %v1423_v4 = vmul.f32 0.8, %v1415_v1  ;;  %v1417_v5 = vpop.f32.mrb[22].mxu1 }
 0x5ba   : > { %v1426_v6 = vmul.f32 %v1422_v0, %v5848_v41  ;;  %v1424_v7 = vmul.f32 0.8, %v1417_v5  ;;  %v1419_v11 = vpop.f32.mrb[23].mxu1 }
 0x5bb   : > { %v1427_v37 = vmul.f32 %v1423_v4, %v5853_v43  ;;  %v1425_v8 = vmul.f32 0.8, %v1419_v11 }
 0x5bc   : > { %v1428_v13 = vmul.f32 %v1424_v7, %v5860_v47  ;;  %v1430_v56 = vsub.f32 %v5892_v60, %v1426_v6  ;;  %v491_v60 = vld [vmem:[%s6838_s3 + $0x8] sm:$0xff] }
 0x5bd   : > { %v1429_v42 = vmul.f32 %v1425_v8, %v5866_v51  ;;  %v1431_v14 = vsub.f32 %v5895_v63, %v1427_v37  ;;  %v490_v51 = vld [vmem:[%s6838_s3] sm:$0xff] }
 0x5be   : > { %v1432_v12 = vsub.f32 %v5900_v2, %v1428_v13 }
 0x5bf   : > { %v1433_v15 = vsub.f32 %v5905_v10, %v1429_v42  ;;  %v5969_v10 = vpack.c.bf16 %v491_v60, %v490_v51 }
 0x5c0   : > { %v1434_v46 = vpack.c.bf16 %v1432_v12, %v1430_v56 }
 0x5c1   : > { %v1435_v16 = vpack.c.bf16 %v1433_v15, %v1431_v14  ;;  %v495_v30 = vunpack.c.l.bf16 %v5969_v10  ;;  %v496_v31 = vunpack.c.h.bf16 %v5969_v10 }
 0x5c2   : > { %v1438_v41 = vunpack.c.h.bf16 %v1434_v46  ;;  %v1436_v17 = vunpack.c.l.bf16 %v1434_v46  ;;  %v1510_v24 = vsel %vm834_vm2, %v1434_v46, 0 }
 0x5c3   : > { %v1439_v18 = vunpack.c.h.bf16 %v1435_v16  ;;  %v1437_v21 = vunpack.c.l.bf16 %v1435_v16  ;;  %v498_v32 = vsub.f32 %v490_v51, %v495_v30  ;;  %v499_v33 = vsub.f32 %v491_v60, %v496_v31 }
 0x5c4   : > { %v1442_v43 = vsub.f32 %v1432_v12, %v1438_v41  ;;  %v1440_v50 = vsub.f32 %v1430_v56, %v1436_v17 }
 0x5c5   : > { %v1443_v23 = vsub.f32 %v1433_v15, %v1439_v18  ;;  %v1441_v47 = vsub.f32 %v1431_v14, %v1437_v21  ;;  %v5993_v34 = vpack.c.bf16 %v499_v33, %v498_v32  ;;  %v6031_v18 = vld [vmem:[%s6843_s8] sm:$0x1] }
 0x5c6   : > { %v1444_v29 = vpack.c.bf16 %v1442_v43, %v1440_v50  ;;  %v535_v21 = vld [vmem:[%s6839_s4] sm:$0x3] }
 0x5c7   : > { %v1445_v63 = vpack.c.bf16 %v1443_v23, %v1441_v47  ;;  %1766 = vperm.xlu0 %5529, %v535_v21  }
 0x5c8   : > { %v1453_v2 = vsel %vm834_vm2, %v1444_v29, 0 }
 0x5c9   : > { %5103 = vmatprep.subr.msk.bf16.mxu0 %vm834_vm2, %v1445_v63 }
 0x5ca   : > { %1459 = vmatpush1.bf16.msra.mxu0 %v1453_v2 }
 0x5cb   : > { %5106 = vmatprep.subr.msk.bf16.mxu0 %vm834_vm2, %v1435_v16  ;;  %5531 = vset.pattern.permute.xlu0 %v6849_v9 }
 0x5cd   : > { %5104 = vmatmul.mubr.msk.bf16.vlgmr.msra.gmra.mrb[16].mxu0 %vm830_vm3, %v5969_v10 }
 0x5ce   : > { %1516 = vmatpush1.bf16.msra.mxu0 %v1510_v24  ;;  %1500 = vmatprep.mubr.bf16.mxu0 %v6849_v9 }
 0x5cf   : > { %5109 = vmatprep.subr.msk.bf16.mxu0 %vm834_vm2, %v1435_v16 }
 0x5d5   : > { %5105 = vmatmul.mubr.msk.bf16.gmra.mrb[20].mxu0 %vm830_vm3, %v5980_v28 }
 0x5d6   : > { %1547 = vmatprep.mubr.bf16.mxu0 %v6849_v9 }
 0x5dd   : > { %5107 = vmatmul.mubr.msk.bf16.vlgmr.msra.gmra.mrb[16].mxu0 %vm830_vm3, %v5969_v10 }
 0x5de   : > { %1573 = vmatpush1.bf16.msra.mxu0 %v1510_v24  ;;  %1557 = vmatprep.mubr.bf16.mxu0 %v6849_v9 }
 0x5e5   : > { %5108 = vmatmul.mubr.msk.bf16.gmra.mrb[20].mxu0 %vm830_vm3, %v5980_v28 }
 0x5e6   : > { %1604 = vmatprep.mubr.bf16.mxu0 %v6849_v9 }
 0x5ed   : > { %5110 = vmatmul.mubr.msk.bf16.vlgmr.msra.gmra.mrb[16].mxu0 %vm830_vm3, %v5993_v34 }
 0x5ee   : > { %1614 = vmatprep.mubr.bf16.mxu0 %v6849_v9 }
 0x5f5   : > { %5111 = vmatmul.mubr.msk.bf16.gmra.mrb[20].mxu0 %vm830_vm3, %v5999_v53 }
 0x5f6   : > { %2044 = vmatprep.mubr.bf16.mxu0 %v6849_v9 }
 0x6c0   : > { %v1606_v54 = vpop.f32.mrb[16].mxu0 }
 0x6c1   : > { %v1629_v55 = vsel %vm834_vm2, %v1606_v54, 0.0  ;;  %v1608_v58 = vpop.f32.mrb[17].mxu0 }
 0x6c2   : > { %v1630_v59 = vsel %vm834_vm2, %v1608_v58, 0.0  ;;  %v1610_v61 = vpop.f32.mrb[18].mxu0 }
 0x6c3   : > { %v1612_v0 = vpop.f32.mrb[19].mxu0  ;;  %v1631_v1 = vadd.f32 %v1630_v59, %v1629_v55 }
 0x6c5   : > { %1632 = vadd.xlane.f32.xlu1 %v1631_v1 }
 0x6c8   : > { %v6006_v4 = vpop.f32.mrb[20].mxu0 }
 0x6c9   : > { %v6009_v5 = vsub.f32 %v1610_v61, %v6006_v4  ;;  %v6011_v6 = vpop.f32.mrb[21].mxu0 }
 0x6ca   : > { %v6014_v7 = vsub.f32 %v1612_v0, %v6011_v6  ;;  %v1620_v11 = vpop.f32.mrb[22].mxu0 }
 0x6cb   : > { %v1996_v37 = vmul.f32 %v6009_v5, %v6009_v5  ;;  %v1621_v8 = vpop.f32.mrb[23].mxu0 }
 0x6cc   : > { %v1997_v13 = vmul.f32 %v6014_v7, %v6014_v7 }
 0x6cd   : > { %v6020_v42 = vpack.c.bf16 %v1996_v37, %v1996_v37 }
 0x6ce   : > { %v6022_v56 = vpack.c.bf16 %v1997_v13, %v1997_v13 }
 0x6cf   : > { %v2000_v12 = vunpack.c.l.bf16 %v6020_v42 }
 0x6d0   : > { %v2001_v14 = vunpack.c.l.bf16 %v6022_v56 }
 0x6d1   : > { %v2002_v15 = vsub.f32 %v1996_v37, %v2000_v12 }
 0x6d2   : > { %v2003_v46 = vsub.f32 %v1997_v13, %v2001_v14 }
 0x6d3   : > { %v2004_v16 = vpack.c.bf16 %v2002_v15, %v2002_v15 }
 0x6d4   : > { %v2005_v41 = vpack.c.bf16 %v2003_v46, %v2003_v46 }
 0x6d5   : > { %v2007_v17 = vsel %vm1651_vm10, %v2004_v16, 0  ;;  %v6062_v16 = vpop.permute.xlu0 %1766 }
 0x6d6   : > { %5124 = vmatprep.subr.msk.bf16.mxu0 %vm1651_vm10, %v2005_v41  ;;  %1772 = vperm.xlu1 %5530, %v535_v21  }
 0x6d7   : > { %2013 = vmatpush1.bf16.msra.mxu0 %v2007_v17 }
 0x6da   : > { %5125 = vmatmul.mubr.msk.bf16.vlgmr.msra.gmra.mrb[24].mxu0 %vm1647_vm11, %v6031_v18 }
 0x6db   : > { %2154 = vmatprep.mubr.bf16.mxu0 %v6849_v9 }
 0x752   : > { %v1633_v43 = vpop.xlane.xlu1 %1632 }
 0x753   : > { %v6040_v50 = vmul.f32 0.00390625, %v1633_v43 }
 0x755   : > { %v6043_v23 = vsub.f32 %v1606_v54, %v6040_v50  ;;  %v6046_v47 = vsub.f32 %v1608_v58, %v6040_v50 }
 0x756   : > { %v6064_v17 = vpop.permute.xlu1 %1772 }
 0x757   : > { %v1638_v29 = vmul.f32 %v6046_v47, %v6046_v47  ;;  %v1637_v51 = vmul.f32 %v6043_v23, %v6043_v23 }
 0x759   : > { %v1640_v60 = vpack.c.bf16 %v1638_v29, %v1638_v29  ;;  %v1639_v63 = vpack.c.bf16 %v1637_v51, %v1637_v51 }
 0x75b   : > { %v1642_v2 = vunpack.c.l.bf16 %v1640_v60  ;;  %v1641_v24 = vunpack.c.l.bf16 %v1639_v63  ;;  %v1700_v35 = vsel %vm1651_vm10, %v1639_v63, 0 }
 0x75d   : > { %v1644_v25 = vsub.f32 %v1638_v29, %v1642_v2  ;;  %v1643_v30 = vsub.f32 %v1637_v51, %v1641_v24 }
 0x75f   : > { %v1646_v31 = vpack.c.bf16 %v1644_v25, %v1644_v25  ;;  %v1645_v32 = vpack.c.bf16 %v1643_v30, %v1643_v30 }
 0x761   : > { %5112 = vmatprep.subr.msk.bf16.mxu1 %vm1651_vm10, %v1646_v31  ;;  %v1653_v33 = vsel %vm1651_vm10, %v1645_v32, 0 }
 0x762   : > { %1659 = vmatpush1.bf16.msra.mxu1 %v1653_v33 }
 0x763   : > { %5114 = vmatprep.subr.msk.bf16.mxu1 %vm1651_vm10, %v1640_v60 }
 0x765   : > { %5113 = vmatmul.mubr.msk.bf16.vlgmr.msra.gmra.mrb[24].mxu1 %vm1647_vm11, %v6031_v18 }
 0x766   : > { %1706 = vmatpush1.bf16.msra.mxu1 %v1700_v35  ;;  %1737 = vmatprep.mubr.bf16.mxu1 %v6849_v9 }
 0x771   : > { %5115 = vmatmul.mubr.msk.bf16.vlgmr.msra.gmra.mrb[24].mxu1 %vm1647_vm11, %v6031_v18 }
 0x772   : > { %1828 = vmatprep.mubr.bf16.mxu1 %v6849_v9 }
 0x844   : > { %v1739_v36 = vpop.f32.mrb[24].mxu1 }
 0x845   : > { %5555 = vrsqrt.f32 %v1739_v36  ;;  %v1741_v54 = vpop.f32.mrb[25].mxu1  ;;  %vm1748_vm12 = vcmp.eq.f32.partialorder %v1739_v36, inf  ;;  %v1751_v1 = vand.u32 2147483648, %v1739_v36  ;;  %vm1750_vm13 = vcmp.eq.f32.partialorder %v1739_v36, 0.0 }
 0x846   : > { %5557 = vrsqrt.f32 %v1741_v54  ;;  %v1743_v55 = vpop.f32.mrb[26].mxu1  ;;  %vm1755_vm14 = vcmp.eq.f32.partialorder %v1741_v54, inf  ;;  %v1758_v8 = vand.u32 2147483648, %v1741_v54  ;;  %vm1757_vm15 = vcmp.eq.f32.partialorder %v1741_v54, 0.0 }
 0x847   : > { %v1744_v58 = vpop.f32.mrb[27].mxu1 }
 0x84f   : > { %v5556_v59 = vpop.eup %5555 }
 0x850   : > { %v5558_v61 = vpop.eup %5557  ;;  %v1747_v0 = vmul.f32 %v5556_v59, %v1739_v36 }
 0x851   : > { %v1754_v11 = vmul.f32 %v5558_v61, %v1741_v54 }
 0x852   : > { %v1749_v37 = vsel %vm1748_vm12, %v1739_v36, %v1747_v0  ;;  %v6075_v36 = vld [vmem:[%s6844_s9] sm:$0x7] }
 0x853   : > { %v1752_v13 = vsel %vm1750_vm13, %v1751_v1, %v1749_v37  ;;  %v1756_v12 = vsel %vm1755_vm14, %v1741_v54, %v1754_v11 }
 0x854   : > { %v1760_v14 = vadd.f32 1e-06, %v1752_v13  ;;  %v1759_v15 = vsel %vm1757_vm15, %v1758_v8, %v1756_v12 }
 0x855   : > { %v1761_v46 = vadd.f32 1e-06, %v1759_v15 }
 0x856   : > { %5559 = vrcp.f32 %v1760_v14 }
 0x857   : > { %5561 = vrcp.f32 %v1761_v46 }
 0x860   : > { %v5560_v41 = vpop.eup %5559 }
 0x861   : > { %v5562_v21 = vpop.eup %5561  ;;  %v1769_v43 = vmul.f32 %v5560_v41, %v6062_v16 }
 0x862   : > { %v1770_v29 = vmul.f32 %v5562_v21, %v6062_v16 }
 0x863   : > { %v1775_v51 = vadd.f32 %v6064_v17, %v1769_v43 }
 0x864   : > { %v1776_v60 = vadd.f32 %v6064_v17, %v1770_v29 }
 0x865   : > { %v1777_v63 = vpack.c.bf16 %v1775_v51, %v1775_v51 }
 0x866   : > { %v1778_v2 = vpack.c.bf16 %v1776_v60, %v1776_v60 }
 0x867   : > { %v1779_v24 = vunpack.c.l.bf16 %v1777_v63  ;;  %v1838_v54 = vsel %vm1789_vm4, %v1777_v63, 0 }
 0x868   : > { %v1780_v25 = vunpack.c.l.bf16 %v1778_v2 }
 0x869   : > { %v1781_v30 = vsub.f32 %v1775_v51, %v1779_v24  ;;  %v2046_v51 = vpop.f32.mrb[24].mxu0  ;;  %v6120_v24 = vld [vmem:[%s5701_s14 + $0x38] sm:$0xff] }
 0x86a   : > { %v1782_v31 = vsub.f32 %v1776_v60, %v1780_v25  ;;  %v2048_v60 = vpop.f32.mrb[25].mxu0  ;;  %v6123_v25 = vld [vmem:[%s5701_s14 + $0x40] sm:$0xff] }
 0x86b   : > { %v1783_v32 = vpack.c.bf16 %v1781_v30, %v1781_v30  ;;  %v2050_v63 = vpop.f32.mrb[26].mxu0  ;;  %v6128_v30 = vld [vmem:[%s5701_s14 + $0x48] sm:$0xff] }
 0x86c   : > { %v1784_v33 = vpack.c.bf16 %v1782_v31, %v1782_v31  ;;  %v6131_v31 = vld [vmem:[%s5701_s14 + $0x50] sm:$0xff] }
 0x86d   : > { %v1791_v35 = vsel %vm1789_vm4, %v1783_v32, 0  ;;  %v2838_v32 = vadd.f32 %v6128_v30, %v6123_v25 }
 0x86e   : > { %5116 = vmatprep.subr.msk.bf16.mxu1 %vm1789_vm4, %v1784_v33 }
 0x86f   : > { %1797 = vmatpush1.bf16.msra.mxu1 %v1791_v35  ;;  %2839 = vadd.xlane.f32.xlu1 %v2838_v32  ;;  %v5533_v32 = vld [vmem:[%s6845_s10] sm:$0xff]  }
 0x870   : > { %5118 = vmatprep.subr.msk.bf16.mxu1 %vm1789_vm4, %v1778_v2  ;;  %v6117_v2 = vld [vmem:[%s5701_s14 + $0x30] sm:$0xff] }
 0x872   : > { %5117 = vmatmul.mubr.msk.bf16.vlgmr.msra.gmra.mrb[28].mxu1 %vm1785_vm5, %v6075_v36 }
 0x873   : > { %1844 = vmatpush1.bf16.msra.mxu1 %v1838_v54  ;;  %1875 = vmatprep.mubr.bf16.mxu1 %v6849_v9 }
 0x87e   : > { %5119 = vmatmul.mubr.msk.bf16.vlgmr.msra.gmra.mrb[28].mxu1 %vm1785_vm5, %v6075_v36 }
 0x87f   : > { %1940 = vmatprep.mubr.bf16.mxu1 %v6849_v9 }
 0x951   : > { %v1877_v55 = vpop.f32.mrb[28].mxu1 }
 0x952   : > { %v1884_v58 = vmul.f32 %v1877_v55, %v6043_v23  ;;  %v1879_v59 = vpop.f32.mrb[29].mxu1 }
 0x953   : > { %v1885_v61 = vmul.f32 %v1879_v59, %v6046_v47  ;;  %v1881_v0 = vpop.f32.mrb[30].mxu1 }
 0x954   : > { %v6088_v1 = vadd.f32 %v1884_v58, %v6040_v50  ;;  %v1882_v11 = vpop.f32.mrb[31].mxu1 }
 0x955   : > { %v6091_v37 = vadd.f32 %v1885_v61, %v6040_v50 }
 0x956   : > { %v1890_v8 = vsub.f32 %v6088_v1, %v6006_v4 }
 0x957   : > { %v1891_v13 = vsub.f32 %v6091_v37, %v6011_v6  ;;  %v2054_v6 = vsel %vm1651_vm10, %v6020_v42, 0  ;;  %v2835_v42 = vadd.f32 %v6120_v24, %v6117_v2 }
 0x958   : > { %v1892_v12 = vmul.f32 %v1890_v8, %v6009_v5 }
 0x959   : > { %v1893_v23 = vmul.f32 %v1891_v13, %v6014_v7  ;;  %2836 = vadd.xlane.f32.xlu0 %v2835_v42 }
 0x95a   : > { %v1894_v14 = vpack.c.bf16 %v1892_v12, %v1892_v12 }
 0x95b   : > { %v1895_v47 = vpack.c.bf16 %v1893_v23, %v1893_v23 }
 0x95c   : > { %v1896_v15 = vunpack.c.l.bf16 %v1894_v14  ;;  %v1950_v4 = vsel %vm1651_vm10, %v1894_v14, 0 }
 0x95d   : > { %v1897_v46 = vunpack.c.l.bf16 %v1895_v47 }
 0x95e   : > { %v1898_v41 = vsub.f32 %v1892_v12, %v1896_v15 }
 0x95f   : > { %v1899_v21 = vsub.f32 %v1893_v23, %v1897_v46 }
 0x960   : > { %v1900_v43 = vpack.c.bf16 %v1898_v41, %v1898_v41 }
 0x961   : > { %v1901_v29 = vpack.c.bf16 %v1899_v21, %v1899_v21 }
 0x962   : > { %v1903_v50 = vsel %vm1651_vm10, %v1900_v43, 0 }
 0x963   : > { %5120 = vmatprep.subr.msk.bf16.mxu1 %vm1651_vm10, %v1901_v29 }
 0x964   : > { %1909 = vmatpush1.bf16.msra.mxu1 %v1903_v50 }
 0x965   : > { %5122 = vmatprep.subr.msk.bf16.mxu1 %vm1651_vm10, %v1895_v47 }
 0x967   : > { %5121 = vmatmul.mubr.msk.bf16.vlgmr.msra.gmra.mrb[32].mxu1 %vm1647_vm11, %v6031_v18 }
 0x968   : > { %1956 = vmatpush1.bf16.msra.mxu1 %v1950_v4  ;;  %1987 = vmatprep.mubr.bf16.mxu1 %v6849_v9 }
 0x969   : > { %5126 = vmatprep.subr.msk.bf16.mxu1 %vm1651_vm10, %v6022_v56  ;;  %v2051_v56 = vpop.f32.mrb[27].mxu0 }
 0x973   : > { %5123 = vmatmul.mubr.msk.bf16.vlgmr.msra.gmra.mrb[32].mxu1 %vm1647_vm11, %v6031_v18 }
 0x974   : > { %2060 = vmatpush1.bf16.msra.mxu1 %v2054_v6  ;;  %2091 = vmatprep.mubr.bf16.mxu1 %v6849_v9 }
 0x97b   : > { %5127 = vmatmul.mubr.msk.bf16.vlgmr.msra.gmra.mrb[36].mxu1 %vm1647_vm11, %v6031_v18  ;;  %v6134_v18 = vld [vmem:[%s5701_s14 + $0x58] sm:$0xff]  ;;  %s5277_s14 = sshll.u32 %s6872_s27, 5 }
 0x97c   : > { %2265 = vmatprep.mubr.bf16.mxu1 %v6849_v9  ;;  %v2841_v33 = vadd.f32 %v6134_v18, %v6131_v31  ;;  %s6383_s21 = scalar_lea.vmem %s6848_s13, %s5277_s14 }
 0x97e   : > { %2842 = vadd.xlane.f32.xlu0 %v2841_v33 }
 0xa46   : > { %v1989_v35 = vpop.f32.mrb[32].mxu1 }
 0xa47   : > { %v1991_v54 = vpop.f32.mrb[33].mxu1  ;;  %v2100_v14 = vmin.f32 %v1989_v35, 0.0 }
 0xa48   : > { %v1993_v55 = vpop.f32.mrb[34].mxu1  ;;  %v2101_v15 = vmin.f32 %v1991_v54, 0.0 }
 0xa49   : > { %v1994_v58 = vpop.f32.mrb[35].mxu1 }
 0xa4e   : > { %v2093_v59 = vpop.f32.mrb[36].mxu1 }
 0xa4f   : > { %v2094_v61 = vadd.f32 %v2093_v59, %v2046_v51  ;;  %v2095_v0 = vpop.f32.mrb[37].mxu1 }
 0xa50   : > { %v2096_v11 = vadd.f32 %v2095_v0, %v2048_v60  ;;  %v2097_v8 = vpop.f32.mrb[38].mxu1 }
 0xa51   : > { %v2102_v13 = vadd.f32 1e-06, %v2094_v61  ;;  %v2098_v12 = vpop.f32.mrb[39].mxu1  ;;  %v5537_v61 = vld [vmem:[%s6845_s10 + $0x20] ss:$0 sps:$4 sm:$0xff]  }
 0xa52   : > { %v2103_v23 = vadd.f32 1e-06, %v2096_v11 }
 0xa53   : > { %5563 = vrcp.f32 %v2102_v13 }
 0xa54   : > { %5565 = vrcp.f32 %v2103_v23 }
 0xa5d   : > { %v5564_v47 = vpop.eup %5563 }
 0xa5e   : > { %v5566_v46 = vpop.eup %5565  ;;  %v2106_v41 = vmul.f32 %v5564_v47, %v2100_v14 }
 0xa5f   : > { %v2107_v21 = vmul.f32 %v5566_v46, %v2101_v15 }
 0xa60   : > { %v2108_v43 = vpack.c.bf16 %v2106_v41, %v2106_v41 }
 0xa61   : > { %v2109_v29 = vpack.c.bf16 %v2107_v21, %v2107_v21 }
 0xa62   : > { %v2110_v50 = vunpack.c.l.bf16 %v2108_v43  ;;  %v2164_v42 = vsel %vm1789_vm4, %v2108_v43, 0 }
 0xa63   : > { %v2111_v4 = vunpack.c.l.bf16 %v2109_v29 }
 0xa64   : > { %v2112_v6 = vsub.f32 %v2106_v41, %v2110_v50 }
 0xa65   : > { %v2113_v51 = vsub.f32 %v2107_v21, %v2111_v4 }
 0xa66   : > { %v2114_v63 = vpack.c.bf16 %v2112_v6, %v2112_v6 }
 0xa67   : > { %v2115_v60 = vpack.c.bf16 %v2113_v51, %v2113_v51 }
 0xa68   : > { %v2117_v56 = vsel %vm1789_vm4, %v2114_v63, 0 }
 0xa69   : > { %5128 = vmatprep.subr.msk.bf16.mxu0 %vm1789_vm4, %v2115_v60 }
 0xa6a   : > { %2123 = vmatpush1.bf16.msra.mxu0 %v2117_v56 }
 0xa6b   : > { %5130 = vmatprep.subr.msk.bf16.mxu0 %vm1789_vm4, %v2109_v29 }
 0xa6d   : > { %5129 = vmatmul.mubr.msk.bf16.vlgmr.msra.gmra.mrb[28].mxu0 %vm1785_vm5, %v6075_v36 }
 0xa6e   : > { %2170 = vmatpush1.bf16.msra.mxu0 %v2164_v42  ;;  %2201 = vmatprep.mubr.bf16.mxu0 %v6849_v9 }
 0xa6f   : > { %2417 = vmatprep.subr.bf16.mxu0 %v5723_v38  ;;  %v5534_v38 = vld [vmem:[%s6845_s10 + $0x8] sm:$0xff]  }
 0xa79   : > { %5131 = vmatmul.mubr.msk.bf16.vlgmr.msra.gmra.mrb[28].mxu0 %vm1785_vm5, %v6075_v36 }
 0xa7a   : > { %2418 = vmatpush1.bf16.msra.mxu0 %v5725_v39  ;;  %2449 = vmatprep.mubr.bf16.mxu0 %v6849_v9  ;;  %v2840_v39 = vpop.xlane.xlu1 %2839 }
 0xa7b   : > { %5143 = vmatprep.subr.msk.bf16.mxu0 %vm591_vm0, %v5727_v40 }
 0xa7e   : > { %2420 = vmatpush1.bf16.msra.mxu0 %v5740_v44  ;;  %v2845_v44 = vmul.f32 0.00390625, %v2840_v39  ;;  %v503_v39 = vld [vmem:[%s6840_s5] sm:$0xff] }
 0xa7f   : > { %2498 = vmatprep.subr.bf16.mxu0 %v5717_v27  ;;  %v5535_v27 = vld [vmem:[%s6845_s10 + $0x10] sm:$0xff]  }
 0xa80   : > { %v2849_v33 = vsub.f32 %v6123_v25, %v2845_v44  ;;  %v2850_v35 = vsub.f32 %v6128_v30, %v2845_v44 }
 0xa81   : > { %5144 = vmatmul.mubr.msk.bf16.vlgmr.msra.gmra.mrb[32].mxu0 %vm581_vm1, %v5533_v32 }
 0xa82   : > { %2499 = vmatpush1.bf16.msra.mxu0 %v5715_v26  ;;  %2459 = vmatprep.mubr.bf16.mxu0 %v6849_v9  ;;  %v2837_v26 = vpop.xlane.xlu0 %2836 }
 0xa83   : > { %5149 = vmatprep.subr.msk.bf16.mxu0 %vm591_vm0, %v5712_v19  ;;  %v5536_v19 = vld [vmem:[%s6845_s10 + $0x18] sm:$0xff]   ;;  %v2844_v40 = vmul.f32 0.00390625, %v2837_v26 }
 0xa85   : > { %v2848_v36 = vsub.f32 %v6120_v24, %v2844_v40 }
 0xa86   : > { %2501 = vmatpush1.bf16.msra.mxu0 %v5759_v48  ;;  %v2847_v48 = vsub.f32 %v6117_v2, %v2844_v40  ;;  %v2843_v54 = vpop.xlane.xlu0 %2842 }
 0xa87   : > { %v2846_v55 = vmul.f32 0.00390625, %v2843_v54  ;;  %v6186_v59 = vpack.c.bf16 %v2850_v35, %v2848_v36 }
 0xa88   : > { %v6184_v58 = vpack.c.bf16 %v2849_v33, %v2847_v48 }
 0xa89   : > { %5145 = vmatmul.mubr.msk.bf16.gmra.mrb[36].mxu0 %vm581_vm1, %v5534_v38  ;;  %6859 = vst [vmem:[#allocation3_spill] sm:$0xff] %v6186_v59  ;;  %v2851_v2 = vsub.f32 %v6131_v31, %v2846_v55  ;;  %v2852_v24 = vsub.f32 %v6134_v18, %v2846_v55  ;;  %v2858_v25 = vunpack.c.l.bf16 %v6186_v59  ;;  %v2860_v11 = vunpack.c.h.bf16 %v6186_v59 }
 0xa8a   : > { %2469 = vmatprep.mubr.bf16.mxu0 %v6849_v9  ;;  %6858 = vst [vmem:[#allocation2_spill] sm:$0xff] %v6184_v58  ;;  %v2857_v0 = vunpack.c.l.bf16 %v6184_v58  ;;  %v2859_v30 = vunpack.c.h.bf16 %v6184_v58 }
 0xa8b   : > { %v2855_v8 = vpack.c.bf16 %v2851_v2, %v2851_v2  ;;  %v6197_v13 = vpack.c.bf16 %v2852_v24, %v2852_v24  ;;  %v2864_v12 = vsub.f32 %v2848_v36, %v2858_v25  ;;  %v2866_v23 = vsub.f32 %v2850_v35, %v2860_v11 }
 0xa8c   : > { %v2863_v18 = vsub.f32 %v2847_v48, %v2857_v0  ;;  %v2865_v47 = vsub.f32 %v2849_v33, %v2859_v30 }
 0xa8d   : > { %6860 = vst [vmem:[#allocation4_spill] sm:$0xff] %v6197_v13  ;;  %v2861_v14 = vunpack.c.l.bf16 %v2855_v8  ;;  %v2862_v31 = vunpack.c.l.bf16 %v6197_v13  ;;  %v6202_v15 = vpack.c.bf16 %v2866_v23, %v2864_v12  ;;  %v6237_v4 = vsel %vm591_vm0, %v2855_v8, 0 }
 0xa8e   : > { %v6205_v21 = vpack.c.bf16 %v2865_v47, %v2863_v18  ;;  %6861 = vst [vmem:[#allocation5_spill] sm:$0xff] %v6237_v4 }
 0xa8f   : > { %v2867_v46 = vsub.f32 %v2851_v2, %v2861_v14  ;;  %v2868_v41 = vsub.f32 %v2852_v24, %v2862_v31  ;;  %2879 = vmatprep.subr.bf16.mxu0 %v6202_v15 }
 0xa91   : > { %5146 = vmatmul.mubr.msk.bf16.gmra.mrb[40].mxu0 %vm581_vm1, %v5535_v27  ;;  %v2871_v43 = vpack.c.bf16 %v2867_v46, %v2867_v46  ;;  %v6207_v29 = vpack.c.bf16 %v2868_v41, %v2868_v41 }
 0xa92   : > { %2479 = vmatprep.mubr.bf16.mxu0 %v6849_v9 }
 0xa93   : > { %v6215_v50 = vsel %vm591_vm0, %v2871_v43, 0 }
 0xa99   : > { %5147 = vmatmul.mubr.msk.bf16.gmra.mrb[44].mxu0 %vm581_vm1, %v5536_v19 }
 0xa9a   : > { %2489 = vmatprep.mubr.bf16.mxu0 %v6849_v9 }
 0xaa1   : > { %5148 = vmatmul.mubr.msk.bf16.gmra.mrb[48].mxu0 %vm581_vm1, %v5537_v61 }
 0xaa2   : > { %2530 = vmatprep.mubr.bf16.mxu0 %v6849_v9 }
 0xaa9   : > { %5150 = vmatmul.mubr.msk.bf16.vlgmr.msra.gmra.mrb[32].mxu0 %vm581_vm1, %v5533_v32 }
 0xaaa   : > { %2540 = vmatprep.mubr.bf16.mxu0 %v6849_v9  ;;  %2880 = vmatpush1.bf16.msra.mxu0 %v6205_v21 }
 0xaab   : > { %5176 = vmatprep.subr.msk.bf16.mxu0 %vm591_vm0, %v6207_v29 }
 0xaae   : > { %2882 = vmatpush1.bf16.msra.mxu0 %v6215_v50 }
 0xaaf   : > { %2948 = vmatprep.subr.bf16.mxu0 %v6186_v59 }
 0xab1   : > { %5151 = vmatmul.mubr.msk.bf16.gmra.mrb[36].mxu0 %vm581_vm1, %v5534_v38 }
 0xab2   : > { %2550 = vmatprep.mubr.bf16.mxu0 %v6849_v9 }
 0xab9   : > { %5152 = vmatmul.mubr.msk.bf16.gmra.mrb[40].mxu0 %vm581_vm1, %v5535_v27 }
 0xaba   : > { %2560 = vmatprep.mubr.bf16.mxu0 %v6849_v9 }
 0xac1   : > { %5153 = vmatmul.mubr.msk.bf16.gmra.mrb[44].mxu0 %vm581_vm1, %v5536_v19 }
 0xac2   : > { %2570 = vmatprep.mubr.bf16.mxu0 %v6849_v9 }
 0xac9   : > { %5154 = vmatmul.mubr.msk.bf16.gmra.mrb[48].mxu0 %vm581_vm1, %v5537_v61 }
 0xaca   : > { %2911 = vmatprep.mubr.bf16.mxu0 %v6849_v9 }
 0xad1   : > { %5177 = vmatmul.mubr.msk.bf16.vlgmr.msra.gmra.mrb[52].mxu0 %vm581_vm1, %v5742_v45 }
 0xad2   : > { %2921 = vmatprep.mubr.bf16.mxu0 %v6849_v9  ;;  %2949 = vmatpush1.bf16.msra.mxu0 %v6184_v58 }
 0xad3   : > { %5180 = vmatprep.subr.msk.bf16.mxu0 %vm591_vm0, %v6197_v13 }
 0xad6   : > { %2951 = vmatpush1.bf16.msra.mxu0 %v6237_v4 }
 0xad7   : > { %3011 = vmatprep.subr.bf16.mxu0 %v6186_v59  ;;  %v6864_v59 = vmov 0  }
 0xad9   : > { %5178 = vmatmul.mubr.msk.bf16.gmra.mrb[56].mxu0 %vm581_vm1, %v5761_v49 }
 0xada   : > { %2931 = vmatprep.mubr.bf16.mxu0 %v6849_v9 }
 0xae1   : > { %5179 = vmatmul.mubr.msk.bf16.gmra.mrb[60].mxu0 %vm581_vm1, %v5774_v52 }
 0xae2   : > { %2980 = vmatprep.mubr.bf16.mxu0 %v6849_v9 }
 0xae9   : > { %5181 = vmatmul.mubr.msk.bf16.vlgmr.msra.gmra.mrb[52].mxu0 %vm581_vm1, %v5742_v45 }
 0xaea   : > { %2990 = vmatprep.mubr.bf16.mxu0 %v6849_v9  ;;  %3012 = vmatpush1.bf16.msra.mxu0 %v6184_v58  ;;  %v5538_v58 = vld [vmem:[%s6846_s11] sm:$0xff]  }
 0xaeb   : > { %5184 = vmatprep.subr.msk.bf16.mxu0 %vm591_vm0, %v6197_v13 }
 0xaee   : > { %3014 = vmatpush1.bf16.msra.mxu0 %v6237_v4 }
 0xaf1   : > { %5182 = vmatmul.mubr.msk.bf16.gmra.mrb[56].mxu0 %vm581_vm1, %v5761_v49 }
 0xaf2   : > { %3000 = vmatprep.mubr.bf16.mxu0 %v6849_v9 }
 0xaf9   : > { %5183 = vmatmul.mubr.msk.bf16.gmra.mrb[60].mxu0 %vm581_vm1, %v5774_v52 }
 0xafa   : > { %3043 = vmatprep.mubr.bf16.mxu0 %v6849_v9 }
 0xb01   : > { %5185 = vmatmul.mubr.msk.bf16.vlgmr.msra.gmra.mrb[52].mxu0 %vm581_vm1, %v5794_v57 }
 0xb02   : > { %3053 = vmatprep.mubr.bf16.mxu0 %v6849_v9 }
 0xb09   : > { %5186 = vmatmul.mubr.msk.bf16.gmra.mrb[56].mxu0 %vm581_vm1, %v5801_v62 }
 0xb0a   : > { %3063 = vmatprep.mubr.bf16.mxu0 %v6849_v9 }
 0xb11   : > { %5187 = vmatmul.mubr.msk.bf16.gmra.mrb[60].mxu0 %vm581_vm1, %v5808_v3 }
 0xb12   : > { %3610 = vmatprep.mubr.bf16.mxu0 %v6849_v9 }
 0xb4c   : > { %v2203_v45 = vpop.f32.mrb[28].mxu0 }
 0xb4d   : > { %v2210_v49 = vmul.f32 0.8, %v2203_v45  ;;  %v2205_v52 = vpop.f32.mrb[29].mxu0 }
 0xb4e   : > { %v2211_v6 = vmul.f32 0.8, %v2205_v52  ;;  %v2207_v51 = vpop.f32.mrb[30].mxu0 }
 0xb4f   : > { %v2212_v63 = vmul.f32 %v2210_v49, %v6009_v5  ;;  %v2208_v57 = vpop.f32.mrb[31].mxu0  ;;  %v504_v5 = vld [vmem:[%s6840_s5 + $0x8] sm:$0xff] }
 0xb50   : > { %v2213_v60 = vmul.f32 %v2211_v6, %v6014_v7 }
 0xb51   : > { %v2214_v56 = vsub.f32 %v6088_v1, %v2212_v63 }
 0xb52   : > { %v2215_v62 = vsub.f32 %v6091_v37, %v2213_v60  ;;  %v6278_v37 = vpack.c.bf16 %v504_v5, %v503_v39 }
 0xb53   : > { %v2216_v42 = vpack.c.bf16 %v2214_v56, %v2214_v56 }
 0xb54   : > { %v2217_v32 = vpack.c.bf16 %v2215_v62, %v2215_v62  ;;  %6862 = vst [vmem:[#allocation6_spill] sm:$0xff] %v6278_v37  ;;  %v506_v44 = vunpack.c.l.bf16 %v6278_v37  ;;  %v507_v48 = vunpack.c.h.bf16 %v6278_v37 }
 0xb55   : > { %v2218_v38 = vunpack.c.l.bf16 %v2216_v42  ;;  %v2277_v40 = vsel %vm1651_vm10, %v2216_v42, 0 }
 0xb56   : > { %v2219_v3 = vunpack.c.l.bf16 %v2217_v32  ;;  %v508_v36 = vsub.f32 %v503_v39, %v506_v44  ;;  %v509_v33 = vsub.f32 %v504_v5, %v507_v48 }
 0xb57   : > { %v2220_v27 = vsub.f32 %v2214_v56, %v2218_v38 }
 0xb58   : > { %v2221_v19 = vsub.f32 %v2215_v62, %v2219_v3  ;;  %v6291_v35 = vpack.c.bf16 %v509_v33, %v508_v36 }
 0xb59   : > { %v2222_v26 = vpack.c.bf16 %v2220_v27, %v2220_v27 }
 0xb5a   : > { %v2223_v7 = vpack.c.bf16 %v2221_v19, %v2221_v19  ;;  %6863 = vst [vmem:[#allocation7_spill] sm:$0xff] %v6291_v35 }
 0xb5b   : > { %v2228_v1 = vsel %vm1651_vm10, %v2222_v26, 0 }
 0xb5c   : > { %5132 = vmatprep.subr.msk.bf16.mxu1 %vm1651_vm10, %v2223_v7 }
 0xb5d   : > { %2234 = vmatpush1.bf16.msra.mxu1 %v2228_v1 }
 0xb5e   : > { %5134 = vmatprep.subr.msk.bf16.mxu1 %vm1651_vm10, %v2217_v32 }
 0xb60   : > { %5133 = vmatmul.mubr.msk.bf16.vlgmr.msra.gmra.mrb[40].mxu1 %vm1647_vm11, %v6278_v37 }
 0xb61   : > { %2283 = vmatpush1.bf16.msra.mxu1 %v2277_v40  ;;  %2314 = vmatprep.mubr.bf16.mxu1 %v6849_v9 }
 0xb62   : > { %5136 = vmatprep.subr.msk.bf16.mxu1 %vm1651_vm10, %v2217_v32 }
 0xb6c   : > { %5135 = vmatmul.mubr.msk.bf16.vlgmr.msra.gmra.mrb[40].mxu1 %vm1647_vm11, %v6278_v37 }
 0xb6d   : > { %2329 = vmatpush1.bf16.msra.mxu1 %v2277_v40  ;;  %2360 = vmatprep.mubr.bf16.mxu1 %v6849_v9 }
 0xb78   : > { %5137 = vmatmul.mubr.msk.bf16.vlgmr.msra.gmra.mrb[40].mxu1 %vm1647_vm11, %v6291_v35 }
 0xb79   : > { %2662 = vmatprep.mubr.bf16.mxu1 %v6849_v9 }
 0xb7c   : > { %v6296_v54 = vpop.f32.mrb[32].mxu0 }
 0xb7d   : > { %v6298_v55 = vpop.f32.mrb[33].mxu0 }
 0xb7e   : > { %v6300_v61 = vpop.f32.mrb[34].mxu0 }
 0xb7f   : > { %v6302_v2 = vpop.f32.mrb[35].mxu0 }
 0xb84   : > { %v6304_v24 = vpop.f32.mrb[36].mxu0 }
 0xb85   : > { %v6306_v0 = vpop.f32.mrb[37].mxu0 }
 0xb86   : > { %v6308_v25 = vpop.f32.mrb[38].mxu0 }
 0xb87   : > { %v6310_v30 = vpop.f32.mrb[39].mxu0 }
 0xb8c   : > { %v6312_v11 = vpop.f32.mrb[40].mxu0 }
 0xb8d   : > { %v6314_v8 = vpop.f32.mrb[41].mxu0 }
 0xb8e   : > { %v6316_v12 = vpop.f32.mrb[42].mxu0 }
 0xb8f   : > { %v6318_v23 = vpop.f32.mrb[43].mxu0 }
 0xb94   : > { %v6320_v14 = vpop.f32.mrb[44].mxu0 }
 0xb95   : > { %v6322_v31 = vpop.f32.mrb[45].mxu0 }
 0xb96   : > { %v6324_v18 = vpop.f32.mrb[46].mxu0 }
 0xb97   : > { %v6326_v47 = vpop.f32.mrb[47].mxu0 }
 0xb9c   : > { %v6328_v46 = vpop.f32.mrb[48].mxu0 }
 0xb9d   : > { %v6330_v41 = vpop.f32.mrb[49].mxu0 }
 0xb9e   : > { %v2576_v43 = vpop.f32.mrb[50].mxu0 }
 0xb9f   : > { %v2577_v45 = vpop.f32.mrb[51].mxu0 }
 0xbd4   : > { %v6332_v49 = vpop.f32.mrb[52].mxu0 }
 0xbd5   : > { %v3086_v52 = vmul.f32 %v6332_v49, %v6332_v49  ;;  %v6336_v6 = vpop.f32.mrb[53].mxu0 }
 0xbd6   : > { %v3087_v51 = vmul.f32 %v6336_v6, %v6336_v6  ;;  %v6340_v63 = vpop.f32.mrb[54].mxu0 }
 0xbd7   : > { %v3088_v57 = vmul.f32 %v6340_v63, %v6340_v63  ;;  %v6344_v60 = vpop.f32.mrb[55].mxu0 }
 0xbd8   : > { %v3089_v56 = vmul.f32 %v6344_v60, %v6344_v60 }
 0xbd9   : > { %v6348_v62 = vpack.c.bf16 %v3088_v57, %v3086_v52 }
 0xbda   : > { %v6350_v42 = vpack.c.bf16 %v3089_v56, %v3087_v51 }
 0xbdb   : > { %v3094_v32 = vunpack.c.h.bf16 %v6348_v62 }
 0xbdc   : > { %v3093_v38 = vunpack.c.l.bf16 %v6350_v42  ;;  %v3095_v3 = vunpack.c.h.bf16 %v6350_v42  ;;  %v3055_v27 = vpop.f32.mrb[56].mxu0 }
 0xbdd   : > { %v6355_v19 = vsub.f32 %v3088_v57, %v3094_v32  ;;  %v3057_v26 = vpop.f32.mrb[57].mxu0 }
 0xbde   : > { %v3097_v39 = vsub.f32 %v3087_v51, %v3093_v38  ;;  %v3099_v5 = vsub.f32 %v3089_v56, %v3095_v3  ;;  %v3059_v7 = vpop.f32.mrb[58].mxu0  ;;  %v3092_v56 = vunpack.c.l.bf16 %v6348_v62 }
 0xbdf   : > { %v3061_v1 = vpop.f32.mrb[59].mxu0 }
 0xbe0   : > { %v3101_v40 = vpack.c.bf16 %v3099_v5, %v3097_v39  ;;  %v3096_v32 = vsub.f32 %v3086_v52, %v3092_v56 }
 0xbe2   : > { %v3100_v38 = vpack.c.bf16 %v6355_v19, %v3096_v32 }
 0xbe4   : > { %v6357_v44 = vpop.f32.mrb[60].mxu0 }
 0xbe5   : > { %v6360_v48 = vsub.f32 %v3055_v27, %v6357_v44  ;;  %v6362_v36 = vpop.f32.mrb[61].mxu0 }
 0xbe6   : > { %v6365_v33 = vsub.f32 %v3057_v26, %v6362_v36  ;;  %v6367_v43 = vpop.f32.mrb[62].mxu0 }
 0xbe7   : > { %v6370_v45 = vsub.f32 %v3059_v7, %v6367_v43  ;;  %v6372_v51 = vpop.f32.mrb[63].mxu0 }
 0xbe8   : > { %v6375_v57 = vsub.f32 %v3061_v1, %v6372_v51 }
 0xc4b   : > { %v2362_v3 = vpop.f32.mrb[40].mxu1 }
 0xc4c   : > { %2375 = vst [vmem:[%s6383_s21] sm:$0xff] %v2362_v3  ;;  %v2364_v27 = vpop.f32.mrb[41].mxu1 }
 0xc4d   : > { %2376 = vst [vmem:[%s6383_s21 + $0x8] sm:$0xff] %v2364_v27  ;;  %v2366_v26 = vpop.f32.mrb[42].mxu1 }
 0xc4e   : > { %2377 = vst [vmem:[%s6383_s21 + $0x10] sm:$0xff] %v2366_v26  ;;  %v2579_v39 = vpack.c.bf16 %v2366_v26, %v2362_v3  ;;  %v2368_v52 = vpop.f32.mrb[43].mxu1 }
 0xc4f   : > { %2378 = vst [vmem:[%s6383_s21 + $0x18] sm:$0xff] %v2368_v52  ;;  %v2580_v19 = vpack.c.bf16 %v2368_v52, %v2364_v27 }
 0xc50   : > { %v2581_v5 = vunpack.c.l.bf16 %v2579_v39  ;;  %v2583_v7 = vunpack.c.h.bf16 %v2579_v39 }
 0xc51   : > { %v2584_v1 = vunpack.c.h.bf16 %v2580_v19  ;;  %v2582_v56 = vunpack.c.l.bf16 %v2580_v19 }
 0xc52   : > { %v2585_v32 = vsub.f32 %v2362_v3, %v2581_v5  ;;  %v2587_v9 = vsub.f32 %v2366_v26, %v2583_v7 }
 0xc53   : > { %v2588_v35 = vsub.f32 %v2368_v52, %v2584_v1  ;;  %v2586_v37 = vsub.f32 %v2364_v27, %v2582_v56 }
 0xc54   : > { %v2589_v4 = vpack.c.bf16 %v2587_v9, %v2585_v32  ;;  %v5539_v9 = vld [vmem:[%s6846_s11 + $0x8] sm:$0xff]  }
 0xc55   : > { %v2590_v13 = vpack.c.bf16 %v2588_v35, %v2586_v37  ;;  %v5542_v37 = vld [vmem:[%s6846_s11 + $0x20] ss:$0 sps:$4 sm:$0xff]   ;;  %v3103_v35 = vsel %vm834_vm2, %v3100_v38, 0 }
 0xc57   : > { %2630 = vmatprep.subr.bf16.mxu1 %v2590_v13  ;;  %v5540_v13 = vld [vmem:[%s6846_s11 + $0x10] sm:$0xff]  }
 0xc58   : > { %2631 = vmatpush1.bf16.msra.mxu1 %v2589_v4  ;;  %v5541_v4 = vld [vmem:[%s6846_s11 + $0x18] sm:$0xff]  }
 0xc59   : > { %2711 = vmatprep.subr.bf16.mxu1 %v2580_v19 }
 0xc5b   : > { %5160 = vmatmul.mubr.msk.bf16.vlgmr.msra.gmra.mrb[44].mxu1 %vm2614_vm6, %v5538_v58 }
 0xc5c   : > { %2712 = vmatpush1.bf16.msra.mxu1 %v2579_v39  ;;  %2672 = vmatprep.mubr.bf16.mxu1 %v6864_v59 }
 0xc5d   : > { %5188 = vmatprep.subr.msk.bf16.mxu1 %vm834_vm2, %v3101_v40 }
 0xc63   : > { %5161 = vmatmul.mubr.msk.bf16.gmra.mrb[48].mxu1 %vm2614_vm6, %v5539_v9 }
 0xc64   : > { %2682 = vmatprep.mubr.bf16.mxu1 %v6864_v59 }
 0xc6b   : > { %5162 = vmatmul.mubr.msk.bf16.gmra.mrb[52].mxu1 %vm2614_vm6, %v5540_v13 }
 0xc6c   : > { %2692 = vmatprep.mubr.bf16.mxu1 %v6864_v59 }
 0xc73   : > { %5163 = vmatmul.mubr.msk.bf16.gmra.mrb[56].mxu1 %vm2614_vm6, %v5541_v4 }
 0xc74   : > { %2702 = vmatprep.mubr.bf16.mxu1 %v6864_v59 }
 0xc7b   : > { %5164 = vmatmul.mubr.msk.bf16.gmra.mrb[60].mxu1 %vm2614_vm6, %v5542_v37 }
 0xc7c   : > { %2743 = vmatprep.mubr.bf16.mxu1 %v6864_v59 }
 0xc83   : > { %5165 = vmatmul.mubr.msk.bf16.vlgmr.msra.gmra.mrb[44].mxu1 %vm2614_vm6, %v5538_v58  ;;  %v6431_v58 = vld [vmem:[%s6841_s6] sm:$0x3] }
 0xc84   : > { %3109 = vmatpush1.bf16.msra.mxu1 %v3103_v35  ;;  %2753 = vmatprep.mubr.bf16.mxu1 %v6864_v59 }
 0xc85   : > { %5190 = vmatprep.subr.msk.bf16.mxu1 %vm834_vm2, %v6350_v42  ;;  %v3150_v42 = vsel %vm834_vm2, %v6348_v62, 0 }
 0xc8b   : > { %5166 = vmatmul.mubr.msk.bf16.gmra.mrb[48].mxu1 %vm2614_vm6, %v5539_v9 }
 0xc8c   : > { %2763 = vmatprep.mubr.bf16.mxu1 %v6864_v59 }
 0xc93   : > { %5167 = vmatmul.mubr.msk.bf16.gmra.mrb[52].mxu1 %vm2614_vm6, %v5540_v13 }
 0xc94   : > { %2773 = vmatprep.mubr.bf16.mxu1 %v6864_v59 }
 0xc9b   : > { %5168 = vmatmul.mubr.msk.bf16.gmra.mrb[56].mxu1 %vm2614_vm6, %v5541_v4 }
 0xc9c   : > { %2783 = vmatprep.mubr.bf16.mxu1 %v6864_v59 }
 0xca3   : > { %5169 = vmatmul.mubr.msk.bf16.gmra.mrb[60].mxu1 %vm2614_vm6, %v5542_v37 }
 0xca4   : > { %3140 = vmatprep.mubr.bf16.mxu1 %v6864_v59 }
 0xcab   : > { %5189 = vmatmul.mubr.msk.bf16.vlgmr.msra.gmra.mrb[64].mxu1 %vm830_vm3, %v6431_v58 }
 0xcac   : > { %3156 = vmatpush1.bf16.msra.mxu1 %v3150_v42  ;;  %3187 = vmatprep.mubr.bf16.mxu1 %v6864_v59 }
 0xcb7   : > { %5191 = vmatmul.mubr.msk.bf16.vlgmr.msra.gmra.mrb[64].mxu1 %vm830_vm3, %v6431_v58 }
 0xcb8   : > { %3264 = vmatprep.mubr.bf16.mxu1 %v6864_v59 }
 0xd56   : > { %v2745_v40 = vpop.f32.mrb[44].mxu1 }
 0xd57   : > { %v2792_v38 = vmul.f32 %v2745_v40, %v6296_v54  ;;  %v2747_v3 = vpop.f32.mrb[45].mxu1 }
 0xd58   : > { %v2793_v27 = vmul.f32 %v2747_v3, %v6298_v55  ;;  %v2749_v26 = vpop.f32.mrb[46].mxu1 }
 0xd59   : > { %v2794_v39 = vmul.f32 %v2749_v26, %v6300_v61  ;;  %v2751_v52 = vpop.f32.mrb[47].mxu1 }
 0xd5a   : > { %v2795_v62 = vmul.f32 %v2751_v52, %v6302_v2 }
 0xd5e   : > { %v2755_v19 = vpop.f32.mrb[48].mxu1 }
 0xd5f   : > { %v2796_v5 = vmul.f32 %v2755_v19, %v6304_v24  ;;  %v2757_v7 = vpop.f32.mrb[49].mxu1 }
 0xd60   : > { %v2797_v1 = vmul.f32 %v2757_v7, %v6306_v0  ;;  %v2759_v56 = vpop.f32.mrb[50].mxu1 }
 0xd61   : > { %v2798_v32 = vmul.f32 %v2759_v56, %v6308_v25  ;;  %v2761_v9 = vpop.f32.mrb[51].mxu1 }
 0xd62   : > { %v2799_v54 = vmul.f32 %v2761_v9, %v6310_v30 }
 0xd63   : > { %v2804_v13 = vadd.f32 %v2798_v32, %v2792_v38 }
 0xd64   : > { %v2805_v55 = vadd.f32 %v2799_v54, %v2793_v27 }
 0xd66   : > { %v2765_v4 = vpop.f32.mrb[52].mxu1 }
 0xd67   : > { %v2800_v61 = vmul.f32 %v2765_v4, %v6312_v11  ;;  %v2767_v37 = vpop.f32.mrb[53].mxu1 }
 0xd68   : > { %v2801_v2 = vmul.f32 %v2767_v37, %v6314_v8  ;;  %v2769_v35 = vpop.f32.mrb[54].mxu1 }
 0xd69   : > { %v2806_v24 = vadd.f32 %v2800_v61, %v2794_v39  ;;  %v2802_v42 = vmul.f32 %v2769_v35, %v6316_v12  ;;  %v2771_v0 = vpop.f32.mrb[55].mxu1 }
 0xd6a   : > { %v2807_v40 = vadd.f32 %v2801_v2, %v2795_v62  ;;  %v2803_v25 = vmul.f32 %v2771_v0, %v6318_v23 }
 0xd6b   : > { %v2808_v3 = vadd.f32 %v2802_v42, %v2796_v5 }
 0xd6c   : > { %v2809_v26 = vadd.f32 %v2803_v25, %v2797_v1 }
 0xd6e   : > { %v2775_v30 = vpop.f32.mrb[56].mxu1 }
 0xd6f   : > { %v2810_v38 = vmul.f32 %v2775_v30, %v6320_v14  ;;  %v2777_v27 = vpop.f32.mrb[57].mxu1 }
 0xd70   : > { %v2811_v11 = vmul.f32 %v2777_v27, %v6322_v31  ;;  %v2779_v8 = vpop.f32.mrb[58].mxu1 }
 0xd71   : > { %v2816_v12 = vadd.f32 %v2810_v38, %v2804_v13  ;;  %v2812_v23 = vmul.f32 %v2779_v8, %v6324_v18  ;;  %v2781_v39 = vpop.f32.mrb[59].mxu1 }
 0xd72   : > { %v2817_v52 = vadd.f32 %v2811_v11, %v2805_v55  ;;  %v2813_v14 = vmul.f32 %v2781_v39, %v6326_v47 }
 0xd73   : > { %2822 = vst [vmem:[%s6459_s23] sm:$0xff] %v2816_v12  ;;  %v2818_v62 = vadd.f32 %v2812_v23, %v2806_v24 }
 0xd74   : > { %2823 = vst [vmem:[%s6459_s23 + $0x8] sm:$0xff] %v2817_v52  ;;  %v2819_v19 = vadd.f32 %v2813_v14, %v2807_v40 }
 0xd75   : > { %2824 = vst [vmem:[%s6459_s23 + $0x10] sm:$0xff] %v2818_v62 }
 0xd76   : > { %2825 = vst [vmem:[%s6459_s23 + $0x18] sm:$0xff] %v2819_v19  ;;  %v2785_v5 = vpop.f32.mrb[60].mxu1 }
 0xd77   : > { %v2814_v7 = vmul.f32 %v2785_v5, %v6328_v46  ;;  %v2787_v31 = vpop.f32.mrb[61].mxu1 }
 0xd78   : > { %v2815_v1 = vmul.f32 %v2787_v31, %v6330_v41  ;;  %v2789_v56 = vpop.f32.mrb[62].mxu1 }
 0xd79   : > { %v2820_v18 = vadd.f32 %v2814_v7, %v2808_v3  ;;  %v2790_v32 = vpop.f32.mrb[63].mxu1 }
 0xd7a   : > { %v2821_v9 = vadd.f32 %v2815_v1, %v2809_v26 }
 0xd7b   : > { %2826 = vst [vmem:[%s6459_s23 + $0x20] sm:$0xff] %v2820_v18 }
 0xd7c   : > { %2827 = vst [vmem:[%s6459_s23 + $0x28] sm:$0xff] %v2821_v9 }
 0xd8a   : > { %v3189_v47 = vpop.f32.mrb[64].mxu1 }
 0xd8b   : > { %5567 = vrsqrt.f32 %v3189_v47  ;;  %v3191_v54 = vpop.f32.mrb[65].mxu1  ;;  %vm3198_vm7 = vcmp.eq.f32.partialorder %v3189_v47, inf  ;;  %v3201_v46 = vand.u32 2147483648, %v3189_v47  ;;  %vm3200_vm12 = vcmp.eq.f32.partialorder %v3189_v47, 0.0 }
 0xd8c   : > { %5569 = vrsqrt.f32 %v3191_v54  ;;  %v3193_v13 = vpop.f32.mrb[66].mxu1  ;;  %vm3205_vm13 = vcmp.eq.f32.partialorder %v3191_v54, inf  ;;  %v3208_v41 = vand.u32 2147483648, %v3191_v54  ;;  %vm3207_vm14 = vcmp.eq.f32.partialorder %v3191_v54, 0.0 }
 0xd8d   : > { %v3194_v55 = vpop.f32.mrb[67].mxu1 }
 0xd8e   : > { %v3449_v55 = vmul.f32 %v6375_v57, %v6375_v57 }
 0xd95   : > { %v5568_v4 = vpop.eup %5567 }
 0xd96   : > { %v5570_v61 = vpop.eup %5569  ;;  %v3197_v37 = vmul.f32 %v5568_v4, %v3189_v47 }
 0xd97   : > { %v3204_v2 = vmul.f32 %v5570_v61, %v3191_v54 }
 0xd98   : > { %v3199_v35 = vsel %vm3198_vm7, %v3189_v47, %v3197_v37 }
 0xd99   : > { %v3202_v24 = vsel %vm3200_vm12, %v3201_v46, %v3199_v35  ;;  %v3206_v42 = vsel %vm3205_vm13, %v3191_v54, %v3204_v2 }
 0xd9a   : > { %v3210_v0 = vadd.f32 1e-06, %v3202_v24  ;;  %v3209_v40 = vsel %vm3207_vm14, %v3208_v41, %v3206_v42  ;;  %v3446_v24 = vmul.f32 %v6360_v48, %v6360_v48 }
 0xd9b   : > { %v3211_v25 = vadd.f32 1e-06, %v3209_v40 }
 0xd9c   : > { %5571 = vrcp.f32 %v3210_v0 }
 0xd9d   : > { %5573 = vrcp.f32 %v3211_v25 }
 0xda6   : > { %v5572_v3 = vpop.eup %5571 }
 0xda7   : > { %v5574_v26 = vpop.eup %5573  ;;  %v3214_v30 = vmul.f32 %v5572_v3, %v5868_v20 }
 0xda8   : > { %v3215_v38 = vmul.f32 %v5574_v26, %v5868_v20  ;;  %v6482_v20 = vld [vmem:[%s6842_s7] sm:$0x3f]  }
 0xda9   : > { %v3216_v27 = vadd.f32 %v3214_v30, %v5870_v22 }
 0xdaa   : > { %v3217_v11 = vadd.f32 %v3215_v38, %v5870_v22 }
 0xdab   : > { %v3218_v8 = vpack.c.bf16 %v3216_v27, %v3216_v27 }
 0xdac   : > { %v3219_v12 = vpack.c.bf16 %v3217_v11, %v3217_v11 }
 0xdad   : > { %v3220_v23 = vunpack.c.l.bf16 %v3218_v8  ;;  %v3276_v22 = vsel %vm977_vm8, %v3218_v8, 0 }
 0xdae   : > { %v3221_v39 = vunpack.c.l.bf16 %v3219_v12 }
 0xdaf   : > { %v3222_v52 = vsub.f32 %v3216_v27, %v3220_v23 }
 0xdb0   : > { %v3223_v14 = vsub.f32 %v3217_v11, %v3221_v39 }
 0xdb1   : > { %v3224_v62 = vpack.c.bf16 %v3222_v52, %v3222_v52 }
 0xdb2   : > { %v3225_v19 = vpack.c.bf16 %v3223_v14, %v3223_v14 }
 0xdb3   : > { %v3227_v5 = vsel %vm977_vm8, %v3224_v62, 0 }
 0xdb4   : > { %5192 = vmatprep.subr.msk.bf16.mxu1 %vm977_vm8, %v3225_v19 }
 0xdb5   : > { %3233 = vmatpush1.bf16.msra.mxu1 %v3227_v5 }
 0xdb6   : > { %5194 = vmatprep.subr.msk.bf16.mxu1 %vm977_vm8, %v3219_v12 }
 0xdb8   : > { %5193 = vmatmul.mubr.msk.bf16.vlgmr.msra.gmra.mrb[68].mxu1 %vm973_vm9, %v6482_v20 }
 0xdb9   : > { %3282 = vmatpush1.bf16.msra.mxu1 %v3276_v22  ;;  %3313 = vmatprep.mubr.bf16.mxu1 %v6864_v59 }
 0xdc4   : > { %5195 = vmatmul.mubr.msk.bf16.vlgmr.msra.gmra.mrb[68].mxu1 %vm973_vm9, %v6482_v20 }
 0xdc5   : > { %3390 = vmatprep.mubr.bf16.mxu1 %v6864_v59 }
 0xe97   : > { %v3315_v7 = vpop.f32.mrb[68].mxu1 }
 0xe98   : > { %v6492_v31 = vmul.f32 %v3315_v7, %v6332_v49  ;;  %v3317_v1 = vpop.f32.mrb[69].mxu1 }
 0xe99   : > { %v6495_v56 = vmul.f32 %v3317_v1, %v6336_v6  ;;  %v3319_v18 = vpop.f32.mrb[70].mxu1  ;;  %v3447_v6 = vmul.f32 %v6365_v33, %v6365_v33 }
 0xe9a   : > { %v3332_v32 = vsub.f32 %v6492_v31, %v6357_v44  ;;  %v6500_v9 = vmul.f32 %v3319_v18, %v6340_v63  ;;  %v3321_v47 = vpop.f32.mrb[71].mxu1 }
 0xe9b   : > { %v3333_v54 = vsub.f32 %v6495_v56, %v6362_v36  ;;  %v6505_v13 = vmul.f32 %v3321_v47, %v6344_v60  ;;  %v3451_v37 = vpack.c.bf16 %v3449_v55, %v3447_v6 }
 0xe9c   : > { %v3334_v49 = vsub.f32 %v6500_v9, %v6367_v43  ;;  %v3336_v44 = vmul.f32 %v3332_v32, %v6360_v48 }
 0xe9d   : > { %v3335_v63 = vsub.f32 %v6505_v13, %v6372_v51  ;;  %v3337_v36 = vmul.f32 %v3333_v54, %v6365_v33  ;;  %v3448_v51 = vmul.f32 %v6370_v45, %v6370_v45  ;;  %v3455_v40 = vunpack.c.h.bf16 %v3451_v37 }
 0xe9e   : > { %v3338_v4 = vmul.f32 %v3334_v49, %v6370_v45  ;;  %v3453_v26 = vunpack.c.l.bf16 %v3451_v37 }
 0xe9f   : > { %v3339_v60 = vmul.f32 %v3335_v63, %v6375_v57  ;;  %v3450_v11 = vpack.c.bf16 %v3448_v51, %v3446_v24  ;;  %v3459_v8 = vsub.f32 %v3449_v55, %v3455_v40 }
 0xea0   : > { %v3340_v61 = vpack.c.bf16 %v3338_v4, %v3336_v44  ;;  %v3457_v12 = vsub.f32 %v3447_v6, %v3453_v26 }
 0xea1   : > { %v3341_v43 = vpack.c.bf16 %v3339_v60, %v3337_v36  ;;  %v3452_v52 = vunpack.c.l.bf16 %v3450_v11  ;;  %v3454_v14 = vunpack.c.h.bf16 %v3450_v11  ;;  %v3510_v7 = vsel %vm834_vm2, %v3450_v11, 0 }
 0xea2   : > { %v3344_v46 = vunpack.c.h.bf16 %v3340_v61  ;;  %v3342_v2 = vunpack.c.l.bf16 %v3340_v61  ;;  %v3400_v23 = vsel %vm834_vm2, %v3340_v61, 0  ;;  %v3461_v39 = vpack.c.bf16 %v3459_v8, %v3457_v12 }
 0xea3   : > { %v3343_v35 = vunpack.c.l.bf16 %v3341_v43  ;;  %v3345_v41 = vunpack.c.h.bf16 %v3341_v43  ;;  %v3456_v62 = vsub.f32 %v3446_v24, %v3452_v52  ;;  %v3458_v19 = vsub.f32 %v3448_v51, %v3454_v14 }
 0xea4   : > { %v3348_v42 = vsub.f32 %v3338_v4, %v3344_v46  ;;  %v3346_v0 = vsub.f32 %v3336_v44, %v3342_v2 }
 0xea5   : > { %v3349_v25 = vsub.f32 %v3339_v60, %v3345_v41  ;;  %v3347_v3 = vsub.f32 %v3337_v36, %v3343_v35  ;;  %v3460_v5 = vpack.c.bf16 %v3458_v19, %v3456_v62 }
 0xea6   : > { %v3350_v30 = vpack.c.bf16 %v3348_v42, %v3346_v0 }
 0xea7   : > { %v3351_v38 = vpack.c.bf16 %v3349_v25, %v3347_v3  ;;  %v3463_v22 = vsel %vm834_vm2, %v3460_v5, 0 }
 0xea8   : > { %v3353_v27 = vsel %vm834_vm2, %v3350_v30, 0 }
 0xea9   : > { %5196 = vmatprep.subr.msk.bf16.mxu1 %vm834_vm2, %v3351_v38 }
 0xeaa   : > { %3359 = vmatpush1.bf16.msra.mxu1 %v3353_v27 }
 0xeab   : > { %5198 = vmatprep.subr.msk.bf16.mxu1 %vm834_vm2, %v3341_v43 }
 0xead   : > { %5197 = vmatmul.mubr.msk.bf16.vlgmr.msra.gmra.mrb[72].mxu1 %vm830_vm3, %v6431_v58 }
 0xeae   : > { %3406 = vmatpush1.bf16.msra.mxu1 %v3400_v23  ;;  %3437 = vmatprep.mubr.bf16.mxu1 %v6864_v59 }
 0xeaf   : > { %5200 = vmatprep.subr.msk.bf16.mxu1 %vm834_vm2, %v3461_v39 }
 0xeb9   : > { %5199 = vmatmul.mubr.msk.bf16.vlgmr.msra.gmra.mrb[72].mxu1 %vm830_vm3, %v6431_v58 }
 0xeba   : > { %3469 = vmatpush1.bf16.msra.mxu1 %v3463_v22  ;;  %3500 = vmatprep.mubr.bf16.mxu1 %v6864_v59 }
 0xebb   : > { %5202 = vmatprep.subr.msk.bf16.mxu1 %vm834_vm2, %v3451_v37 }
 0xec1   : > { %5201 = vmatmul.mubr.msk.bf16.vlgmr.msra.gmra.mrb[76].mxu1 %vm830_vm3, %v6431_v58 }
 0xec2   : > { %3516 = vmatpush1.bf16.msra.mxu1 %v3510_v7  ;;  %3547 = vmatprep.mubr.bf16.mxu1 %v6864_v59 }
 0xec9   : > { %5203 = vmatmul.mubr.msk.bf16.vlgmr.msra.gmra.mrb[80].mxu1 %vm830_vm3, %v6431_v58 }
 0xeca   : > { %3732 = vmatprep.mubr.bf16.mxu1 %v6864_v59 }
 0xf8c   : > { %v3439_v1 = vpop.f32.mrb[72].mxu1 }
 0xf8d   : > { %v3441_v18 = vpop.f32.mrb[73].mxu1  ;;  %v3556_v58 = vmin.f32 %v3439_v1, 0.0 }
 0xf8e   : > { %v3443_v32 = vpop.f32.mrb[74].mxu1  ;;  %v3557_v2 = vmin.f32 %v3441_v18, 0.0 }
 0xf8f   : > { %v3444_v47 = vpop.f32.mrb[75].mxu1 }
 0xf94   : > { %v3502_v54 = vpop.f32.mrb[76].mxu1 }
 0xf95   : > { %v3504_v49 = vpop.f32.mrb[77].mxu1 }
 0xf96   : > { %v3506_v6 = vpop.f32.mrb[78].mxu1 }
 0xf97   : > { %v3507_v55 = vpop.f32.mrb[79].mxu1 }
 0xf9c   : > { %v3549_v63 = vpop.f32.mrb[80].mxu1 }
 0xf9d   : > { %v3550_v44 = vadd.f32 %v3549_v63, %v3502_v54  ;;  %v3551_v4 = vpop.f32.mrb[81].mxu1 }
 0xf9e   : > { %v3552_v36 = vadd.f32 %v3551_v4, %v3504_v49  ;;  %v3553_v60 = vpop.f32.mrb[82].mxu1 }
 0xf9f   : > { %v3558_v61 = vadd.f32 1e-06, %v3550_v44  ;;  %v3554_v37 = vpop.f32.mrb[83].mxu1 }
 0xfa0   : > { %v3559_v43 = vadd.f32 1e-06, %v3552_v36 }
 0xfa1   : > { %5575 = vrcp.f32 %v3558_v61 }
 0xfa2   : > { %5577 = vrcp.f32 %v3559_v43 }
 0xfab   : > { %v5576_v46 = vpop.eup %5575 }
 0xfac   : > { %v5578_v35 = vpop.eup %5577  ;;  %v3562_v41 = vmul.f32 %v5576_v46, %v3556_v58 }
 0xfad   : > { %v3563_v24 = vmul.f32 %v5578_v35, %v3557_v2 }
 0xfae   : > { %v3564_v51 = vpack.c.bf16 %v3562_v41, %v3562_v41 }
 0xfaf   : > { %v3565_v42 = vpack.c.bf16 %v3563_v24, %v3563_v24 }
 0xfb0   : > { %v3566_v0 = vunpack.c.l.bf16 %v3564_v51  ;;  %v3622_v27 = vsel %vm977_vm8, %v3564_v51, 0 }
 0xfb1   : > { %v3567_v40 = vunpack.c.l.bf16 %v3565_v42 }
 0xfb2   : > { %v3568_v25 = vsub.f32 %v3562_v41, %v3566_v0 }
 0xfb3   : > { %v3569_v3 = vsub.f32 %v3563_v24, %v3567_v40 }
 0xfb4   : > { %v3570_v26 = vpack.c.bf16 %v3568_v25, %v3568_v25 }
 0xfb5   : > { %v3571_v30 = vpack.c.bf16 %v3569_v3, %v3569_v3 }
 0xfb6   : > { %v3573_v38 = vsel %vm977_vm8, %v3570_v26, 0 }
 0xfb7   : > { %5204 = vmatprep.subr.msk.bf16.mxu0 %vm977_vm8, %v3571_v30  ;;  %v6606_v30 = vld [vmem:[%s6843_s8] sm:$0x1] }
 0xfb8   : > { %3579 = vmatpush1.bf16.msra.mxu0 %v3573_v38 }
 0xfb9   : > { %5206 = vmatprep.subr.msk.bf16.mxu0 %vm977_vm8, %v3565_v42 }
 0xfbb   : > { %5205 = vmatmul.mubr.msk.bf16.vlgmr.msra.gmra.mrb[64].mxu0 %vm973_vm9, %v6482_v20 }
 0xfbc   : > { %3628 = vmatpush1.bf16.msra.mxu0 %v3622_v27  ;;  %3659 = vmatprep.mubr.bf16.mxu0 %v6864_v59 }
 0xfc7   : > { %5207 = vmatmul.mubr.msk.bf16.vlgmr.msra.gmra.mrb[64].mxu0 %vm973_vm9, %v6482_v20 }
 0xfc8   : > { %3921 = vmatprep.mubr.bf16.mxu0 %v6864_v59 }
0x109a   : > { %v3661_v11 = vpop.f32.mrb[64].mxu0 }
0x109b   : > { %v3670_v8 = vmul.f32 0.8, %v3661_v11  ;;  %v3663_v12 = vpop.f32.mrb[65].mxu0 }
0x109c   : > { %v3671_v23 = vmul.f32 0.8, %v3663_v12  ;;  %v3665_v39 = vpop.f32.mrb[66].mxu0 }
0x109d   : > { %v3674_v52 = vmul.f32 %v3670_v8, %v6360_v48  ;;  %v3672_v14 = vmul.f32 0.8, %v3665_v39  ;;  %v3667_v62 = vpop.f32.mrb[67].mxu0 }
0x109e   : > { %v3675_v19 = vmul.f32 %v3671_v23, %v6365_v33  ;;  %v3673_v5 = vmul.f32 0.8, %v3667_v62 }
0x109f   : > { %v3676_v22 = vmul.f32 %v3672_v14, %v6370_v45  ;;  %v3678_v20 = vsub.f32 %v6492_v31, %v3674_v52 }
0x10a0   : > { %v3677_v7 = vmul.f32 %v3673_v5, %v6375_v57  ;;  %v3679_v18 = vsub.f32 %v6495_v56, %v3675_v19 }
0x10a1   : > { %v3680_v1 = vsub.f32 %v6500_v9, %v3676_v22 }
0x10a2   : > { %v3681_v32 = vsub.f32 %v6505_v13, %v3677_v7 }
0x10a3   : > { %v3682_v47 = vpack.c.bf16 %v3680_v1, %v3678_v20 }
0x10a4   : > { %v3683_v54 = vpack.c.bf16 %v3681_v32, %v3679_v18 }
0x10a5   : > { %v3686_v48 = vunpack.c.h.bf16 %v3682_v47  ;;  %v3684_v49 = vunpack.c.l.bf16 %v3682_v47  ;;  %v3752_v56 = vsel %vm834_vm2, %v3682_v47, 0 }
0x10a6   : > { %v3687_v6 = vunpack.c.h.bf16 %v3683_v54  ;;  %v3685_v55 = vunpack.c.l.bf16 %v3683_v54 }
0x10a7   : > { %v3690_v33 = vsub.f32 %v3680_v1, %v3686_v48  ;;  %v3688_v63 = vsub.f32 %v3678_v20, %v3684_v49 }
0x10a8   : > { %v3691_v44 = vsub.f32 %v3681_v32, %v3687_v6  ;;  %v3689_v45 = vsub.f32 %v3679_v18, %v3685_v55 }
0x10a9   : > { %v3692_v4 = vpack.c.bf16 %v3690_v33, %v3688_v63 }
0x10aa   : > { %v3693_v57 = vpack.c.bf16 %v3691_v44, %v3689_v45 }
0x10ab   : > { %v3695_v31 = vsel %vm834_vm2, %v3692_v4, 0 }
0x10ac   : > { %5208 = vmatprep.subr.msk.bf16.mxu1 %vm834_vm2, %v3693_v57 }
0x10ad   : > { %3701 = vmatpush1.bf16.msra.mxu1 %v3695_v31 }
0x10ae   : > { %5211 = vmatprep.subr.msk.bf16.mxu1 %vm834_vm2, %v3683_v54 }
0x10b0   : > { %5209 = vmatmul.mubr.msk.bf16.vlgmr.msra.gmra.mrb[84].mxu1 %vm830_vm3, %v5969_v10 }
0x10b1   : > { %3758 = vmatpush1.bf16.msra.mxu1 %v3752_v56  ;;  %3742 = vmatprep.mubr.bf16.mxu1 %v6864_v59 }
0x10b2   : > { %5214 = vmatprep.subr.msk.bf16.mxu1 %vm834_vm2, %v3683_v54 }
0x10b8   : > { %5210 = vmatmul.mubr.msk.bf16.gmra.mrb[88].mxu1 %vm830_vm3, %v5980_v28 }
0x10b9   : > { %3789 = vmatprep.mubr.bf16.mxu1 %v6864_v59 }
0x10c0   : > { %5212 = vmatmul.mubr.msk.bf16.vlgmr.msra.gmra.mrb[84].mxu1 %vm830_vm3, %v5969_v10 }
0x10c1   : > { %3809 = vmatpush1.bf16.msra.mxu1 %v3752_v56  ;;  %3799 = vmatprep.mubr.bf16.mxu1 %v6864_v59 }
0x10c8   : > { %5213 = vmatmul.mubr.msk.bf16.gmra.mrb[88].mxu1 %vm830_vm3, %v5980_v28 }
0x10c9   : > { %3840 = vmatprep.mubr.bf16.mxu1 %v6864_v59 }
0x10d0   : > { %5215 = vmatmul.mubr.msk.bf16.vlgmr.msra.gmra.mrb[84].mxu1 %vm830_vm3, %v5993_v34 }
0x10d1   : > { %3850 = vmatprep.mubr.bf16.mxu1 %v6864_v59 }
0x10d8   : > { %5216 = vmatmul.mubr.msk.bf16.gmra.mrb[88].mxu1 %vm830_vm3, %v5999_v53 }
0x10d9   : > { %4261 = vmatprep.mubr.bf16.mxu1 %v6864_v59 }
0x11a3   : > { %v3842_v9 = vpop.f32.mrb[84].mxu1 }
0x11a4   : > { %v3865_v10 = vsel %vm834_vm2, %v3842_v9, 0.0  ;;  %v3844_v13 = vpop.f32.mrb[85].mxu1 }
0x11a5   : > { %v3866_v36 = vsel %vm834_vm2, %v3844_v13, 0.0  ;;  %v3846_v60 = vpop.f32.mrb[86].mxu1 }
0x11a6   : > { %v3848_v28 = vpop.f32.mrb[87].mxu1  ;;  %v3867_v61 = vadd.f32 %v3866_v36, %v3865_v10 }
0x11a8   : > { %3868 = vadd.xlane.f32.xlu0 %v3867_v61 }
0x11ab   : > { %v6586_v37 = vpop.f32.mrb[88].mxu1 }
0x11ac   : > { %v6589_v34 = vsub.f32 %v3846_v60, %v6586_v37  ;;  %v6591_v43 = vpop.f32.mrb[89].mxu1 }
0x11ad   : > { %v6594_v53 = vsub.f32 %v3848_v28, %v6591_v43  ;;  %v3856_v58 = vpop.f32.mrb[90].mxu1 }
0x11ae   : > { %v4213_v46 = vmul.f32 %v6589_v34, %v6589_v34  ;;  %v3857_v2 = vpop.f32.mrb[91].mxu1 }
0x11af   : > { %v4214_v35 = vmul.f32 %v6594_v53, %v6594_v53 }
0x11b0   : > { %v4215_v41 = vpack.c.bf16 %v4213_v46, %v4213_v46 }
0x11b1   : > { %v4216_v24 = vpack.c.bf16 %v4214_v35, %v4214_v35 }
0x11b2   : > { %v4217_v51 = vunpack.c.l.bf16 %v4215_v41  ;;  %v4271_v38 = vsel %vm1651_vm10, %v4215_v41, 0 }
0x11b3   : > { %v4218_v42 = vunpack.c.l.bf16 %v4216_v24 }
0x11b4   : > { %v4219_v0 = vsub.f32 %v4213_v46, %v4217_v51 }
0x11b5   : > { %v4220_v40 = vsub.f32 %v4214_v35, %v4218_v42 }
0x11b6   : > { %v4221_v25 = vpack.c.bf16 %v4219_v0, %v4219_v0 }
0x11b7   : > { %v4222_v3 = vpack.c.bf16 %v4220_v40, %v4220_v40 }
0x11b8   : > { %v4224_v26 = vsel %vm1651_vm10, %v4221_v25, 0 }
0x11b9   : > { %5229 = vmatprep.subr.msk.bf16.mxu1 %vm1651_vm10, %v4222_v3 }
0x11ba   : > { %4230 = vmatpush1.bf16.msra.mxu1 %v4224_v26 }
0x11bb   : > { %5231 = vmatprep.subr.msk.bf16.mxu1 %vm1651_vm10, %v4216_v24 }
0x11bd   : > { %5230 = vmatmul.mubr.msk.bf16.vlgmr.msra.gmra.mrb[92].mxu1 %vm1647_vm11, %v6606_v30 }
0x11be   : > { %4277 = vmatpush1.bf16.msra.mxu1 %v4271_v38  ;;  %4308 = vmatprep.mubr.bf16.mxu1 %v6864_v59 }
0x11c5   : > { %5232 = vmatmul.mubr.msk.bf16.vlgmr.msra.gmra.mrb[96].mxu1 %vm1647_vm11, %v6606_v30 }
0x11c6   : > { %4479 = vmatprep.mubr.bf16.mxu1 %v6864_v59 }
0x1235   : > { %v3869_v27 = vpop.xlane.xlu0 %3868 }
0x1236   : > { %v6615_v11 = vmul.f32 0.00390625, %v3869_v27 }
0x1238   : > { %v6618_v8 = vsub.f32 %v3842_v9, %v6615_v11  ;;  %v6621_v12 = vsub.f32 %v3844_v13, %v6615_v11 }
0x123a   : > { %v3874_v23 = vmul.f32 %v6621_v12, %v6621_v12  ;;  %v3873_v39 = vmul.f32 %v6618_v8, %v6618_v8 }
0x123c   : > { %v3876_v52 = vpack.c.bf16 %v3874_v23, %v3874_v23  ;;  %v3875_v14 = vpack.c.bf16 %v3873_v39, %v3873_v39 }
0x123e   : > { %v3878_v62 = vunpack.c.l.bf16 %v3876_v52  ;;  %v3877_v19 = vunpack.c.l.bf16 %v3875_v14  ;;  %v3931_v18 = vsel %vm1651_vm10, %v3875_v14, 0 }
0x1240   : > { %v3880_v5 = vsub.f32 %v3874_v23, %v3878_v62  ;;  %v3879_v22 = vsub.f32 %v3873_v39, %v3877_v19 }
0x1242   : > { %v3882_v7 = vpack.c.bf16 %v3880_v5, %v3880_v5  ;;  %v3881_v20 = vpack.c.bf16 %v3879_v22, %v3879_v22 }
0x1244   : > { %5217 = vmatprep.subr.msk.bf16.mxu0 %vm1651_vm10, %v3882_v7  ;;  %v3884_v1 = vsel %vm1651_vm10, %v3881_v20, 0 }
0x1245   : > { %3890 = vmatpush1.bf16.msra.mxu0 %v3884_v1 }
0x1246   : > { %5219 = vmatprep.subr.msk.bf16.mxu0 %vm1651_vm10, %v3876_v52 }
0x1248   : > { %5218 = vmatmul.mubr.msk.bf16.vlgmr.msra.gmra.mrb[68].mxu0 %vm1647_vm11, %v6606_v30 }
0x1249   : > { %3937 = vmatpush1.bf16.msra.mxu0 %v3931_v18  ;;  %3968 = vmatprep.mubr.bf16.mxu0 %v6864_v59 }
0x1254   : > { %5220 = vmatmul.mubr.msk.bf16.vlgmr.msra.gmra.mrb[68].mxu0 %vm1647_vm11, %v6606_v30 }
0x1255   : > { %4045 = vmatprep.mubr.bf16.mxu0 %v6864_v59 }
0x1290   : > { %v4263_v40 = vpop.f32.mrb[92].mxu1 }
0x1291   : > { %v4265_v25 = vpop.f32.mrb[93].mxu1 }
0x1292   : > { %v4267_v3 = vpop.f32.mrb[94].mxu1 }
0x1293   : > { %v4268_v26 = vpop.f32.mrb[95].mxu1 }
0x1298   : > { %v4310_v38 = vpop.f32.mrb[96].mxu1 }
0x1299   : > { %v4311_v27 = vadd.f32 %v4310_v38, %v4263_v40  ;;  %v4312_v23 = vpop.f32.mrb[97].mxu1  ;;  %v5598_v40 = vld [vmem:[%s6845_s10 + $0x18] sm:$0xff]  }
0x129a   : > { %v4313_v39 = vadd.f32 %v4312_v23, %v4265_v25  ;;  %v4314_v52 = vpop.f32.mrb[98].mxu1  ;;  %v5599_v25 = vld [vmem:[%s6845_s10 + $0x20] ss:$0 sps:$4 sm:$0xff]  }
0x129b   : > { %v4315_v14 = vpop.f32.mrb[99].mxu1 }
0x1327   : > { %v3970_v32 = vpop.f32.mrb[68].mxu0 }
0x1328   : > { %5579 = vrsqrt.f32 %v3970_v32  ;;  %v3972_v47 = vpop.f32.mrb[69].mxu0  ;;  %vm3979_vm2 = vcmp.eq.f32.partialorder %v3970_v32, inf  ;;  %v3982_v33 = vand.u32 2147483648, %v3970_v32  ;;  %vm3981_vm3 = vcmp.eq.f32.partialorder %v3970_v32, 0.0 }
0x1329   : > { %5581 = vrsqrt.f32 %v3972_v47  ;;  %v3974_v54 = vpop.f32.mrb[70].mxu0  ;;  %vm3986_vm8 = vcmp.eq.f32.partialorder %v3972_v47, inf  ;;  %v3989_v45 = vand.u32 2147483648, %v3972_v47  ;;  %vm3988_vm9 = vcmp.eq.f32.partialorder %v3972_v47, 0.0 }
0x132a   : > { %v3975_v48 = vpop.f32.mrb[71].mxu0 }
0x1332   : > { %v5580_v49 = vpop.eup %5579 }
0x1333   : > { %v5582_v6 = vpop.eup %5581  ;;  %v3978_v55 = vmul.f32 %v5580_v49, %v3970_v32 }
0x1334   : > { %v3985_v63 = vmul.f32 %v5582_v6, %v3972_v47 }
0x1335   : > { %v3980_v44 = vsel %vm3979_vm2, %v3970_v32, %v3978_v55 }
0x1336   : > { %v3983_v4 = vsel %vm3981_vm3, %v3982_v33, %v3980_v44  ;;  %v3987_v57 = vsel %vm3986_vm8, %v3972_v47, %v3985_v63 }
0x1337   : > { %v3991_v31 = vadd.f32 1e-06, %v3983_v4  ;;  %v3990_v56 = vsel %vm3988_vm9, %v3989_v45, %v3987_v57  ;;  %v4320_v45 = vadd.f32 1e-06, %v4313_v39 }
0x1338   : > { %v3992_v9 = vadd.f32 1e-06, %v3990_v56 }
0x1339   : > { %5583 = vrcp.f32 %v3991_v31 }
0x133a   : > { %5585 = vrcp.f32 %v3992_v9 }
0x1343   : > { %v5584_v10 = vpop.eup %5583 }
0x1344   : > { %v5586_v13 = vpop.eup %5585  ;;  %v3995_v36 = vmul.f32 %v5584_v10, %v6062_v16 }
0x1345   : > { %v3996_v60 = vmul.f32 %v5586_v13, %v6062_v16  ;;  %v6647_v16 = vld [vmem:[%s6844_s9] sm:$0x7] }
0x1346   : > { %v3997_v28 = vadd.f32 %v3995_v36, %v6064_v17 }
0x1347   : > { %v3998_v61 = vadd.f32 %v3996_v60, %v6064_v17 }
0x1348   : > { %v3999_v58 = vpack.c.bf16 %v3997_v28, %v3997_v28 }
0x1349   : > { %v4000_v46 = vpack.c.bf16 %v3998_v61, %v3998_v61 }
0x134a   : > { %v4001_v2 = vunpack.c.l.bf16 %v3999_v58  ;;  %v4055_v17 = vsel %vm1789_vm4, %v3999_v58, 0 }
0x134b   : > { %v4002_v35 = vunpack.c.l.bf16 %v4000_v46 }
0x134c   : > { %v4003_v41 = vsub.f32 %v3997_v28, %v4001_v2 }
0x134d   : > { %v4004_v24 = vsub.f32 %v3998_v61, %v4002_v35 }
0x134e   : > { %v4005_v51 = vpack.c.bf16 %v4003_v41, %v4003_v41 }
0x134f   : > { %v4006_v42 = vpack.c.bf16 %v4004_v24, %v4004_v24 }
0x1350   : > { %v4008_v0 = vsel %vm1789_vm4, %v4005_v51, 0 }
0x1351   : > { %5221 = vmatprep.subr.msk.bf16.mxu0 %vm1789_vm4, %v4006_v42 }
0x1352   : > { %4014 = vmatpush1.bf16.msra.mxu0 %v4008_v0  ;;  %v6865_v0 = vld [vmem:[#allocation3_spill] sm:$0xff] }
0x1353   : > { %5223 = vmatprep.subr.msk.bf16.mxu0 %vm1789_vm4, %v4000_v46 }
0x1355   : > { %5222 = vmatmul.mubr.msk.bf16.vlgmr.msra.gmra.mrb[72].mxu0 %vm1785_vm5, %v6647_v16 }
0x1356   : > { %4061 = vmatpush1.bf16.msra.mxu0 %v4055_v17  ;;  %4092 = vmatprep.mubr.bf16.mxu0 %v6864_v59  ;;  %v5595_v17 = vld [vmem:[%s6845_s10] sm:$0xff]  }
0x1361   : > { %5224 = vmatmul.mubr.msk.bf16.vlgmr.msra.gmra.mrb[72].mxu0 %vm1785_vm5, %v6647_v16 }
0x1362   : > { %4157 = vmatprep.mubr.bf16.mxu0 %v6864_v59 }
0x1434   : > { %v4094_v62 = vpop.f32.mrb[72].mxu0 }
0x1435   : > { %v4101_v19 = vmul.f32 %v4094_v62, %v6618_v8  ;;  %v4096_v5 = vpop.f32.mrb[73].mxu0 }
0x1436   : > { %v4102_v22 = vmul.f32 %v4096_v5, %v6621_v12  ;;  %v4098_v7 = vpop.f32.mrb[74].mxu0 }
0x1437   : > { %v6659_v20 = vadd.f32 %v4101_v19, %v6615_v11  ;;  %v4099_v1 = vpop.f32.mrb[75].mxu0 }
0x1438   : > { %v6662_v18 = vadd.f32 %v4102_v22, %v6615_v11 }
0x1439   : > { %v4107_v32 = vsub.f32 %v6659_v20, %v6586_v37 }
0x143a   : > { %v4108_v47 = vsub.f32 %v6662_v18, %v6591_v43  ;;  %v4319_v43 = vadd.f32 1e-06, %v4311_v27 }
0x143b   : > { %v4109_v54 = vmul.f32 %v4107_v32, %v6589_v34 }
0x143c   : > { %v4110_v8 = vmul.f32 %v4108_v47, %v6594_v53  ;;  %5587 = vrcp.f32 %v4319_v43 }
0x143d   : > { %v4111_v48 = vpack.c.bf16 %v4109_v54, %v4109_v54  ;;  %5589 = vrcp.f32 %v4320_v45 }
0x143e   : > { %v4112_v12 = vpack.c.bf16 %v4110_v8, %v4110_v8 }
0x143f   : > { %v4113_v49 = vunpack.c.l.bf16 %v4111_v48  ;;  %v4167_v37 = vsel %vm1651_vm10, %v4111_v48, 0 }
0x1440   : > { %v4114_v6 = vunpack.c.l.bf16 %v4112_v12 }
0x1441   : > { %v4115_v55 = vsub.f32 %v4109_v54, %v4113_v49 }
0x1442   : > { %v4116_v33 = vsub.f32 %v4110_v8, %v4114_v6 }
0x1443   : > { %v4117_v63 = vpack.c.bf16 %v4115_v55, %v4115_v55 }
0x1444   : > { %v4118_v44 = vpack.c.bf16 %v4116_v33, %v4116_v33 }
0x1445   : > { %v4120_v11 = vsel %vm1651_vm10, %v4117_v63, 0 }
0x1446   : > { %5225 = vmatprep.subr.msk.bf16.mxu0 %vm1651_vm10, %v4118_v44  ;;  %v5588_v56 = vpop.eup %5587 }
0x1447   : > { %4126 = vmatpush1.bf16.msra.mxu0 %v4120_v11  ;;  %v5590_v13 = vpop.eup %5589 }
0x1448   : > { %5227 = vmatprep.subr.msk.bf16.mxu0 %vm1651_vm10, %v4112_v12 }
0x144a   : > { %5226 = vmatmul.mubr.msk.bf16.vlgmr.msra.gmra.mrb[76].mxu0 %vm1647_vm11, %v6606_v30 }
0x144b   : > { %4173 = vmatpush1.bf16.msra.mxu0 %v4167_v37  ;;  %4204 = vmatprep.mubr.bf16.mxu0 %v6864_v59 }
0x1456   : > { %5228 = vmatmul.mubr.msk.bf16.vlgmr.msra.gmra.mrb[76].mxu0 %vm1647_vm11, %v6606_v30 }
0x1457   : > { %4371 = vmatprep.mubr.bf16.mxu0 %v6864_v59 }
0x1529   : > { %v4206_v4 = vpop.f32.mrb[76].mxu0 }
0x152a   : > { %v4317_v57 = vmin.f32 %v4206_v4, 0.0  ;;  %v4208_v31 = vpop.f32.mrb[77].mxu0 }
0x152b   : > { %v4318_v9 = vmin.f32 %v4208_v31, 0.0  ;;  %v4210_v10 = vpop.f32.mrb[78].mxu0 }
0x152c   : > { %v4323_v36 = vmul.f32 %v5588_v56, %v4317_v57  ;;  %v4211_v60 = vpop.f32.mrb[79].mxu0 }
0x152d   : > { %v4324_v28 = vmul.f32 %v5590_v13, %v4318_v9 }
0x152e   : > { %v4325_v61 = vpack.c.bf16 %v4323_v36, %v4323_v36 }
0x152f   : > { %v4326_v58 = vpack.c.bf16 %v4324_v28, %v4324_v28 }
0x1530   : > { %v4327_v46 = vunpack.c.l.bf16 %v4325_v61  ;;  %v4381_v42 = vsel %vm1789_vm4, %v4325_v61, 0 }
0x1531   : > { %v4328_v30 = vunpack.c.l.bf16 %v4326_v58 }
0x1532   : > { %v4329_v2 = vsub.f32 %v4323_v36, %v4327_v46 }
0x1533   : > { %v4330_v35 = vsub.f32 %v4324_v28, %v4328_v30 }
0x1534   : > { %v4331_v41 = vpack.c.bf16 %v4329_v2, %v4329_v2 }
0x1535   : > { %v4332_v24 = vpack.c.bf16 %v4330_v35, %v4330_v35 }
0x1536   : > { %v4334_v51 = vsel %vm1789_vm4, %v4331_v41, 0  ;;  %v5600_v41 = vld [vmem:[%s6846_s11] sm:$0xff]  }
0x1537   : > { %5233 = vmatprep.subr.msk.bf16.mxu0 %vm1789_vm4, %v4332_v24  ;;  %v5601_v24 = vld [vmem:[%s6846_s11 + $0x8] sm:$0xff]  }
0x1538   : > { %4340 = vmatpush1.bf16.msra.mxu0 %v4334_v51  ;;  %v5602_v51 = vld [vmem:[%s6846_s11 + $0x10] sm:$0xff]  }
0x1539   : > { %5235 = vmatprep.subr.msk.bf16.mxu0 %vm1789_vm4, %v4326_v58 }
0x153b   : > { %5234 = vmatmul.mubr.msk.bf16.vlgmr.msra.gmra.mrb[80].mxu0 %vm1785_vm5, %v6647_v16 }
0x153c   : > { %4387 = vmatpush1.bf16.msra.mxu0 %v4381_v42  ;;  %4418 = vmatprep.mubr.bf16.mxu0 %v6864_v59  ;;  %v5603_v42 = vld [vmem:[%s6846_s11 + $0x18] sm:$0xff]  }
0x153d   : > { %4591 = vmatprep.subr.bf16.mxu0 %v6202_v15  ;;  %v6866_v15 = vld [vmem:[#allocation2_spill] sm:$0xff] }
0x1547   : > { %5236 = vmatmul.mubr.msk.bf16.vlgmr.msra.gmra.mrb[80].mxu0 %vm1785_vm5, %v6647_v16  ;;  %v6868_v16 = vld [vmem:[#allocation5_spill] sm:$0xff] }
0x1548   : > { %4592 = vmatpush1.bf16.msra.mxu0 %v6205_v21  ;;  %4623 = vmatprep.mubr.bf16.mxu0 %v6864_v59  ;;  %v6867_v21 = vld [vmem:[#allocation4_spill] sm:$0xff] }
0x1549   : > { %5247 = vmatprep.subr.msk.bf16.mxu0 %vm591_vm0, %v6207_v29  ;;  %v5596_v29 = vld [vmem:[%s6845_s10 + $0x8] sm:$0xff]  }
0x154c   : > { %4594 = vmatpush1.bf16.msra.mxu0 %v6215_v50  ;;  %v5597_v50 = vld [vmem:[%s6845_s10 + $0x10] sm:$0xff]  }
0x154d   : > { %4672 = vmatprep.subr.bf16.mxu0 %v6865_v0  ;;  %v5604_v0 = vld [vmem:[%s6846_s11 + $0x20] ss:$0 sps:$4 sm:$0xff]  }
0x154f   : > { %5248 = vmatmul.mubr.msk.bf16.vlgmr.msra.gmra.mrb[84].mxu0 %vm581_vm1, %v5595_v17 }
0x1550   : > { %4673 = vmatpush1.bf16.msra.mxu0 %v6866_v15  ;;  %4633 = vmatprep.mubr.bf16.mxu0 %v6864_v59 }
0x1551   : > { %5253 = vmatprep.subr.msk.bf16.mxu0 %vm591_vm0, %v6867_v21 }
0x1554   : > { %4675 = vmatpush1.bf16.msra.mxu0 %v6868_v16 }
0x1557   : > { %5249 = vmatmul.mubr.msk.bf16.gmra.mrb[88].mxu0 %vm581_vm1, %v5596_v29 }
0x1558   : > { %4643 = vmatprep.mubr.bf16.mxu0 %v6864_v59 }
0x155f   : > { %5250 = vmatmul.mubr.msk.bf16.gmra.mrb[92].mxu0 %vm581_vm1, %v5597_v50 }
0x1560   : > { %4653 = vmatprep.mubr.bf16.mxu0 %v6864_v59 }
0x1567   : > { %5251 = vmatmul.mubr.msk.bf16.gmra.mrb[96].mxu0 %vm581_vm1, %v5598_v40 }
0x1568   : > { %4663 = vmatprep.mubr.bf16.mxu0 %v6864_v59 }
0x156f   : > { %5252 = vmatmul.mubr.msk.bf16.gmra.mrb[100].mxu0 %vm581_vm1, %v5599_v25 }
0x1570   : > { %4704 = vmatprep.mubr.bf16.mxu0 %v6864_v59 }
0x1577   : > { %5254 = vmatmul.mubr.msk.bf16.vlgmr.msra.gmra.mrb[84].mxu0 %vm581_vm1, %v5595_v17 }
0x1578   : > { %4714 = vmatprep.mubr.bf16.mxu0 %v6864_v59 }
0x157f   : > { %5255 = vmatmul.mubr.msk.bf16.gmra.mrb[88].mxu0 %vm581_vm1, %v5596_v29 }
0x1580   : > { %4724 = vmatprep.mubr.bf16.mxu0 %v6864_v59 }
0x1587   : > { %5256 = vmatmul.mubr.msk.bf16.gmra.mrb[92].mxu0 %vm581_vm1, %v5597_v50 }
0x1588   : > { %4734 = vmatprep.mubr.bf16.mxu0 %v6864_v59 }
0x158f   : > { %5257 = vmatmul.mubr.msk.bf16.gmra.mrb[96].mxu0 %vm581_vm1, %v5598_v40 }
0x1590   : > { %4744 = vmatprep.mubr.bf16.mxu0 %v6864_v59 }
0x1597   : > { %5258 = vmatmul.mubr.msk.bf16.gmra.mrb[100].mxu0 %vm581_vm1, %v5599_v25 }
0x161a   : > { %v4420_v3 = vpop.f32.mrb[80].mxu0 }
0x161b   : > { %v4427_v26 = vmul.f32 0.8, %v4420_v3  ;;  %v4422_v38 = vpop.f32.mrb[81].mxu0 }
0x161c   : > { %v4428_v27 = vmul.f32 0.8, %v4422_v38  ;;  %v4424_v23 = vpop.f32.mrb[82].mxu0 }
0x161d   : > { %v4429_v39 = vmul.f32 %v4427_v26, %v6589_v34  ;;  %v4425_v52 = vpop.f32.mrb[83].mxu0  ;;  %v6869_v34 = vld [vmem:[#allocation6_spill] sm:$0xff] }
0x161e   : > { %v4430_v14 = vmul.f32 %v4428_v27, %v6594_v53 }
0x161f   : > { %v4431_v62 = vsub.f32 %v6659_v20, %v4429_v39  ;;  %v6870_v20 = vld [vmem:[#allocation7_spill] sm:$0xff] }
0x1620   : > { %v4432_v19 = vsub.f32 %v6662_v18, %v4430_v14 }
0x1621   : > { %v4433_v5 = vpack.c.bf16 %v4431_v62, %v4431_v62 }
0x1622   : > { %v4434_v22 = vpack.c.bf16 %v4432_v19, %v4432_v19 }
0x1623   : > { %v4435_v7 = vunpack.c.l.bf16 %v4433_v5  ;;  %v4491_v53 = vsel %vm1651_vm10, %v4433_v5, 0 }
0x1624   : > { %v4436_v1 = vunpack.c.l.bf16 %v4434_v22 }
0x1625   : > { %v4437_v32 = vsub.f32 %v4431_v62, %v4435_v7 }
0x1626   : > { %v4438_v47 = vsub.f32 %v4432_v19, %v4436_v1 }
0x1627   : > { %v4439_v54 = vpack.c.bf16 %v4437_v32, %v4437_v32 }
0x1628   : > { %v4440_v8 = vpack.c.bf16 %v4438_v47, %v4438_v47 }
0x1629   : > { %v4442_v48 = vsel %vm1651_vm10, %v4439_v54, 0 }
0x162a   : > { %5237 = vmatprep.subr.msk.bf16.mxu1 %vm1651_vm10, %v4440_v8 }
0x162b   : > { %4448 = vmatpush1.bf16.msra.mxu1 %v4442_v48 }
0x162c   : > { %5239 = vmatprep.subr.msk.bf16.mxu1 %vm1651_vm10, %v4434_v22 }
0x162e   : > { %5238 = vmatmul.mubr.msk.bf16.vlgmr.msra.gmra.mrb[100].mxu1 %vm1647_vm11, %v6869_v34 }
0x162f   : > { %4497 = vmatpush1.bf16.msra.mxu1 %v4491_v53  ;;  %4528 = vmatprep.mubr.bf16.mxu1 %v6864_v59 }
0x1630   : > { %5241 = vmatprep.subr.msk.bf16.mxu1 %vm1651_vm10, %v4434_v22 }
0x163a   : > { %5240 = vmatmul.mubr.msk.bf16.vlgmr.msra.gmra.mrb[100].mxu1 %vm1647_vm11, %v6869_v34 }
0x163b   : > { %4540 = vmatpush1.bf16.msra.mxu1 %v4491_v53  ;;  %4571 = vmatprep.mubr.bf16.mxu1 %v6864_v59 }
0x1646   : > { %5242 = vmatmul.mubr.msk.bf16.vlgmr.msra.gmra.mrb[100].mxu1 %vm1647_vm11, %v6870_v20 }
0x1647   : > { %4797 = vmatprep.mubr.bf16.mxu1 %v6864_v59 }
0x164a   : > { %v6752_v18 = vpop.f32.mrb[84].mxu0 }
0x164b   : > { %v6754_v12 = vpop.f32.mrb[85].mxu0 }
0x164c   : > { %v6756_v49 = vpop.f32.mrb[86].mxu0 }
0x164d   : > { %v6758_v6 = vpop.f32.mrb[87].mxu0 }
0x1652   : > { %v6760_v55 = vpop.f32.mrb[88].mxu0 }
0x1653   : > { %v6762_v33 = vpop.f32.mrb[89].mxu0 }
0x1654   : > { %v6764_v63 = vpop.f32.mrb[90].mxu0 }
0x1655   : > { %v6766_v44 = vpop.f32.mrb[91].mxu0 }
0x165a   : > { %v6768_v11 = vpop.f32.mrb[92].mxu0 }
0x165b   : > { %v6770_v37 = vpop.f32.mrb[93].mxu0 }
0x165c   : > { %v6772_v43 = vpop.f32.mrb[94].mxu0 }
0x165d   : > { %v6774_v45 = vpop.f32.mrb[95].mxu0 }
0x1662   : > { %v4736_v17 = vpop.f32.mrb[96].mxu0 }
0x1663   : > { %v4738_v15 = vpop.f32.mrb[97].mxu0 }
0x1664   : > { %v4740_v21 = vpop.f32.mrb[98].mxu0 }
0x1665   : > { %v4742_v16 = vpop.f32.mrb[99].mxu0 }
0x166a   : > { %v4746_v29 = vpop.f32.mrb[100].mxu0 }
0x166b   : > { %v4748_v50 = vpop.f32.mrb[101].mxu0 }
0x166c   : > { %v4750_v40 = vpop.f32.mrb[102].mxu0 }
0x166d   : > { %v4751_v25 = vpop.f32.mrb[103].mxu0 }
0x1719   : > { %v4573_v4 = vpop.f32.mrb[100].mxu1 }
0x171a   : > { %5243 = vst [vmem:[%s6383_s21 + $0x20] sm:$0xff] %v4573_v4  ;;  %v4575_v57 = vpop.f32.mrb[101].mxu1 }
0x171b   : > { %5244 = vst [vmem:[%s6383_s21 + $0x28] sm:$0xff] %v4575_v57  ;;  %v4577_v31 = vpop.f32.mrb[102].mxu1 }
0x171c   : > { %5245 = vst [vmem:[%s6383_s21 + $0x30] sm:$0xff] %v4577_v31  ;;  %v4753_v56 = vpack.c.bf16 %v4577_v31, %v4573_v4  ;;  %v4579_v9 = vpop.f32.mrb[103].mxu1 }
0x171d   : > { %5246 = vst [vmem:[%s6383_s21 + $0x38] sm:$0xff] %v4579_v9  ;;  %v4754_v10 = vpack.c.bf16 %v4579_v9, %v4575_v57 }
0x171e   : > { %v4755_v13 = vunpack.c.l.bf16 %v4753_v56  ;;  %v4757_v36 = vunpack.c.h.bf16 %v4753_v56 }
0x171f   : > { %v4758_v60 = vunpack.c.h.bf16 %v4754_v10  ;;  %v4756_v28 = vunpack.c.l.bf16 %v4754_v10 }
0x1720   : > { %v4759_v61 = vsub.f32 %v4573_v4, %v4755_v13  ;;  %v4761_v58 = vsub.f32 %v4577_v31, %v4757_v36 }
0x1721   : > { %v4762_v46 = vsub.f32 %v4579_v9, %v4758_v60  ;;  %v4760_v30 = vsub.f32 %v4575_v57, %v4756_v28 }
0x1722   : > { %v4763_v2 = vpack.c.bf16 %v4761_v58, %v4759_v61 }
0x1723   : > { %v4764_v35 = vpack.c.bf16 %v4762_v46, %v4760_v30 }
0x1725   : > { %4765 = vmatprep.subr.bf16.mxu1 %v4764_v35 }
0x1726   : > { %4766 = vmatpush1.bf16.msra.mxu1 %v4763_v2 }
0x1727   : > { %4846 = vmatprep.subr.bf16.mxu1 %v4754_v10 }
0x1729   : > { %5259 = vmatmul.mubr.msk.bf16.vlgmr.msra.gmra.mrb[104].mxu1 %vm2614_vm6, %v5600_v41 }
0x172a   : > { %4847 = vmatpush1.bf16.msra.mxu1 %v4753_v56  ;;  %4807 = vmatprep.mubr.bf16.mxu1 %v6864_v59 }
0x1731   : > { %5260 = vmatmul.mubr.msk.bf16.gmra.mrb[108].mxu1 %vm2614_vm6, %v5601_v24 }
0x1732   : > { %4817 = vmatprep.mubr.bf16.mxu1 %v6864_v59 }
0x1739   : > { %5261 = vmatmul.mubr.msk.bf16.gmra.mrb[112].mxu1 %vm2614_vm6, %v5602_v51 }
0x173a   : > { %4827 = vmatprep.mubr.bf16.mxu1 %v6864_v59 }
0x1741   : > { %5262 = vmatmul.mubr.msk.bf16.gmra.mrb[116].mxu1 %vm2614_vm6, %v5603_v42 }
0x1742   : > { %4837 = vmatprep.mubr.bf16.mxu1 %v6864_v59 }
0x1749   : > { %5263 = vmatmul.mubr.msk.bf16.gmra.mrb[120].mxu1 %vm2614_vm6, %v5604_v0 }
0x174a   : > { %4878 = vmatprep.mubr.bf16.mxu1 %v6864_v59 }
0x1751   : > { %5264 = vmatmul.mubr.msk.bf16.vlgmr.msra.gmra.mrb[104].mxu1 %vm2614_vm6, %v5600_v41 }
0x1752   : > { %4888 = vmatprep.mubr.bf16.mxu1 %v6864_v59 }
0x1759   : > { %5265 = vmatmul.mubr.msk.bf16.gmra.mrb[108].mxu1 %vm2614_vm6, %v5601_v24 }
0x175a   : > { %4898 = vmatprep.mubr.bf16.mxu1 %v6864_v59 }
0x1761   : > { %5266 = vmatmul.mubr.msk.bf16.gmra.mrb[112].mxu1 %vm2614_vm6, %v5602_v51 }
0x1762   : > { %4908 = vmatprep.mubr.bf16.mxu1 %v6864_v59 }
0x1769   : > { %5267 = vmatmul.mubr.msk.bf16.gmra.mrb[116].mxu1 %vm2614_vm6, %v5603_v42 }
0x176a   : > { %4918 = vmatprep.mubr.bf16.mxu1 %v6864_v59 }
0x1771   : > { %5268 = vmatmul.mubr.msk.bf16.gmra.mrb[120].mxu1 %vm2614_vm6, %v5604_v0 }
0x1824   : > { %v4880_v3 = vpop.f32.mrb[104].mxu1 }
0x1825   : > { %v4927_v26 = vmul.f32 %v4880_v3, %v6752_v18  ;;  %v4882_v38 = vpop.f32.mrb[105].mxu1 }
0x1826   : > { %v4928_v27 = vmul.f32 %v4882_v38, %v6754_v12  ;;  %v4884_v23 = vpop.f32.mrb[106].mxu1 }
0x1827   : > { %v4929_v39 = vmul.f32 %v4884_v23, %v6756_v49  ;;  %v4886_v59 = vpop.f32.mrb[107].mxu1 }
0x1828   : > { %v4930_v52 = vmul.f32 %v4886_v59, %v6758_v6 }
0x182c   : > { %v4890_v14 = vpop.f32.mrb[108].mxu1 }
0x182d   : > { %v4931_v62 = vmul.f32 %v4890_v14, %v6760_v55  ;;  %v4892_v19 = vpop.f32.mrb[109].mxu1 }
0x182e   : > { %v4932_v5 = vmul.f32 %v4892_v19, %v6762_v33  ;;  %v4894_v22 = vpop.f32.mrb[110].mxu1 }
0x182f   : > { %v4933_v7 = vmul.f32 %v4894_v22, %v6764_v63  ;;  %v4896_v1 = vpop.f32.mrb[111].mxu1 }
0x1830   : > { %v4934_v32 = vmul.f32 %v4896_v1, %v6766_v44 }
0x1831   : > { %v4939_v47 = vadd.f32 %v4933_v7, %v4927_v26 }
0x1832   : > { %v4940_v54 = vadd.f32 %v4934_v32, %v4928_v27 }
0x1834   : > { %v4900_v8 = vpop.f32.mrb[112].mxu1 }
0x1835   : > { %v4935_v48 = vmul.f32 %v4900_v8, %v6768_v11  ;;  %v4902_v34 = vpop.f32.mrb[113].mxu1 }
0x1836   : > { %v4936_v53 = vmul.f32 %v4902_v34, %v6770_v37  ;;  %v4904_v20 = vpop.f32.mrb[114].mxu1 }
0x1837   : > { %v4941_v18 = vadd.f32 %v4935_v48, %v4929_v39  ;;  %v4937_v12 = vmul.f32 %v4904_v20, %v6772_v43  ;;  %v4906_v49 = vpop.f32.mrb[115].mxu1 }
0x1838   : > { %v4942_v6 = vadd.f32 %v4936_v53, %v4930_v52  ;;  %v4938_v55 = vmul.f32 %v4906_v49, %v6774_v45 }
0x1839   : > { %v4943_v33 = vadd.f32 %v4937_v12, %v4931_v62 }
0x183a   : > { %v4944_v63 = vadd.f32 %v4938_v55, %v4932_v5 }
0x183c   : > { %v4910_v44 = vpop.f32.mrb[116].mxu1 }
0x183d   : > { %v4945_v4 = vmul.f32 %v4910_v44, %v4736_v17  ;;  %v4912_v11 = vpop.f32.mrb[117].mxu1 }
0x183e   : > { %v4946_v57 = vmul.f32 %v4912_v11, %v4738_v15  ;;  %v4914_v31 = vpop.f32.mrb[118].mxu1 }
0x183f   : > { %v4951_v37 = vadd.f32 %v4945_v4, %v4939_v47  ;;  %v4947_v56 = vmul.f32 %v4914_v31, %v4740_v21  ;;  %v4916_v9 = vpop.f32.mrb[119].mxu1 }
0x1840   : > { %v4952_v10 = vadd.f32 %v4946_v57, %v4940_v54  ;;  %v4948_v43 = vmul.f32 %v4916_v9, %v4742_v16 }
0x1841   : > { %5269 = vst [vmem:[%s6459_s23 + $0x30] sm:$0xff] %v4951_v37  ;;  %v4953_v13 = vadd.f32 %v4947_v56, %v4941_v18 }
0x1842   : > { %5270 = vst [vmem:[%s6459_s23 + $0x38] sm:$0xff] %v4952_v10  ;;  %v4954_v45 = vadd.f32 %v4948_v43, %v4942_v6 }
0x1843   : > { %5271 = vst [vmem:[%s6459_s23 + $0x40] sm:$0xff] %v4953_v13 }
0x1844   : > { %5272 = vst [vmem:[%s6459_s23 + $0x48] sm:$0xff] %v4954_v45  ;;  %v4920_v36 = vpop.f32.mrb[120].mxu1 }
0x1845   : > { %v4949_v60 = vmul.f32 %v4920_v36, %v4746_v29  ;;  %v4922_v28 = vpop.f32.mrb[121].mxu1 }
0x1846   : > { %v4950_v61 = vmul.f32 %v4922_v28, %v4748_v50  ;;  %v4924_v58 = vpop.f32.mrb[122].mxu1 }
0x1847   : > { %v4955_v46 = vadd.f32 %v4949_v60, %v4943_v33  ;;  %v4925_v30 = vpop.f32.mrb[123].mxu1 }
0x1848   : > { %v4956_v2 = vadd.f32 %v4950_v61, %v4944_v63 }
0x1849   : > { %5273 = vst [vmem:[%s6459_s23 + $0x50] sm:$0xff] %v4955_v46 }
0x184a   : > { %5274 = vst [vmem:[%s6459_s23 + $0x58] sm:$0xff] %v4956_v2 }
0x184b PF: > { %s24_s25 = sadd.s32 1, %s5611_s25  }
0x184c   : > { %p21_p4 = scmp.ge.s32.totalorder %s24_s25, 4  }
0x184e   :  { %23 = sbr.rel (!%p21_p4) target bundleno = 1 (0x1), region = 113 }

</bundles_post_ra>
